<compile_context>
chip_gen: v5e
topology: v5e:2x2
jax: 0.10.0
libtpu: 0.0.40
codegen_flags: <defaults>
</compile_context>

<pallas_src>
import functools
import math

import jax
import jax.numpy as jnp
import numpy as np
from jax.experimental import pallas as pl
from jax.experimental.pallas import tpu as pltpu


# ----------------------------------------------------------------------------
# Fused Pallas kernel
# ----------------------------------------------------------------------------
def _layer_norm(x, g, b, eps=1e-5):
    mu = jnp.mean(x, axis=-1, keepdims=True)
    var = jnp.mean((x - mu) ** 2, axis=-1, keepdims=True)
    return (x - mu) * jax.lax.rsqrt(var + eps) * g + b


def _fused_forward_kernel(*refs, nhead, num_layers, B, S, D):
    """Whole HorseTransformer forward (minus embedding gathers) in one kernel.

    refs layout:
      [cat_emb (N,C), num_x (N,ND), wn_t (ND,ND), bn (1,ND),
       wo_cat (C,D), wo_num (ND,D), bo (1,D), pe (N,D)]
      + per layer: [wqkv (D,3D), bqkv (1,3D), wo (D,D), bo_attn (1,D),
                    g1 (1,D), be1 (1,D), w1 (D,FF), b1 (1,FF),
                    w2 (FF,D), b2 (1,D), g2 (1,D), be2 (1,D)]
      + [fc_w (D,6), fc_b (1,6)]
      + [out (N,6)]
    """
    (cat_ref, num_ref, wn_ref, bn_ref,
     woc_ref, won_ref, bo_ref, pe_ref) = refs[:8]
    layer_refs = refs[8:8 + 12 * num_layers]
    fc_w_ref, fc_b_ref = refs[8 + 12 * num_layers: 8 + 12 * num_layers + 2]
    out_ref = refs[-1]

    # ---- FeatureEmbedder tail: out_linear(concat(cat_emb, num_linear(num_x)))
    num_emb = (
        jnp.dot(num_ref[...], wn_ref[...], preferred_element_type=jnp.float32)
        + bn_ref[...]
    )
    x = (
        jnp.dot(cat_ref[...], woc_ref[...], preferred_element_type=jnp.float32)
        + jnp.dot(num_emb, won_ref[...], preferred_element_type=jnp.float32)
        + bo_ref[...]
    )

    # ---- positional encoding (pre-tiled to (N, D) in the wrapper)
    x = x + pe_ref[...]

    dh = D // nhead
    scale = 1.0 / math.sqrt(dh)

    # ---- transformer encoder layers (static unroll; weights already in VMEM)
    for l in range(num_layers):
        (wqkv_ref, bqkv_ref, wo_ref, boa_ref,
         g1_ref, be1_ref, w1_ref, b1_ref,
         w2_ref, b2_ref, g2_ref, be2_ref) = layer_refs[12 * l: 12 * (l + 1)]

        # Fused QKV projection on the flattened (B*S, D) activations.
        qkv = (
            jnp.dot(x, wqkv_ref[...], preferred_element_type=jnp.float32)
            + bqkv_ref[...]
        )                                           # (N, 3D)
        q = qkv[:, :D]
        k = qkv[:, D:2 * D]
        v = qkv[:, 2 * D:]

        # Per-(batch, head) attention; tiny static loops (B, nhead small).
        batch_outs = []
        for b in range(B):
            r0 = b * S
            heads = []
            for h in range(nhead):
                c0 = h * dh
                qh = q[r0:r0 + S, c0:c0 + dh]
                kh = k[r0:r0 + S, c0:c0 + dh]
                vh = v[r0:r0 + S, c0:c0 + dh]
                s = jnp.dot(qh, kh.T, preferred_element_type=jnp.float32) * scale
                s = s - jnp.max(s, axis=-1, keepdims=True)
                p = jnp.exp(s)
                p = p * pl.reciprocal(
                    jnp.sum(p, axis=-1, keepdims=True), approx=True)
                heads.append(
                    jnp.dot(p, vh, preferred_element_type=jnp.float32))
            batch_outs.append(jnp.concatenate(heads, axis=-1))     # (S, D)
        attn_cat = jnp.concatenate(batch_outs, axis=0)             # (N, D)

        # Single output projection over all heads / all batch rows.
        attn_out = (
            jnp.dot(attn_cat, wo_ref[...], preferred_element_type=jnp.float32)
            + boa_ref[...]
        )

        # residual + LayerNorm 1 (post-norm, eps=1e-5)
        x = _layer_norm(x + attn_out, g1_ref[...], be1_ref[...])

        # feed-forward: linear1 -> relu -> linear2
        h1 = jnp.maximum(
            jnp.dot(x, w1_ref[...], preferred_element_type=jnp.float32)
            + b1_ref[...], 0.0)
        h2 = (
            jnp.dot(h1, w2_ref[...], preferred_element_type=jnp.float32)
            + b2_ref[...]
        )

        # residual + LayerNorm 2
        x = _layer_norm(x + h2, g2_ref[...], be2_ref[...])

    # ---- final fc_out
    out_ref[...] = (
        jnp.dot(x, fc_w_ref[...], preferred_element_type=jnp.float32)
        + fc_b_ref[...]
    )


# ----------------------------------------------------------------------------
# Wrapper (glue: gathers, weight layout, single pallas_call)
# ----------------------------------------------------------------------------
def horse_transformer_forward(params, pe, src, *, d_model, nhead):
    B, S, _ = src.shape
    N = B * S
    D = d_model
    cat_cols = params["cat_cols"]
    cat_len = len(cat_cols)
    num_layers = len(params["layers"])
    FF = params["layers"][0]["w1"].shape[0]

    # FeatureEmbedder embedding gathers (glue)
    cat_x = src[..., :cat_len].astype(jnp.int32)
    num_x = src[..., cat_len:]
    embs = [params["emb"][c][cat_x[..., i]] for i, c in enumerate(cat_cols)]
    cat_emb = jnp.concatenate(embs, axis=-1).reshape(N, -1)   # (N, C)
    num_x2 = num_x.reshape(N, -1)                             # (N, ND)
    C = cat_emb.shape[1]
    ND = num_x2.shape[1]

    # Positional encoding tiled per batch so the kernel works on (N, D).
    pe_tiled = jnp.tile(pe[:S, :], (B, 1))                    # (N, D)

    # PyTorch (out, in) weights -> (in, out); split out_linear to avoid concat.
    args = [
        cat_emb, num_x2,
        params["num_w"].T, params["num_b"].reshape(1, ND),
        params["out_w"][:, :C].T,          # (C, D)
        params["out_w"][:, C:].T,          # (ND, D)
        params["out_b"].reshape(1, D),
        pe_tiled,
    ]
    for lp in params["layers"]:
        args += [
            lp["in_proj_w"].T,                       # (D, 3D) -> fused QKV
            lp["in_proj_b"].reshape(1, 3 * D),
            lp["out_proj_w"].T,                      # (D, D)
            lp["out_proj_b"].reshape(1, D),
            lp["ln1_g"].reshape(1, D), lp["ln1_b"].reshape(1, D),
            lp["w1"].T, lp["b1"].reshape(1, FF),     # (D, FF)
            lp["w2"].T, lp["b2"].reshape(1, D),      # (FF, D)
            lp["ln2_g"].reshape(1, D), lp["ln2_b"].reshape(1, D),
        ]
    args += [params["fc_w"].T, params["fc_b"].reshape(1, 6)]

    kernel = functools.partial(
        _fused_forward_kernel, nhead=nhead, num_layers=num_layers,
        B=B, S=S, D=D)

    # Whole-array kernel: no grid, every operand resident in VMEM.
    logits = pl.pallas_call(
        kernel,
        out_shape=jax.ShapeDtypeStruct((N, 6), jnp.float32),
        in_specs=[pl.BlockSpec(memory_space=pltpu.MemorySpace.VMEM)
                  for _ in args],
        out_specs=pl.BlockSpec(memory_space=pltpu.MemorySpace.VMEM),
    )(*args)
    return logits.reshape(B, S, 6)


# ----------------------------------------------------------------------------
# Parameter construction (deterministic, synthetic)
# ----------------------------------------------------------------------------
def emb_dim_for(unique_count, cat_emb_dim=16):
    return max(min(cat_emb_dim, unique_count // 2 + 1), 4)


def make_positional_encoding(max_len, d_model):
    pe = np.zeros((max_len, d_model), dtype=np.float32)
    position = np.arange(0, max_len, dtype=np.float32)[:, None]
    div_term = np.exp(np.arange(0, d_model, 2, dtype=np.float32)
                      * (-math.log(10000.0) / d_model))
    pe[:, 0::2] = np.sin(position * div_term)
    if d_model % 2 == 1:
        pe[:, 1::2] = np.cos(position * div_term[:-1])
    else:
        pe[:, 1::2] = np.cos(position * div_term)
    return jnp.asarray(pe)


def init_params(key, cat_unique, cat_cols, num_dim, d_model, nhead,
                num_layers, dim_ff):
    def nrm(k, shape, scale=0.02):
        return jax.random.normal(k, shape, dtype=jnp.float32) * scale

    keys = iter(jax.random.split(key, 8 + 2 * len(cat_cols) + 12 * num_layers))
    params = {"cat_cols": list(cat_cols), "emb": {}}

    # FeatureEmbedder
    for c in cat_cols:
        params["emb"][c] = nrm(next(keys),
                               (cat_unique[c], emb_dim_for(cat_unique[c])))
    cat_out_dim = sum(emb_dim_for(cat_unique[c]) for c in cat_cols)
    params["num_w"] = nrm(next(keys), (num_dim, num_dim))
    params["num_b"] = jnp.zeros((num_dim,), jnp.float32)
    params["out_w"] = nrm(next(keys), (d_model, cat_out_dim + num_dim))
    params["out_b"] = jnp.zeros((d_model,), jnp.float32)

    # Transformer encoder layers (PyTorch defaults: post-norm, relu, ff=2048)
    params["layers"] = []
    for _ in range(num_layers):
        lp = {
            "in_proj_w": nrm(next(keys), (3 * d_model, d_model)),
            "in_proj_b": jnp.zeros((3 * d_model,), jnp.float32),
            "out_proj_w": nrm(next(keys), (d_model, d_model)),
            "out_proj_b": jnp.zeros((d_model,), jnp.float32),
            "ln1_g": jnp.ones((d_model,), jnp.float32),
            "ln1_b": jnp.zeros((d_model,), jnp.float32),
            "w1": nrm(next(keys), (dim_ff, d_model)),
            "b1": jnp.zeros((dim_ff,), jnp.float32),
            "w2": nrm(next(keys), (d_model, dim_ff)),
            "b2": jnp.zeros((d_model,), jnp.float32),
            "ln2_g": jnp.ones((d_model,), jnp.float32),
            "ln2_b": jnp.zeros((d_model,), jnp.float32),
        }
        params["layers"].append(lp)

    # fc_out
    params["fc_w"] = nrm(next(keys), (6, d_model))
    params["fc_b"] = jnp.zeros((6,), jnp.float32)
    return params


# ----------------------------------------------------------------------------
# Main
# ----------------------------------------------------------------------------
if __name__ == "__main__":
    # Small shapes consistent with the module
    B, S = 2, 8
    cat_cols = ["horse_id", "jockey_id", "track"]
    cat_unique = {"horse_id": 100, "jockey_id": 30, "track": 7}
    num_dim = 12
    d_model = 32
    nhead = 4
    num_layers = 2
    dim_ff = 2048          # nn.TransformerEncoderLayer default
    max_seq_len = 16

    key = jax.random.PRNGKey(0)
    kp, kc, kn = jax.random.split(key, 3)

    params = init_params(kp, cat_unique, cat_cols, num_dim, d_model, nhead,
                         num_layers, dim_ff)
    pe = make_positional_encoding(max_seq_len, d_model)

    # Build src = [categorical indices (as floats) | numeric features]
    cat_idx = jnp.stack(
        [jax.random.randint(jax.random.fold_in(kc, i), (B, S), 0, cat_unique[c])
         for i, c in enumerate(cat_cols)], axis=-1).astype(jnp.float32)
    num_feat = jax.random.normal(kn, (B, S, num_dim), dtype=jnp.float32)
    src = jnp.concatenate([cat_idx, num_feat], axis=-1)        # (2, 8, 15)

    logits = horse_transformer_forward(params, pe, src,
                                       d_model=d_model, nhead=nhead)
    logits = jax.block_until_ready(logits)
    assert logits.shape == (B, S, 6) and logits.dtype == jnp.float32
    assert bool(jnp.all(jnp.isfinite(logits)))
    print("KERNEL_OK")
</pallas_src>

<mosaic_0001>
module attributes {stable_mosaic.version = 11 : i64} {
  func.func @_fused_forward_kernel(%arg0: memref<16x36xf32, #tpu.memory_space<vmem>>, %arg1: memref<16x12xf32, #tpu.memory_space<vmem>>, %arg2: memref<12x12xf32, #tpu.memory_space<vmem>>, %arg3: memref<1x12xf32, #tpu.memory_space<vmem>>, %arg4: memref<36x32xf32, #tpu.memory_space<vmem>>, %arg5: memref<12x32xf32, #tpu.memory_space<vmem>>, %arg6: memref<1x32xf32, #tpu.memory_space<vmem>>, %arg7: memref<16x32xf32, #tpu.memory_space<vmem>>, %arg8: memref<32x96xf32, #tpu.memory_space<vmem>>, %arg9: memref<1x96xf32, #tpu.memory_space<vmem>>, %arg10: memref<32x32xf32, #tpu.memory_space<vmem>>, %arg11: memref<1x32xf32, #tpu.memory_space<vmem>>, %arg12: memref<1x32xf32, #tpu.memory_space<vmem>>, %arg13: memref<1x32xf32, #tpu.memory_space<vmem>>, %arg14: memref<32x2048xf32, #tpu.memory_space<vmem>>, %arg15: memref<1x2048xf32, #tpu.memory_space<vmem>>, %arg16: memref<2048x32xf32, #tpu.memory_space<vmem>>, %arg17: memref<1x32xf32, #tpu.memory_space<vmem>>, %arg18: memref<1x32xf32, #tpu.memory_space<vmem>>, %arg19: memref<1x32xf32, #tpu.memory_space<vmem>>, %arg20: memref<32x96xf32, #tpu.memory_space<vmem>>, %arg21: memref<1x96xf32, #tpu.memory_space<vmem>>, %arg22: memref<32x32xf32, #tpu.memory_space<vmem>>, %arg23: memref<1x32xf32, #tpu.memory_space<vmem>>, %arg24: memref<1x32xf32, #tpu.memory_space<vmem>>, %arg25: memref<1x32xf32, #tpu.memory_space<vmem>>, %arg26: memref<32x2048xf32, #tpu.memory_space<vmem>>, %arg27: memref<1x2048xf32, #tpu.memory_space<vmem>>, %arg28: memref<2048x32xf32, #tpu.memory_space<vmem>>, %arg29: memref<1x32xf32, #tpu.memory_space<vmem>>, %arg30: memref<1x32xf32, #tpu.memory_space<vmem>>, %arg31: memref<1x32xf32, #tpu.memory_space<vmem>>, %arg32: memref<32x6xf32, #tpu.memory_space<vmem>>, %arg33: memref<1x6xf32, #tpu.memory_space<vmem>>, %arg34: memref<16x6xf32, #tpu.memory_space<vmem>>) attributes {dimension_semantics = [], scalar_prefetch = 0 : i64, scratch_operands = 0 : i64, tpu.core_type = #tpu.core_type<tc>} {
    %c0 = arith.constant 0 : index
    %c0_0 = arith.constant 0 : index
    %0 = vector.load %arg1[%c0, %c0_0] : memref<16x12xf32, #tpu.memory_space<vmem>>, vector<16x12xf32>
    %c0_1 = arith.constant 0 : index
    %c0_2 = arith.constant 0 : index
    %1 = vector.load %arg2[%c0_1, %c0_2] : memref<12x12xf32, #tpu.memory_space<vmem>>, vector<12x12xf32>
    %cst = arith.constant dense<0.000000e+00> : vector<16x12xf32>
    %2 = tpu.matmul %0, %1, %cst {dimension_numbers = #tpu.dot_dimension_numbers<[1], [0], [0], [1], [0, 0, 1, 1], [], []>} : vector<16x12xf32>, vector<12x12xf32>, vector<16x12xf32> -> vector<16x12xf32>
    %c0_3 = arith.constant 0 : index
    %c0_4 = arith.constant 0 : index
    %3 = vector.load %arg3[%c0_3, %c0_4] : memref<1x12xf32, #tpu.memory_space<vmem>>, vector<1x12xf32>
    %4 = vector.broadcast %3 : vector<1x12xf32> to vector<16x12xf32>
    %5 = arith.addf %2, %4 : vector<16x12xf32>
    %c0_5 = arith.constant 0 : index
    %c0_6 = arith.constant 0 : index
    %6 = vector.load %arg0[%c0_5, %c0_6] : memref<16x36xf32, #tpu.memory_space<vmem>>, vector<16x36xf32>
    %c0_7 = arith.constant 0 : index
    %c0_8 = arith.constant 0 : index
    %7 = vector.load %arg4[%c0_7, %c0_8] : memref<36x32xf32, #tpu.memory_space<vmem>>, vector<36x32xf32>
    %cst_9 = arith.constant dense<0.000000e+00> : vector<16x32xf32>
    %8 = tpu.matmul %6, %7, %cst_9 {dimension_numbers = #tpu.dot_dimension_numbers<[1], [0], [0], [1], [0, 0, 1, 1], [], []>} : vector<16x36xf32>, vector<36x32xf32>, vector<16x32xf32> -> vector<16x32xf32>
    %c0_10 = arith.constant 0 : index
    %c0_11 = arith.constant 0 : index
    %9 = vector.load %arg5[%c0_10, %c0_11] : memref<12x32xf32, #tpu.memory_space<vmem>>, vector<12x32xf32>
    %cst_12 = arith.constant dense<0.000000e+00> : vector<16x32xf32>
    %10 = tpu.matmul %5, %9, %cst_12 {dimension_numbers = #tpu.dot_dimension_numbers<[1], [0], [0], [1], [0, 0, 1, 1], [], []>} : vector<16x12xf32>, vector<12x32xf32>, vector<16x32xf32> -> vector<16x32xf32>
    %11 = arith.addf %8, %10 : vector<16x32xf32>
    %c0_13 = arith.constant 0 : index
    %c0_14 = arith.constant 0 : index
    %12 = vector.load %arg6[%c0_13, %c0_14] : memref<1x32xf32, #tpu.memory_space<vmem>>, vector<1x32xf32>
    %13 = vector.broadcast %12 : vector<1x32xf32> to vector<16x32xf32>
    %14 = arith.addf %11, %13 : vector<16x32xf32>
    %c0_15 = arith.constant 0 : index
    %c0_16 = arith.constant 0 : index
    %15 = vector.load %arg7[%c0_15, %c0_16] : memref<16x32xf32, #tpu.memory_space<vmem>>, vector<16x32xf32>
    %16 = arith.addf %14, %15 : vector<16x32xf32>
    %c0_17 = arith.constant 0 : index
    %c0_18 = arith.constant 0 : index
    %17 = vector.load %arg8[%c0_17, %c0_18] : memref<32x96xf32, #tpu.memory_space<vmem>>, vector<32x96xf32>
    %cst_19 = arith.constant dense<0.000000e+00> : vector<16x96xf32>
    %18 = tpu.matmul %16, %17, %cst_19 {dimension_numbers = #tpu.dot_dimension_numbers<[1], [0], [0], [1], [0, 0, 1, 1], [], []>} : vector<16x32xf32>, vector<32x96xf32>, vector<16x96xf32> -> vector<16x96xf32>
    %c0_20 = arith.constant 0 : index
    %c0_21 = arith.constant 0 : index
    %19 = vector.load %arg9[%c0_20, %c0_21] : memref<1x96xf32, #tpu.memory_space<vmem>>, vector<1x96xf32>
    %20 = vector.broadcast %19 : vector<1x96xf32> to vector<16x96xf32>
    %21 = arith.addf %18, %20 : vector<16x96xf32>
    %22 = vector.extract_strided_slice %21 {offsets = [0, 0], sizes = [16, 32], strides = [1, 1]} : vector<16x96xf32> to vector<16x32xf32>
    %23 = vector.extract_strided_slice %21 {offsets = [0, 32], sizes = [16, 32], strides = [1, 1]} : vector<16x96xf32> to vector<16x32xf32>
    %24 = vector.extract_strided_slice %21 {offsets = [0, 64], sizes = [16, 32], strides = [1, 1]} : vector<16x96xf32> to vector<16x32xf32>
    %25 = vector.extract_strided_slice %22 {offsets = [0, 0], sizes = [8, 8], strides = [1, 1]} : vector<16x32xf32> to vector<8x8xf32>
    %26 = vector.extract_strided_slice %23 {offsets = [0, 0], sizes = [8, 8], strides = [1, 1]} : vector<16x32xf32> to vector<8x8xf32>
    %27 = vector.extract_strided_slice %24 {offsets = [0, 0], sizes = [8, 8], strides = [1, 1]} : vector<16x32xf32> to vector<8x8xf32>
    %28 = tpu.transpose %26, [1, 0] : vector<8x8xf32> -> vector<8x8xf32>
    %cst_22 = arith.constant dense<0.000000e+00> : vector<8x8xf32>
    %29 = tpu.matmul %25, %28, %cst_22 {dimension_numbers = #tpu.dot_dimension_numbers<[1], [0], [0], [1], [0, 0, 1, 1], [], []>} : vector<8x8xf32>, vector<8x8xf32>, vector<8x8xf32> -> vector<8x8xf32>
    %cst_23 = arith.constant 0.353553385 : f32
    %30 = vector.broadcast %cst_23 : f32 to vector<8x8xf32>
    %31 = arith.mulf %29, %30 : vector<8x8xf32>
    %cst_24 = arith.constant dense<0xFF800000> : vector<8xf32>
    %32 = vector.multi_reduction <maximumf>, %31, %cst_24 [1] : vector<8x8xf32> to vector<8xf32>
    %33 = vector.shape_cast %32 : vector<8xf32> to vector<8x1xf32>
    %34 = vector.broadcast %33 : vector<8x1xf32> to vector<8x8xf32>
    %35 = arith.subf %31, %34 : vector<8x8xf32>
    %36 = math.exp %35 : vector<8x8xf32>
    %cst_25 = arith.constant dense<0.000000e+00> : vector<8xf32>
    %37 = vector.multi_reduction <add>, %36, %cst_25 [1] : vector<8x8xf32> to vector<8xf32>
    %38 = vector.shape_cast %37 : vector<8xf32> to vector<8x1xf32>
    %39 = tpu.reciprocal %38 {approx = true} : vector<8x1xf32> -> vector<8x1xf32>
    %40 = vector.broadcast %39 : vector<8x1xf32> to vector<8x8xf32>
    %41 = arith.mulf %36, %40 : vector<8x8xf32>
    %cst_26 = arith.constant dense<0.000000e+00> : vector<8x8xf32>
    %42 = tpu.matmul %41, %27, %cst_26 {dimension_numbers = #tpu.dot_dimension_numbers<[1], [0], [0], [1], [0, 0, 1, 1], [], []>} : vector<8x8xf32>, vector<8x8xf32>, vector<8x8xf32> -> vector<8x8xf32>
    %43 = vector.extract_strided_slice %22 {offsets = [0, 8], sizes = [8, 8], strides = [1, 1]} : vector<16x32xf32> to vector<8x8xf32>
    %44 = vector.extract_strided_slice %23 {offsets = [0, 8], sizes = [8, 8], strides = [1, 1]} : vector<16x32xf32> to vector<8x8xf32>
    %45 = vector.extract_strided_slice %24 {offsets = [0, 8], sizes = [8, 8], strides = [1, 1]} : vector<16x32xf32> to vector<8x8xf32>
    %46 = tpu.transpose %44, [1, 0] : vector<8x8xf32> -> vector<8x8xf32>
    %cst_27 = arith.constant dense<0.000000e+00> : vector<8x8xf32>
    %47 = tpu.matmul %43, %46, %cst_27 {dimension_numbers = #tpu.dot_dimension_numbers<[1], [0], [0], [1], [0, 0, 1, 1], [], []>} : vector<8x8xf32>, vector<8x8xf32>, vector<8x8xf32> -> vector<8x8xf32>
    %cst_28 = arith.constant 0.353553385 : f32
    %48 = vector.broadcast %cst_28 : f32 to vector<8x8xf32>
    %49 = arith.mulf %47, %48 : vector<8x8xf32>
    %cst_29 = arith.constant dense<0xFF800000> : vector<8xf32>
    %50 = vector.multi_reduction <maximumf>, %49, %cst_29 [1] : vector<8x8xf32> to vector<8xf32>
    %51 = vector.shape_cast %50 : vector<8xf32> to vector<8x1xf32>
    %52 = vector.broadcast %51 : vector<8x1xf32> to vector<8x8xf32>
    %53 = arith.subf %49, %52 : vector<8x8xf32>
    %54 = math.exp %53 : vector<8x8xf32>
    %cst_30 = arith.constant dense<0.000000e+00> : vector<8xf32>
    %55 = vector.multi_reduction <add>, %54, %cst_30 [1] : vector<8x8xf32> to vector<8xf32>
    %56 = vector.shape_cast %55 : vector<8xf32> to vector<8x1xf32>
    %57 = tpu.reciprocal %56 {approx = true} : vector<8x1xf32> -> vector<8x1xf32>
    %58 = vector.broadcast %57 : vector<8x1xf32> to vector<8x8xf32>
    %59 = arith.mulf %54, %58 : vector<8x8xf32>
    %cst_31 = arith.constant dense<0.000000e+00> : vector<8x8xf32>
    %60 = tpu.matmul %59, %45, %cst_31 {dimension_numbers = #tpu.dot_dimension_numbers<[1], [0], [0], [1], [0, 0, 1, 1], [], []>} : vector<8x8xf32>, vector<8x8xf32>, vector<8x8xf32> -> vector<8x8xf32>
    %61 = vector.extract_strided_slice %22 {offsets = [0, 16], sizes = [8, 8], strides = [1, 1]} : vector<16x32xf32> to vector<8x8xf32>
    %62 = vector.extract_strided_slice %23 {offsets = [0, 16], sizes = [8, 8], strides = [1, 1]} : vector<16x32xf32> to vector<8x8xf32>
    %63 = vector.extract_strided_slice %24 {offsets = [0, 16], sizes = [8, 8], strides = [1, 1]} : vector<16x32xf32> to vector<8x8xf32>
    %64 = tpu.transpose %62, [1, 0] : vector<8x8xf32> -> vector<8x8xf32>
    %cst_32 = arith.constant dense<0.000000e+00> : vector<8x8xf32>
    %65 = tpu.matmul %61, %64, %cst_32 {dimension_numbers = #tpu.dot_dimension_numbers<[1], [0], [0], [1], [0, 0, 1, 1], [], []>} : vector<8x8xf32>, vector<8x8xf32>, vector<8x8xf32> -> vector<8x8xf32>
    %cst_33 = arith.constant 0.353553385 : f32
    %66 = vector.broadcast %cst_33 : f32 to vector<8x8xf32>
    %67 = arith.mulf %65, %66 : vector<8x8xf32>
    %cst_34 = arith.constant dense<0xFF800000> : vector<8xf32>
    %68 = vector.multi_reduction <maximumf>, %67, %cst_34 [1] : vector<8x8xf32> to vector<8xf32>
    %69 = vector.shape_cast %68 : vector<8xf32> to vector<8x1xf32>
    %70 = vector.broadcast %69 : vector<8x1xf32> to vector<8x8xf32>
    %71 = arith.subf %67, %70 : vector<8x8xf32>
    %72 = math.exp %71 : vector<8x8xf32>
    %cst_35 = arith.constant dense<0.000000e+00> : vector<8xf32>
    %73 = vector.multi_reduction <add>, %72, %cst_35 [1] : vector<8x8xf32> to vector<8xf32>
    %74 = vector.shape_cast %73 : vector<8xf32> to vector<8x1xf32>
    %75 = tpu.reciprocal %74 {approx = true} : vector<8x1xf32> -> vector<8x1xf32>
    %76 = vector.broadcast %75 : vector<8x1xf32> to vector<8x8xf32>
    %77 = arith.mulf %72, %76 : vector<8x8xf32>
    %cst_36 = arith.constant dense<0.000000e+00> : vector<8x8xf32>
    %78 = tpu.matmul %77, %63, %cst_36 {dimension_numbers = #tpu.dot_dimension_numbers<[1], [0], [0], [1], [0, 0, 1, 1], [], []>} : vector<8x8xf32>, vector<8x8xf32>, vector<8x8xf32> -> vector<8x8xf32>
    %79 = vector.extract_strided_slice %22 {offsets = [0, 24], sizes = [8, 8], strides = [1, 1]} : vector<16x32xf32> to vector<8x8xf32>
    %80 = vector.extract_strided_slice %23 {offsets = [0, 24], sizes = [8, 8], strides = [1, 1]} : vector<16x32xf32> to vector<8x8xf32>
    %81 = vector.extract_strided_slice %24 {offsets = [0, 24], sizes = [8, 8], strides = [1, 1]} : vector<16x32xf32> to vector<8x8xf32>
    %82 = tpu.transpose %80, [1, 0] : vector<8x8xf32> -> vector<8x8xf32>
    %cst_37 = arith.constant dense<0.000000e+00> : vector<8x8xf32>
    %83 = tpu.matmul %79, %82, %cst_37 {dimension_numbers = #tpu.dot_dimension_numbers<[1], [0], [0], [1], [0, 0, 1, 1], [], []>} : vector<8x8xf32>, vector<8x8xf32>, vector<8x8xf32> -> vector<8x8xf32>
    %cst_38 = arith.constant 0.353553385 : f32
    %84 = vector.broadcast %cst_38 : f32 to vector<8x8xf32>
    %85 = arith.mulf %83, %84 : vector<8x8xf32>
    %cst_39 = arith.constant dense<0xFF800000> : vector<8xf32>
    %86 = vector.multi_reduction <maximumf>, %85, %cst_39 [1] : vector<8x8xf32> to vector<8xf32>
    %87 = vector.shape_cast %86 : vector<8xf32> to vector<8x1xf32>
    %88 = vector.broadcast %87 : vector<8x1xf32> to vector<8x8xf32>
    %89 = arith.subf %85, %88 : vector<8x8xf32>
    %90 = math.exp %89 : vector<8x8xf32>
    %cst_40 = arith.constant dense<0.000000e+00> : vector<8xf32>
    %91 = vector.multi_reduction <add>, %90, %cst_40 [1] : vector<8x8xf32> to vector<8xf32>
    %92 = vector.shape_cast %91 : vector<8xf32> to vector<8x1xf32>
    %93 = tpu.reciprocal %92 {approx = true} : vector<8x1xf32> -> vector<8x1xf32>
    %94 = vector.broadcast %93 : vector<8x1xf32> to vector<8x8xf32>
    %95 = arith.mulf %90, %94 : vector<8x8xf32>
    %cst_41 = arith.constant dense<0.000000e+00> : vector<8x8xf32>
    %96 = tpu.matmul %95, %81, %cst_41 {dimension_numbers = #tpu.dot_dimension_numbers<[1], [0], [0], [1], [0, 0, 1, 1], [], []>} : vector<8x8xf32>, vector<8x8xf32>, vector<8x8xf32> -> vector<8x8xf32>
    %97 = tpu.concatenate %42, %60, %78, %96 in 1 : vector<8x8xf32>, vector<8x8xf32>, vector<8x8xf32>, vector<8x8xf32> -> vector<8x32xf32>
    %98 = vector.extract_strided_slice %22 {offsets = [8, 0], sizes = [8, 8], strides = [1, 1]} : vector<16x32xf32> to vector<8x8xf32>
    %99 = vector.extract_strided_slice %23 {offsets = [8, 0], sizes = [8, 8], strides = [1, 1]} : vector<16x32xf32> to vector<8x8xf32>
    %100 = vector.extract_strided_slice %24 {offsets = [8, 0], sizes = [8, 8], strides = [1, 1]} : vector<16x32xf32> to vector<8x8xf32>
    %101 = tpu.transpose %99, [1, 0] : vector<8x8xf32> -> vector<8x8xf32>
    %cst_42 = arith.constant dense<0.000000e+00> : vector<8x8xf32>
    %102 = tpu.matmul %98, %101, %cst_42 {dimension_numbers = #tpu.dot_dimension_numbers<[1], [0], [0], [1], [0, 0, 1, 1], [], []>} : vector<8x8xf32>, vector<8x8xf32>, vector<8x8xf32> -> vector<8x8xf32>
    %cst_43 = arith.constant 0.353553385 : f32
    %103 = vector.broadcast %cst_43 : f32 to vector<8x8xf32>
    %104 = arith.mulf %102, %103 : vector<8x8xf32>
    %cst_44 = arith.constant dense<0xFF800000> : vector<8xf32>
    %105 = vector.multi_reduction <maximumf>, %104, %cst_44 [1] : vector<8x8xf32> to vector<8xf32>
    %106 = vector.shape_cast %105 : vector<8xf32> to vector<8x1xf32>
    %107 = vector.broadcast %106 : vector<8x1xf32> to vector<8x8xf32>
    %108 = arith.subf %104, %107 : vector<8x8xf32>
    %109 = math.exp %108 : vector<8x8xf32>
    %cst_45 = arith.constant dense<0.000000e+00> : vector<8xf32>
    %110 = vector.multi_reduction <add>, %109, %cst_45 [1] : vector<8x8xf32> to vector<8xf32>
    %111 = vector.shape_cast %110 : vector<8xf32> to vector<8x1xf32>
    %112 = tpu.reciprocal %111 {approx = true} : vector<8x1xf32> -> vector<8x1xf32>
    %113 = vector.broadcast %112 : vector<8x1xf32> to vector<8x8xf32>
    %114 = arith.mulf %109, %113 : vector<8x8xf32>
    %cst_46 = arith.constant dense<0.000000e+00> : vector<8x8xf32>
    %115 = tpu.matmul %114, %100, %cst_46 {dimension_numbers = #tpu.dot_dimension_numbers<[1], [0], [0], [1], [0, 0, 1, 1], [], []>} : vector<8x8xf32>, vector<8x8xf32>, vector<8x8xf32> -> vector<8x8xf32>
    %116 = vector.extract_strided_slice %22 {offsets = [8, 8], sizes = [8, 8], strides = [1, 1]} : vector<16x32xf32> to vector<8x8xf32>
    %117 = vector.extract_strided_slice %23 {offsets = [8, 8], sizes = [8, 8], strides = [1, 1]} : vector<16x32xf32> to vector<8x8xf32>
    %118 = vector.extract_strided_slice %24 {offsets = [8, 8], sizes = [8, 8], strides = [1, 1]} : vector<16x32xf32> to vector<8x8xf32>
    %119 = tpu.transpose %117, [1, 0] : vector<8x8xf32> -> vector<8x8xf32>
    %cst_47 = arith.constant dense<0.000000e+00> : vector<8x8xf32>
    %120 = tpu.matmul %116, %119, %cst_47 {dimension_numbers = #tpu.dot_dimension_numbers<[1], [0], [0], [1], [0, 0, 1, 1], [], []>} : vector<8x8xf32>, vector<8x8xf32>, vector<8x8xf32> -> vector<8x8xf32>
    %cst_48 = arith.constant 0.353553385 : f32
    %121 = vector.broadcast %cst_48 : f32 to vector<8x8xf32>
    %122 = arith.mulf %120, %121 : vector<8x8xf32>
    %cst_49 = arith.constant dense<0xFF800000> : vector<8xf32>
    %123 = vector.multi_reduction <maximumf>, %122, %cst_49 [1] : vector<8x8xf32> to vector<8xf32>
    %124 = vector.shape_cast %123 : vector<8xf32> to vector<8x1xf32>
    %125 = vector.broadcast %124 : vector<8x1xf32> to vector<8x8xf32>
    %126 = arith.subf %122, %125 : vector<8x8xf32>
    %127 = math.exp %126 : vector<8x8xf32>
    %cst_50 = arith.constant dense<0.000000e+00> : vector<8xf32>
    %128 = vector.multi_reduction <add>, %127, %cst_50 [1] : vector<8x8xf32> to vector<8xf32>
    %129 = vector.shape_cast %128 : vector<8xf32> to vector<8x1xf32>
    %130 = tpu.reciprocal %129 {approx = true} : vector<8x1xf32> -> vector<8x1xf32>
    %131 = vector.broadcast %130 : vector<8x1xf32> to vector<8x8xf32>
    %132 = arith.mulf %127, %131 : vector<8x8xf32>
    %cst_51 = arith.constant dense<0.000000e+00> : vector<8x8xf32>
    %133 = tpu.matmul %132, %118, %cst_51 {dimension_numbers = #tpu.dot_dimension_numbers<[1], [0], [0], [1], [0, 0, 1, 1], [], []>} : vector<8x8xf32>, vector<8x8xf32>, vector<8x8xf32> -> vector<8x8xf32>
    %134 = vector.extract_strided_slice %22 {offsets = [8, 16], sizes = [8, 8], strides = [1, 1]} : vector<16x32xf32> to vector<8x8xf32>
    %135 = vector.extract_strided_slice %23 {offsets = [8, 16], sizes = [8, 8], strides = [1, 1]} : vector<16x32xf32> to vector<8x8xf32>
    %136 = vector.extract_strided_slice %24 {offsets = [8, 16], sizes = [8, 8], strides = [1, 1]} : vector<16x32xf32> to vector<8x8xf32>
    %137 = tpu.transpose %135, [1, 0] : vector<8x8xf32> -> vector<8x8xf32>
    %cst_52 = arith.constant dense<0.000000e+00> : vector<8x8xf32>
    %138 = tpu.matmul %134, %137, %cst_52 {dimension_numbers = #tpu.dot_dimension_numbers<[1], [0], [0], [1], [0, 0, 1, 1], [], []>} : vector<8x8xf32>, vector<8x8xf32>, vector<8x8xf32> -> vector<8x8xf32>
    %cst_53 = arith.constant 0.353553385 : f32
    %139 = vector.broadcast %cst_53 : f32 to vector<8x8xf32>
    %140 = arith.mulf %138, %139 : vector<8x8xf32>
    %cst_54 = arith.constant dense<0xFF800000> : vector<8xf32>
    %141 = vector.multi_reduction <maximumf>, %140, %cst_54 [1] : vector<8x8xf32> to vector<8xf32>
    %142 = vector.shape_cast %141 : vector<8xf32> to vector<8x1xf32>
    %143 = vector.broadcast %142 : vector<8x1xf32> to vector<8x8xf32>
    %144 = arith.subf %140, %143 : vector<8x8xf32>
    %145 = math.exp %144 : vector<8x8xf32>
    %cst_55 = arith.constant dense<0.000000e+00> : vector<8xf32>
    %146 = vector.multi_reduction <add>, %145, %cst_55 [1] : vector<8x8xf32> to vector<8xf32>
    %147 = vector.shape_cast %146 : vector<8xf32> to vector<8x1xf32>
    %148 = tpu.reciprocal %147 {approx = true} : vector<8x1xf32> -> vector<8x1xf32>
    %149 = vector.broadcast %148 : vector<8x1xf32> to vector<8x8xf32>
    %150 = arith.mulf %145, %149 : vector<8x8xf32>
    %cst_56 = arith.constant dense<0.000000e+00> : vector<8x8xf32>
    %151 = tpu.matmul %150, %136, %cst_56 {dimension_numbers = #tpu.dot_dimension_numbers<[1], [0], [0], [1], [0, 0, 1, 1], [], []>} : vector<8x8xf32>, vector<8x8xf32>, vector<8x8xf32> -> vector<8x8xf32>
    %152 = vector.extract_strided_slice %22 {offsets = [8, 24], sizes = [8, 8], strides = [1, 1]} : vector<16x32xf32> to vector<8x8xf32>
    %153 = vector.extract_strided_slice %23 {offsets = [8, 24], sizes = [8, 8], strides = [1, 1]} : vector<16x32xf32> to vector<8x8xf32>
    %154 = vector.extract_strided_slice %24 {offsets = [8, 24], sizes = [8, 8], strides = [1, 1]} : vector<16x32xf32> to vector<8x8xf32>
    %155 = tpu.transpose %153, [1, 0] : vector<8x8xf32> -> vector<8x8xf32>
    %cst_57 = arith.constant dense<0.000000e+00> : vector<8x8xf32>
    %156 = tpu.matmul %152, %155, %cst_57 {dimension_numbers = #tpu.dot_dimension_numbers<[1], [0], [0], [1], [0, 0, 1, 1], [], []>} : vector<8x8xf32>, vector<8x8xf32>, vector<8x8xf32> -> vector<8x8xf32>
    %cst_58 = arith.constant 0.353553385 : f32
    %157 = vector.broadcast %cst_58 : f32 to vector<8x8xf32>
    %158 = arith.mulf %156, %157 : vector<8x8xf32>
    %cst_59 = arith.constant dense<0xFF800000> : vector<8xf32>
    %159 = vector.multi_reduction <maximumf>, %158, %cst_59 [1] : vector<8x8xf32> to vector<8xf32>
    %160 = vector.shape_cast %159 : vector<8xf32> to vector<8x1xf32>
    %161 = vector.broadcast %160 : vector<8x1xf32> to vector<8x8xf32>
    %162 = arith.subf %158, %161 : vector<8x8xf32>
    %163 = math.exp %162 : vector<8x8xf32>
    %cst_60 = arith.constant dense<0.000000e+00> : vector<8xf32>
    %164 = vector.multi_reduction <add>, %163, %cst_60 [1] : vector<8x8xf32> to vector<8xf32>
    %165 = vector.shape_cast %164 : vector<8xf32> to vector<8x1xf32>
    %166 = tpu.reciprocal %165 {approx = true} : vector<8x1xf32> -> vector<8x1xf32>
    %167 = vector.broadcast %166 : vector<8x1xf32> to vector<8x8xf32>
    %168 = arith.mulf %163, %167 : vector<8x8xf32>
    %cst_61 = arith.constant dense<0.000000e+00> : vector<8x8xf32>
    %169 = tpu.matmul %168, %154, %cst_61 {dimension_numbers = #tpu.dot_dimension_numbers<[1], [0], [0], [1], [0, 0, 1, 1], [], []>} : vector<8x8xf32>, vector<8x8xf32>, vector<8x8xf32> -> vector<8x8xf32>
    %170 = tpu.concatenate %115, %133, %151, %169 in 1 : vector<8x8xf32>, vector<8x8xf32>, vector<8x8xf32>, vector<8x8xf32> -> vector<8x32xf32>
    %171 = tpu.concatenate %97, %170 in 0 : vector<8x32xf32>, vector<8x32xf32> -> vector<16x32xf32>
    %c0_62 = arith.constant 0 : index
    %c0_63 = arith.constant 0 : index
    %172 = vector.load %arg10[%c0_62, %c0_63] : memref<32x32xf32, #tpu.memory_space<vmem>>, vector<32x32xf32>
    %cst_64 = arith.constant dense<0.000000e+00> : vector<16x32xf32>
    %173 = tpu.matmul %171, %172, %cst_64 {dimension_numbers = #tpu.dot_dimension_numbers<[1], [0], [0], [1], [0, 0, 1, 1], [], []>} : vector<16x32xf32>, vector<32x32xf32>, vector<16x32xf32> -> vector<16x32xf32>
    %c0_65 = arith.constant 0 : index
    %c0_66 = arith.constant 0 : index
    %174 = vector.load %arg11[%c0_65, %c0_66] : memref<1x32xf32, #tpu.memory_space<vmem>>, vector<1x32xf32>
    %175 = vector.broadcast %174 : vector<1x32xf32> to vector<16x32xf32>
    %176 = arith.addf %173, %175 : vector<16x32xf32>
    %177 = arith.addf %16, %176 : vector<16x32xf32>
    %c0_67 = arith.constant 0 : index
    %c0_68 = arith.constant 0 : index
    %178 = vector.load %arg12[%c0_67, %c0_68] : memref<1x32xf32, #tpu.memory_space<vmem>>, vector<1x32xf32>
    %c0_69 = arith.constant 0 : index
    %c0_70 = arith.constant 0 : index
    %179 = vector.load %arg13[%c0_69, %c0_70] : memref<1x32xf32, #tpu.memory_space<vmem>>, vector<1x32xf32>
    %cst_71 = arith.constant dense<0.000000e+00> : vector<16xf32>
    %180 = vector.multi_reduction <add>, %177, %cst_71 [1] : vector<16x32xf32> to vector<16xf32>
    %181 = vector.shape_cast %180 : vector<16xf32> to vector<16x1xf32>
    %cst_72 = arith.constant 3.200000e+01 : f32
    %182 = vector.broadcast %cst_72 : f32 to vector<16x1xf32>
    %183 = arith.divf %181, %182 : vector<16x1xf32>
    %184 = vector.broadcast %183 : vector<16x1xf32> to vector<16x32xf32>
    %185 = arith.subf %177, %184 : vector<16x32xf32>
    %186 = arith.mulf %185, %185 : vector<16x32xf32>
    %cst_73 = arith.constant dense<0.000000e+00> : vector<16xf32>
    %187 = vector.multi_reduction <add>, %186, %cst_73 [1] : vector<16x32xf32> to vector<16xf32>
    %188 = vector.shape_cast %187 : vector<16xf32> to vector<16x1xf32>
    %cst_74 = arith.constant 3.200000e+01 : f32
    %189 = vector.broadcast %cst_74 : f32 to vector<16x1xf32>
    %190 = arith.divf %188, %189 : vector<16x1xf32>
    %191 = vector.broadcast %183 : vector<16x1xf32> to vector<16x32xf32>
    %192 = arith.subf %177, %191 : vector<16x32xf32>
    %cst_75 = arith.constant 9.99999974E-6 : f32
    %193 = vector.broadcast %cst_75 : f32 to vector<16x1xf32>
    %194 = arith.addf %190, %193 : vector<16x1xf32>
    %195 = math.rsqrt %194 : vector<16x1xf32>
    %196 = vector.broadcast %195 : vector<16x1xf32> to vector<16x32xf32>
    %197 = arith.mulf %192, %196 : vector<16x32xf32>
    %198 = vector.broadcast %178 : vector<1x32xf32> to vector<16x32xf32>
    %199 = arith.mulf %197, %198 : vector<16x32xf32>
    %200 = vector.broadcast %179 : vector<1x32xf32> to vector<16x32xf32>
    %201 = arith.addf %199, %200 : vector<16x32xf32>
    %c0_76 = arith.constant 0 : index
    %c0_77 = arith.constant 0 : index
    %202 = vector.load %arg14[%c0_76, %c0_77] : memref<32x2048xf32, #tpu.memory_space<vmem>>, vector<32x2048xf32>
    %cst_78 = arith.constant dense<0.000000e+00> : vector<16x2048xf32>
    %203 = tpu.matmul %201, %202, %cst_78 {dimension_numbers = #tpu.dot_dimension_numbers<[1], [0], [0], [1], [0, 0, 1, 1], [], []>} : vector<16x32xf32>, vector<32x2048xf32>, vector<16x2048xf32> -> vector<16x2048xf32>
    %c0_79 = arith.constant 0 : index
    %c0_80 = arith.constant 0 : index
    %204 = vector.load %arg15[%c0_79, %c0_80] : memref<1x2048xf32, #tpu.memory_space<vmem>>, vector<1x2048xf32>
    %205 = vector.broadcast %204 : vector<1x2048xf32> to vector<16x2048xf32>
    %206 = arith.addf %203, %205 : vector<16x2048xf32>
    %cst_81 = arith.constant 0.000000e+00 : f32
    %207 = vector.broadcast %cst_81 : f32 to vector<16x2048xf32>
    %208 = arith.maximumf %206, %207 : vector<16x2048xf32>
    %c0_82 = arith.constant 0 : index
    %c0_83 = arith.constant 0 : index
    %209 = vector.load %arg16[%c0_82, %c0_83] : memref<2048x32xf32, #tpu.memory_space<vmem>>, vector<2048x32xf32>
    %cst_84 = arith.constant dense<0.000000e+00> : vector<16x32xf32>
    %210 = tpu.matmul %208, %209, %cst_84 {dimension_numbers = #tpu.dot_dimension_numbers<[1], [0], [0], [1], [0, 0, 1, 1], [], []>} : vector<16x2048xf32>, vector<2048x32xf32>, vector<16x32xf32> -> vector<16x32xf32>
    %c0_85 = arith.constant 0 : index
    %c0_86 = arith.constant 0 : index
    %211 = vector.load %arg17[%c0_85, %c0_86] : memref<1x32xf32, #tpu.memory_space<vmem>>, vector<1x32xf32>
    %212 = vector.broadcast %211 : vector<1x32xf32> to vector<16x32xf32>
    %213 = arith.addf %210, %212 : vector<16x32xf32>
    %214 = arith.addf %201, %213 : vector<16x32xf32>
    %c0_87 = arith.constant 0 : index
    %c0_88 = arith.constant 0 : index
    %215 = vector.load %arg18[%c0_87, %c0_88] : memref<1x32xf32, #tpu.memory_space<vmem>>, vector<1x32xf32>
    %c0_89 = arith.constant 0 : index
    %c0_90 = arith.constant 0 : index
    %216 = vector.load %arg19[%c0_89, %c0_90] : memref<1x32xf32, #tpu.memory_space<vmem>>, vector<1x32xf32>
    %cst_91 = arith.constant dense<0.000000e+00> : vector<16xf32>
    %217 = vector.multi_reduction <add>, %214, %cst_91 [1] : vector<16x32xf32> to vector<16xf32>
    %218 = vector.shape_cast %217 : vector<16xf32> to vector<16x1xf32>
    %cst_92 = arith.constant 3.200000e+01 : f32
    %219 = vector.broadcast %cst_92 : f32 to vector<16x1xf32>
    %220 = arith.divf %218, %219 : vector<16x1xf32>
    %221 = vector.broadcast %220 : vector<16x1xf32> to vector<16x32xf32>
    %222 = arith.subf %214, %221 : vector<16x32xf32>
    %223 = arith.mulf %222, %222 : vector<16x32xf32>
    %cst_93 = arith.constant dense<0.000000e+00> : vector<16xf32>
    %224 = vector.multi_reduction <add>, %223, %cst_93 [1] : vector<16x32xf32> to vector<16xf32>
    %225 = vector.shape_cast %224 : vector<16xf32> to vector<16x1xf32>
    %cst_94 = arith.constant 3.200000e+01 : f32
    %226 = vector.broadcast %cst_94 : f32 to vector<16x1xf32>
    %227 = arith.divf %225, %226 : vector<16x1xf32>
    %228 = vector.broadcast %220 : vector<16x1xf32> to vector<16x32xf32>
    %229 = arith.subf %214, %228 : vector<16x32xf32>
    %cst_95 = arith.constant 9.99999974E-6 : f32
    %230 = vector.broadcast %cst_95 : f32 to vector<16x1xf32>
    %231 = arith.addf %227, %230 : vector<16x1xf32>
    %232 = math.rsqrt %231 : vector<16x1xf32>
    %233 = vector.broadcast %232 : vector<16x1xf32> to vector<16x32xf32>
    %234 = arith.mulf %229, %233 : vector<16x32xf32>
    %235 = vector.broadcast %215 : vector<1x32xf32> to vector<16x32xf32>
    %236 = arith.mulf %234, %235 : vector<16x32xf32>
    %237 = vector.broadcast %216 : vector<1x32xf32> to vector<16x32xf32>
    %238 = arith.addf %236, %237 : vector<16x32xf32>
    %c0_96 = arith.constant 0 : index
    %c0_97 = arith.constant 0 : index
    %239 = vector.load %arg20[%c0_96, %c0_97] : memref<32x96xf32, #tpu.memory_space<vmem>>, vector<32x96xf32>
    %cst_98 = arith.constant dense<0.000000e+00> : vector<16x96xf32>
    %240 = tpu.matmul %238, %239, %cst_98 {dimension_numbers = #tpu.dot_dimension_numbers<[1], [0], [0], [1], [0, 0, 1, 1], [], []>} : vector<16x32xf32>, vector<32x96xf32>, vector<16x96xf32> -> vector<16x96xf32>
    %c0_99 = arith.constant 0 : index
    %c0_100 = arith.constant 0 : index
    %241 = vector.load %arg21[%c0_99, %c0_100] : memref<1x96xf32, #tpu.memory_space<vmem>>, vector<1x96xf32>
    %242 = vector.broadcast %241 : vector<1x96xf32> to vector<16x96xf32>
    %243 = arith.addf %240, %242 : vector<16x96xf32>
    %244 = vector.extract_strided_slice %243 {offsets = [0, 0], sizes = [16, 32], strides = [1, 1]} : vector<16x96xf32> to vector<16x32xf32>
    %245 = vector.extract_strided_slice %243 {offsets = [0, 32], sizes = [16, 32], strides = [1, 1]} : vector<16x96xf32> to vector<16x32xf32>
    %246 = vector.extract_strided_slice %243 {offsets = [0, 64], sizes = [16, 32], strides = [1, 1]} : vector<16x96xf32> to vector<16x32xf32>
    %247 = vector.extract_strided_slice %244 {offsets = [0, 0], sizes = [8, 8], strides = [1, 1]} : vector<16x32xf32> to vector<8x8xf32>
    %248 = vector.extract_strided_slice %245 {offsets = [0, 0], sizes = [8, 8], strides = [1, 1]} : vector<16x32xf32> to vector<8x8xf32>
    %249 = vector.extract_strided_slice %246 {offsets = [0, 0], sizes = [8, 8], strides = [1, 1]} : vector<16x32xf32> to vector<8x8xf32>
    %250 = tpu.transpose %248, [1, 0] : vector<8x8xf32> -> vector<8x8xf32>
    %cst_101 = arith.constant dense<0.000000e+00> : vector<8x8xf32>
    %251 = tpu.matmul %247, %250, %cst_101 {dimension_numbers = #tpu.dot_dimension_numbers<[1], [0], [0], [1], [0, 0, 1, 1], [], []>} : vector<8x8xf32>, vector<8x8xf32>, vector<8x8xf32> -> vector<8x8xf32>
    %cst_102 = arith.constant 0.353553385 : f32
    %252 = vector.broadcast %cst_102 : f32 to vector<8x8xf32>
    %253 = arith.mulf %251, %252 : vector<8x8xf32>
    %cst_103 = arith.constant dense<0xFF800000> : vector<8xf32>
    %254 = vector.multi_reduction <maximumf>, %253, %cst_103 [1] : vector<8x8xf32> to vector<8xf32>
    %255 = vector.shape_cast %254 : vector<8xf32> to vector<8x1xf32>
    %256 = vector.broadcast %255 : vector<8x1xf32> to vector<8x8xf32>
    %257 = arith.subf %253, %256 : vector<8x8xf32>
    %258 = math.exp %257 : vector<8x8xf32>
    %cst_104 = arith.constant dense<0.000000e+00> : vector<8xf32>
    %259 = vector.multi_reduction <add>, %258, %cst_104 [1] : vector<8x8xf32> to vector<8xf32>
    %260 = vector.shape_cast %259 : vector<8xf32> to vector<8x1xf32>
    %261 = tpu.reciprocal %260 {approx = true} : vector<8x1xf32> -> vector<8x1xf32>
    %262 = vector.broadcast %261 : vector<8x1xf32> to vector<8x8xf32>
    %263 = arith.mulf %258, %262 : vector<8x8xf32>
    %cst_105 = arith.constant dense<0.000000e+00> : vector<8x8xf32>
    %264 = tpu.matmul %263, %249, %cst_105 {dimension_numbers = #tpu.dot_dimension_numbers<[1], [0], [0], [1], [0, 0, 1, 1], [], []>} : vector<8x8xf32>, vector<8x8xf32>, vector<8x8xf32> -> vector<8x8xf32>
    %265 = vector.extract_strided_slice %244 {offsets = [0, 8], sizes = [8, 8], strides = [1, 1]} : vector<16x32xf32> to vector<8x8xf32>
    %266 = vector.extract_strided_slice %245 {offsets = [0, 8], sizes = [8, 8], strides = [1, 1]} : vector<16x32xf32> to vector<8x8xf32>
    %267 = vector.extract_strided_slice %246 {offsets = [0, 8], sizes = [8, 8], strides = [1, 1]} : vector<16x32xf32> to vector<8x8xf32>
    %268 = tpu.transpose %266, [1, 0] : vector<8x8xf32> -> vector<8x8xf32>
    %cst_106 = arith.constant dense<0.000000e+00> : vector<8x8xf32>
    %269 = tpu.matmul %265, %268, %cst_106 {dimension_numbers = #tpu.dot_dimension_numbers<[1], [0], [0], [1], [0, 0, 1, 1], [], []>} : vector<8x8xf32>, vector<8x8xf32>, vector<8x8xf32> -> vector<8x8xf32>
    %cst_107 = arith.constant 0.353553385 : f32
    %270 = vector.broadcast %cst_107 : f32 to vector<8x8xf32>
    %271 = arith.mulf %269, %270 : vector<8x8xf32>
    %cst_108 = arith.constant dense<0xFF800000> : vector<8xf32>
    %272 = vector.multi_reduction <maximumf>, %271, %cst_108 [1] : vector<8x8xf32> to vector<8xf32>
    %273 = vector.shape_cast %272 : vector<8xf32> to vector<8x1xf32>
    %274 = vector.broadcast %273 : vector<8x1xf32> to vector<8x8xf32>
    %275 = arith.subf %271, %274 : vector<8x8xf32>
    %276 = math.exp %275 : vector<8x8xf32>
    %cst_109 = arith.constant dense<0.000000e+00> : vector<8xf32>
    %277 = vector.multi_reduction <add>, %276, %cst_109 [1] : vector<8x8xf32> to vector<8xf32>
    %278 = vector.shape_cast %277 : vector<8xf32> to vector<8x1xf32>
    %279 = tpu.reciprocal %278 {approx = true} : vector<8x1xf32> -> vector<8x1xf32>
    %280 = vector.broadcast %279 : vector<8x1xf32> to vector<8x8xf32>
    %281 = arith.mulf %276, %280 : vector<8x8xf32>
    %cst_110 = arith.constant dense<0.000000e+00> : vector<8x8xf32>
    %282 = tpu.matmul %281, %267, %cst_110 {dimension_numbers = #tpu.dot_dimension_numbers<[1], [0], [0], [1], [0, 0, 1, 1], [], []>} : vector<8x8xf32>, vector<8x8xf32>, vector<8x8xf32> -> vector<8x8xf32>
    %283 = vector.extract_strided_slice %244 {offsets = [0, 16], sizes = [8, 8], strides = [1, 1]} : vector<16x32xf32> to vector<8x8xf32>
    %284 = vector.extract_strided_slice %245 {offsets = [0, 16], sizes = [8, 8], strides = [1, 1]} : vector<16x32xf32> to vector<8x8xf32>
    %285 = vector.extract_strided_slice %246 {offsets = [0, 16], sizes = [8, 8], strides = [1, 1]} : vector<16x32xf32> to vector<8x8xf32>
    %286 = tpu.transpose %284, [1, 0] : vector<8x8xf32> -> vector<8x8xf32>
    %cst_111 = arith.constant dense<0.000000e+00> : vector<8x8xf32>
    %287 = tpu.matmul %283, %286, %cst_111 {dimension_numbers = #tpu.dot_dimension_numbers<[1], [0], [0], [1], [0, 0, 1, 1], [], []>} : vector<8x8xf32>, vector<8x8xf32>, vector<8x8xf32> -> vector<8x8xf32>
    %cst_112 = arith.constant 0.353553385 : f32
    %288 = vector.broadcast %cst_112 : f32 to vector<8x8xf32>
    %289 = arith.mulf %287, %288 : vector<8x8xf32>
    %cst_113 = arith.constant dense<0xFF800000> : vector<8xf32>
    %290 = vector.multi_reduction <maximumf>, %289, %cst_113 [1] : vector<8x8xf32> to vector<8xf32>
    %291 = vector.shape_cast %290 : vector<8xf32> to vector<8x1xf32>
    %292 = vector.broadcast %291 : vector<8x1xf32> to vector<8x8xf32>
    %293 = arith.subf %289, %292 : vector<8x8xf32>
    %294 = math.exp %293 : vector<8x8xf32>
    %cst_114 = arith.constant dense<0.000000e+00> : vector<8xf32>
    %295 = vector.multi_reduction <add>, %294, %cst_114 [1] : vector<8x8xf32> to vector<8xf32>
    %296 = vector.shape_cast %295 : vector<8xf32> to vector<8x1xf32>
    %297 = tpu.reciprocal %296 {approx = true} : vector<8x1xf32> -> vector<8x1xf32>
    %298 = vector.broadcast %297 : vector<8x1xf32> to vector<8x8xf32>
    %299 = arith.mulf %294, %298 : vector<8x8xf32>
    %cst_115 = arith.constant dense<0.000000e+00> : vector<8x8xf32>
    %300 = tpu.matmul %299, %285, %cst_115 {dimension_numbers = #tpu.dot_dimension_numbers<[1], [0], [0], [1], [0, 0, 1, 1], [], []>} : vector<8x8xf32>, vector<8x8xf32>, vector<8x8xf32> -> vector<8x8xf32>
    %301 = vector.extract_strided_slice %244 {offsets = [0, 24], sizes = [8, 8], strides = [1, 1]} : vector<16x32xf32> to vector<8x8xf32>
    %302 = vector.extract_strided_slice %245 {offsets = [0, 24], sizes = [8, 8], strides = [1, 1]} : vector<16x32xf32> to vector<8x8xf32>
    %303 = vector.extract_strided_slice %246 {offsets = [0, 24], sizes = [8, 8], strides = [1, 1]} : vector<16x32xf32> to vector<8x8xf32>
    %304 = tpu.transpose %302, [1, 0] : vector<8x8xf32> -> vector<8x8xf32>
    %cst_116 = arith.constant dense<0.000000e+00> : vector<8x8xf32>
    %305 = tpu.matmul %301, %304, %cst_116 {dimension_numbers = #tpu.dot_dimension_numbers<[1], [0], [0], [1], [0, 0, 1, 1], [], []>} : vector<8x8xf32>, vector<8x8xf32>, vector<8x8xf32> -> vector<8x8xf32>
    %cst_117 = arith.constant 0.353553385 : f32
    %306 = vector.broadcast %cst_117 : f32 to vector<8x8xf32>
    %307 = arith.mulf %305, %306 : vector<8x8xf32>
    %cst_118 = arith.constant dense<0xFF800000> : vector<8xf32>
    %308 = vector.multi_reduction <maximumf>, %307, %cst_118 [1] : vector<8x8xf32> to vector<8xf32>
    %309 = vector.shape_cast %308 : vector<8xf32> to vector<8x1xf32>
    %310 = vector.broadcast %309 : vector<8x1xf32> to vector<8x8xf32>
    %311 = arith.subf %307, %310 : vector<8x8xf32>
    %312 = math.exp %311 : vector<8x8xf32>
    %cst_119 = arith.constant dense<0.000000e+00> : vector<8xf32>
    %313 = vector.multi_reduction <add>, %312, %cst_119 [1] : vector<8x8xf32> to vector<8xf32>
    %314 = vector.shape_cast %313 : vector<8xf32> to vector<8x1xf32>
    %315 = tpu.reciprocal %314 {approx = true} : vector<8x1xf32> -> vector<8x1xf32>
    %316 = vector.broadcast %315 : vector<8x1xf32> to vector<8x8xf32>
    %317 = arith.mulf %312, %316 : vector<8x8xf32>
    %cst_120 = arith.constant dense<0.000000e+00> : vector<8x8xf32>
    %318 = tpu.matmul %317, %303, %cst_120 {dimension_numbers = #tpu.dot_dimension_numbers<[1], [0], [0], [1], [0, 0, 1, 1], [], []>} : vector<8x8xf32>, vector<8x8xf32>, vector<8x8xf32> -> vector<8x8xf32>
    %319 = tpu.concatenate %264, %282, %300, %318 in 1 : vector<8x8xf32>, vector<8x8xf32>, vector<8x8xf32>, vector<8x8xf32> -> vector<8x32xf32>
    %320 = vector.extract_strided_slice %244 {offsets = [8, 0], sizes = [8, 8], strides = [1, 1]} : vector<16x32xf32> to vector<8x8xf32>
    %321 = vector.extract_strided_slice %245 {offsets = [8, 0], sizes = [8, 8], strides = [1, 1]} : vector<16x32xf32> to vector<8x8xf32>
    %322 = vector.extract_strided_slice %246 {offsets = [8, 0], sizes = [8, 8], strides = [1, 1]} : vector<16x32xf32> to vector<8x8xf32>
    %323 = tpu.transpose %321, [1, 0] : vector<8x8xf32> -> vector<8x8xf32>
    %cst_121 = arith.constant dense<0.000000e+00> : vector<8x8xf32>
    %324 = tpu.matmul %320, %323, %cst_121 {dimension_numbers = #tpu.dot_dimension_numbers<[1], [0], [0], [1], [0, 0, 1, 1], [], []>} : vector<8x8xf32>, vector<8x8xf32>, vector<8x8xf32> -> vector<8x8xf32>
    %cst_122 = arith.constant 0.353553385 : f32
    %325 = vector.broadcast %cst_122 : f32 to vector<8x8xf32>
    %326 = arith.mulf %324, %325 : vector<8x8xf32>
    %cst_123 = arith.constant dense<0xFF800000> : vector<8xf32>
    %327 = vector.multi_reduction <maximumf>, %326, %cst_123 [1] : vector<8x8xf32> to vector<8xf32>
    %328 = vector.shape_cast %327 : vector<8xf32> to vector<8x1xf32>
    %329 = vector.broadcast %328 : vector<8x1xf32> to vector<8x8xf32>
    %330 = arith.subf %326, %329 : vector<8x8xf32>
    %331 = math.exp %330 : vector<8x8xf32>
    %cst_124 = arith.constant dense<0.000000e+00> : vector<8xf32>
    %332 = vector.multi_reduction <add>, %331, %cst_124 [1] : vector<8x8xf32> to vector<8xf32>
    %333 = vector.shape_cast %332 : vector<8xf32> to vector<8x1xf32>
    %334 = tpu.reciprocal %333 {approx = true} : vector<8x1xf32> -> vector<8x1xf32>
    %335 = vector.broadcast %334 : vector<8x1xf32> to vector<8x8xf32>
    %336 = arith.mulf %331, %335 : vector<8x8xf32>
    %cst_125 = arith.constant dense<0.000000e+00> : vector<8x8xf32>
    %337 = tpu.matmul %336, %322, %cst_125 {dimension_numbers = #tpu.dot_dimension_numbers<[1], [0], [0], [1], [0, 0, 1, 1], [], []>} : vector<8x8xf32>, vector<8x8xf32>, vector<8x8xf32> -> vector<8x8xf32>
    %338 = vector.extract_strided_slice %244 {offsets = [8, 8], sizes = [8, 8], strides = [1, 1]} : vector<16x32xf32> to vector<8x8xf32>
    %339 = vector.extract_strided_slice %245 {offsets = [8, 8], sizes = [8, 8], strides = [1, 1]} : vector<16x32xf32> to vector<8x8xf32>
    %340 = vector.extract_strided_slice %246 {offsets = [8, 8], sizes = [8, 8], strides = [1, 1]} : vector<16x32xf32> to vector<8x8xf32>
    %341 = tpu.transpose %339, [1, 0] : vector<8x8xf32> -> vector<8x8xf32>
    %cst_126 = arith.constant dense<0.000000e+00> : vector<8x8xf32>
    %342 = tpu.matmul %338, %341, %cst_126 {dimension_numbers = #tpu.dot_dimension_numbers<[1], [0], [0], [1], [0, 0, 1, 1], [], []>} : vector<8x8xf32>, vector<8x8xf32>, vector<8x8xf32> -> vector<8x8xf32>
    %cst_127 = arith.constant 0.353553385 : f32
    %343 = vector.broadcast %cst_127 : f32 to vector<8x8xf32>
    %344 = arith.mulf %342, %343 : vector<8x8xf32>
    %cst_128 = arith.constant dense<0xFF800000> : vector<8xf32>
    %345 = vector.multi_reduction <maximumf>, %344, %cst_128 [1] : vector<8x8xf32> to vector<8xf32>
    %346 = vector.shape_cast %345 : vector<8xf32> to vector<8x1xf32>
    %347 = vector.broadcast %346 : vector<8x1xf32> to vector<8x8xf32>
    %348 = arith.subf %344, %347 : vector<8x8xf32>
    %349 = math.exp %348 : vector<8x8xf32>
    %cst_129 = arith.constant dense<0.000000e+00> : vector<8xf32>
    %350 = vector.multi_reduction <add>, %349, %cst_129 [1] : vector<8x8xf32> to vector<8xf32>
    %351 = vector.shape_cast %350 : vector<8xf32> to vector<8x1xf32>
    %352 = tpu.reciprocal %351 {approx = true} : vector<8x1xf32> -> vector<8x1xf32>
    %353 = vector.broadcast %352 : vector<8x1xf32> to vector<8x8xf32>
    %354 = arith.mulf %349, %353 : vector<8x8xf32>
    %cst_130 = arith.constant dense<0.000000e+00> : vector<8x8xf32>
    %355 = tpu.matmul %354, %340, %cst_130 {dimension_numbers = #tpu.dot_dimension_numbers<[1], [0], [0], [1], [0, 0, 1, 1], [], []>} : vector<8x8xf32>, vector<8x8xf32>, vector<8x8xf32> -> vector<8x8xf32>
    %356 = vector.extract_strided_slice %244 {offsets = [8, 16], sizes = [8, 8], strides = [1, 1]} : vector<16x32xf32> to vector<8x8xf32>
    %357 = vector.extract_strided_slice %245 {offsets = [8, 16], sizes = [8, 8], strides = [1, 1]} : vector<16x32xf32> to vector<8x8xf32>
    %358 = vector.extract_strided_slice %246 {offsets = [8, 16], sizes = [8, 8], strides = [1, 1]} : vector<16x32xf32> to vector<8x8xf32>
    %359 = tpu.transpose %357, [1, 0] : vector<8x8xf32> -> vector<8x8xf32>
    %cst_131 = arith.constant dense<0.000000e+00> : vector<8x8xf32>
    %360 = tpu.matmul %356, %359, %cst_131 {dimension_numbers = #tpu.dot_dimension_numbers<[1], [0], [0], [1], [0, 0, 1, 1], [], []>} : vector<8x8xf32>, vector<8x8xf32>, vector<8x8xf32> -> vector<8x8xf32>
    %cst_132 = arith.constant 0.353553385 : f32
    %361 = vector.broadcast %cst_132 : f32 to vector<8x8xf32>
    %362 = arith.mulf %360, %361 : vector<8x8xf32>
    %cst_133 = arith.constant dense<0xFF800000> : vector<8xf32>
    %363 = vector.multi_reduction <maximumf>, %362, %cst_133 [1] : vector<8x8xf32> to vector<8xf32>
    %364 = vector.shape_cast %363 : vector<8xf32> to vector<8x1xf32>
    %365 = vector.broadcast %364 : vector<8x1xf32> to vector<8x8xf32>
    %366 = arith.subf %362, %365 : vector<8x8xf32>
    %367 = math.exp %366 : vector<8x8xf32>
    %cst_134 = arith.constant dense<0.000000e+00> : vector<8xf32>
    %368 = vector.multi_reduction <add>, %367, %cst_134 [1] : vector<8x8xf32> to vector<8xf32>
    %369 = vector.shape_cast %368 : vector<8xf32> to vector<8x1xf32>
    %370 = tpu.reciprocal %369 {approx = true} : vector<8x1xf32> -> vector<8x1xf32>
    %371 = vector.broadcast %370 : vector<8x1xf32> to vector<8x8xf32>
    %372 = arith.mulf %367, %371 : vector<8x8xf32>
    %cst_135 = arith.constant dense<0.000000e+00> : vector<8x8xf32>
    %373 = tpu.matmul %372, %358, %cst_135 {dimension_numbers = #tpu.dot_dimension_numbers<[1], [0], [0], [1], [0, 0, 1, 1], [], []>} : vector<8x8xf32>, vector<8x8xf32>, vector<8x8xf32> -> vector<8x8xf32>
    %374 = vector.extract_strided_slice %244 {offsets = [8, 24], sizes = [8, 8], strides = [1, 1]} : vector<16x32xf32> to vector<8x8xf32>
    %375 = vector.extract_strided_slice %245 {offsets = [8, 24], sizes = [8, 8], strides = [1, 1]} : vector<16x32xf32> to vector<8x8xf32>
    %376 = vector.extract_strided_slice %246 {offsets = [8, 24], sizes = [8, 8], strides = [1, 1]} : vector<16x32xf32> to vector<8x8xf32>
    %377 = tpu.transpose %375, [1, 0] : vector<8x8xf32> -> vector<8x8xf32>
    %cst_136 = arith.constant dense<0.000000e+00> : vector<8x8xf32>
    %378 = tpu.matmul %374, %377, %cst_136 {dimension_numbers = #tpu.dot_dimension_numbers<[1], [0], [0], [1], [0, 0, 1, 1], [], []>} : vector<8x8xf32>, vector<8x8xf32>, vector<8x8xf32> -> vector<8x8xf32>
    %cst_137 = arith.constant 0.353553385 : f32
    %379 = vector.broadcast %cst_137 : f32 to vector<8x8xf32>
    %380 = arith.mulf %378, %379 : vector<8x8xf32>
    %cst_138 = arith.constant dense<0xFF800000> : vector<8xf32>
    %381 = vector.multi_reduction <maximumf>, %380, %cst_138 [1] : vector<8x8xf32> to vector<8xf32>
    %382 = vector.shape_cast %381 : vector<8xf32> to vector<8x1xf32>
    %383 = vector.broadcast %382 : vector<8x1xf32> to vector<8x8xf32>
    %384 = arith.subf %380, %383 : vector<8x8xf32>
    %385 = math.exp %384 : vector<8x8xf32>
    %cst_139 = arith.constant dense<0.000000e+00> : vector<8xf32>
    %386 = vector.multi_reduction <add>, %385, %cst_139 [1] : vector<8x8xf32> to vector<8xf32>
    %387 = vector.shape_cast %386 : vector<8xf32> to vector<8x1xf32>
    %388 = tpu.reciprocal %387 {approx = true} : vector<8x1xf32> -> vector<8x1xf32>
    %389 = vector.broadcast %388 : vector<8x1xf32> to vector<8x8xf32>
    %390 = arith.mulf %385, %389 : vector<8x8xf32>
    %cst_140 = arith.constant dense<0.000000e+00> : vector<8x8xf32>
    %391 = tpu.matmul %390, %376, %cst_140 {dimension_numbers = #tpu.dot_dimension_numbers<[1], [0], [0], [1], [0, 0, 1, 1], [], []>} : vector<8x8xf32>, vector<8x8xf32>, vector<8x8xf32> -> vector<8x8xf32>
    %392 = tpu.concatenate %337, %355, %373, %391 in 1 : vector<8x8xf32>, vector<8x8xf32>, vector<8x8xf32>, vector<8x8xf32> -> vector<8x32xf32>
    %393 = tpu.concatenate %319, %392 in 0 : vector<8x32xf32>, vector<8x32xf32> -> vector<16x32xf32>
    %c0_141 = arith.constant 0 : index
    %c0_142 = arith.constant 0 : index
    %394 = vector.load %arg22[%c0_141, %c0_142] : memref<32x32xf32, #tpu.memory_space<vmem>>, vector<32x32xf32>
    %cst_143 = arith.constant dense<0.000000e+00> : vector<16x32xf32>
    %395 = tpu.matmul %393, %394, %cst_143 {dimension_numbers = #tpu.dot_dimension_numbers<[1], [0], [0], [1], [0, 0, 1, 1], [], []>} : vector<16x32xf32>, vector<32x32xf32>, vector<16x32xf32> -> vector<16x32xf32>
    %c0_144 = arith.constant 0 : index
    %c0_145 = arith.constant 0 : index
    %396 = vector.load %arg23[%c0_144, %c0_145] : memref<1x32xf32, #tpu.memory_space<vmem>>, vector<1x32xf32>
    %397 = vector.broadcast %396 : vector<1x32xf32> to vector<16x32xf32>
    %398 = arith.addf %395, %397 : vector<16x32xf32>
    %399 = arith.addf %238, %398 : vector<16x32xf32>
    %c0_146 = arith.constant 0 : index
    %c0_147 = arith.constant 0 : index
    %400 = vector.load %arg24[%c0_146, %c0_147] : memref<1x32xf32, #tpu.memory_space<vmem>>, vector<1x32xf32>
    %c0_148 = arith.constant 0 : index
    %c0_149 = arith.constant 0 : index
    %401 = vector.load %arg25[%c0_148, %c0_149] : memref<1x32xf32, #tpu.memory_space<vmem>>, vector<1x32xf32>
    %cst_150 = arith.constant dense<0.000000e+00> : vector<16xf32>
    %402 = vector.multi_reduction <add>, %399, %cst_150 [1] : vector<16x32xf32> to vector<16xf32>
    %403 = vector.shape_cast %402 : vector<16xf32> to vector<16x1xf32>
    %cst_151 = arith.constant 3.200000e+01 : f32
    %404 = vector.broadcast %cst_151 : f32 to vector<16x1xf32>
    %405 = arith.divf %403, %404 : vector<16x1xf32>
    %406 = vector.broadcast %405 : vector<16x1xf32> to vector<16x32xf32>
    %407 = arith.subf %399, %406 : vector<16x32xf32>
    %408 = arith.mulf %407, %407 : vector<16x32xf32>
    %cst_152 = arith.constant dense<0.000000e+00> : vector<16xf32>
    %409 = vector.multi_reduction <add>, %408, %cst_152 [1] : vector<16x32xf32> to vector<16xf32>
    %410 = vector.shape_cast %409 : vector<16xf32> to vector<16x1xf32>
    %cst_153 = arith.constant 3.200000e+01 : f32
    %411 = vector.broadcast %cst_153 : f32 to vector<16x1xf32>
    %412 = arith.divf %410, %411 : vector<16x1xf32>
    %413 = vector.broadcast %405 : vector<16x1xf32> to vector<16x32xf32>
    %414 = arith.subf %399, %413 : vector<16x32xf32>
    %cst_154 = arith.constant 9.99999974E-6 : f32
    %415 = vector.broadcast %cst_154 : f32 to vector<16x1xf32>
    %416 = arith.addf %412, %415 : vector<16x1xf32>
    %417 = math.rsqrt %416 : vector<16x1xf32>
    %418 = vector.broadcast %417 : vector<16x1xf32> to vector<16x32xf32>
    %419 = arith.mulf %414, %418 : vector<16x32xf32>
    %420 = vector.broadcast %400 : vector<1x32xf32> to vector<16x32xf32>
    %421 = arith.mulf %419, %420 : vector<16x32xf32>
    %422 = vector.broadcast %401 : vector<1x32xf32> to vector<16x32xf32>
    %423 = arith.addf %421, %422 : vector<16x32xf32>
    %c0_155 = arith.constant 0 : index
    %c0_156 = arith.constant 0 : index
    %424 = vector.load %arg26[%c0_155, %c0_156] : memref<32x2048xf32, #tpu.memory_space<vmem>>, vector<32x2048xf32>
    %cst_157 = arith.constant dense<0.000000e+00> : vector<16x2048xf32>
    %425 = tpu.matmul %423, %424, %cst_157 {dimension_numbers = #tpu.dot_dimension_numbers<[1], [0], [0], [1], [0, 0, 1, 1], [], []>} : vector<16x32xf32>, vector<32x2048xf32>, vector<16x2048xf32> -> vector<16x2048xf32>
    %c0_158 = arith.constant 0 : index
    %c0_159 = arith.constant 0 : index
    %426 = vector.load %arg27[%c0_158, %c0_159] : memref<1x2048xf32, #tpu.memory_space<vmem>>, vector<1x2048xf32>
    %427 = vector.broadcast %426 : vector<1x2048xf32> to vector<16x2048xf32>
    %428 = arith.addf %425, %427 : vector<16x2048xf32>
    %cst_160 = arith.constant 0.000000e+00 : f32
    %429 = vector.broadcast %cst_160 : f32 to vector<16x2048xf32>
    %430 = arith.maximumf %428, %429 : vector<16x2048xf32>
    %c0_161 = arith.constant 0 : index
    %c0_162 = arith.constant 0 : index
    %431 = vector.load %arg28[%c0_161, %c0_162] : memref<2048x32xf32, #tpu.memory_space<vmem>>, vector<2048x32xf32>
    %cst_163 = arith.constant dense<0.000000e+00> : vector<16x32xf32>
    %432 = tpu.matmul %430, %431, %cst_163 {dimension_numbers = #tpu.dot_dimension_numbers<[1], [0], [0], [1], [0, 0, 1, 1], [], []>} : vector<16x2048xf32>, vector<2048x32xf32>, vector<16x32xf32> -> vector<16x32xf32>
    %c0_164 = arith.constant 0 : index
    %c0_165 = arith.constant 0 : index
    %433 = vector.load %arg29[%c0_164, %c0_165] : memref<1x32xf32, #tpu.memory_space<vmem>>, vector<1x32xf32>
    %434 = vector.broadcast %433 : vector<1x32xf32> to vector<16x32xf32>
    %435 = arith.addf %432, %434 : vector<16x32xf32>
    %436 = arith.addf %423, %435 : vector<16x32xf32>
    %c0_166 = arith.constant 0 : index
    %c0_167 = arith.constant 0 : index
    %437 = vector.load %arg30[%c0_166, %c0_167] : memref<1x32xf32, #tpu.memory_space<vmem>>, vector<1x32xf32>
    %c0_168 = arith.constant 0 : index
    %c0_169 = arith.constant 0 : index
    %438 = vector.load %arg31[%c0_168, %c0_169] : memref<1x32xf32, #tpu.memory_space<vmem>>, vector<1x32xf32>
    %cst_170 = arith.constant dense<0.000000e+00> : vector<16xf32>
    %439 = vector.multi_reduction <add>, %436, %cst_170 [1] : vector<16x32xf32> to vector<16xf32>
    %440 = vector.shape_cast %439 : vector<16xf32> to vector<16x1xf32>
    %cst_171 = arith.constant 3.200000e+01 : f32
    %441 = vector.broadcast %cst_171 : f32 to vector<16x1xf32>
    %442 = arith.divf %440, %441 : vector<16x1xf32>
    %443 = vector.broadcast %442 : vector<16x1xf32> to vector<16x32xf32>
    %444 = arith.subf %436, %443 : vector<16x32xf32>
    %445 = arith.mulf %444, %444 : vector<16x32xf32>
    %cst_172 = arith.constant dense<0.000000e+00> : vector<16xf32>
    %446 = vector.multi_reduction <add>, %445, %cst_172 [1] : vector<16x32xf32> to vector<16xf32>
    %447 = vector.shape_cast %446 : vector<16xf32> to vector<16x1xf32>
    %cst_173 = arith.constant 3.200000e+01 : f32
    %448 = vector.broadcast %cst_173 : f32 to vector<16x1xf32>
    %449 = arith.divf %447, %448 : vector<16x1xf32>
    %450 = vector.broadcast %442 : vector<16x1xf32> to vector<16x32xf32>
    %451 = arith.subf %436, %450 : vector<16x32xf32>
    %cst_174 = arith.constant 9.99999974E-6 : f32
    %452 = vector.broadcast %cst_174 : f32 to vector<16x1xf32>
    %453 = arith.addf %449, %452 : vector<16x1xf32>
    %454 = math.rsqrt %453 : vector<16x1xf32>
    %455 = vector.broadcast %454 : vector<16x1xf32> to vector<16x32xf32>
    %456 = arith.mulf %451, %455 : vector<16x32xf32>
    %457 = vector.broadcast %437 : vector<1x32xf32> to vector<16x32xf32>
    %458 = arith.mulf %456, %457 : vector<16x32xf32>
    %459 = vector.broadcast %438 : vector<1x32xf32> to vector<16x32xf32>
    %460 = arith.addf %458, %459 : vector<16x32xf32>
    %c0_175 = arith.constant 0 : index
    %c0_176 = arith.constant 0 : index
    %461 = vector.load %arg32[%c0_175, %c0_176] : memref<32x6xf32, #tpu.memory_space<vmem>>, vector<32x6xf32>
    %cst_177 = arith.constant dense<0.000000e+00> : vector<16x6xf32>
    %462 = tpu.matmul %460, %461, %cst_177 {dimension_numbers = #tpu.dot_dimension_numbers<[1], [0], [0], [1], [0, 0, 1, 1], [], []>} : vector<16x32xf32>, vector<32x6xf32>, vector<16x6xf32> -> vector<16x6xf32>
    %c0_178 = arith.constant 0 : index
    %c0_179 = arith.constant 0 : index
    %463 = vector.load %arg33[%c0_178, %c0_179] : memref<1x6xf32, #tpu.memory_space<vmem>>, vector<1x6xf32>
    %464 = vector.broadcast %463 : vector<1x6xf32> to vector<16x6xf32>
    %465 = arith.addf %462, %464 : vector<16x6xf32>
    %c0_180 = arith.constant 0 : index
    %c0_181 = arith.constant 0 : index
    %466 = vector.load %arg34[%c0_180, %c0_181] : memref<16x6xf32, #tpu.memory_space<vmem>>, vector<16x6xf32>
    tpu.vector_store %arg34[%c0_180, %c0_181], %465 {strides = array<i32>} : memref<16x6xf32, #tpu.memory_space<vmem>>, vector<16x6xf32>,
    return
  }
}

</mosaic_0001>

<bundles_post_ra>
// kernel: tpu_custom_call.1
= control target key start
LH: loop header
LB: loop body
LE: loop exit
PB: predicated region body
PF: predicated region fallthrough
CT: control target
= control target key end

     0   :  { %s4407_s3 = smov 2   ;;  %s4408_s7 = smov 1   ;;  %vm157_vm0 = vcmask 1043456   ;;  %vm150_vm1 = vcmask 97280   ;;  %vm225_vm2 = vcmask 293888   ;;  %vm276_vm3 = vcmask 261120   ;;  %s5826_s0 = inlined_call_operand.smem [shape: u32[35], index: -1, kind: input, shape index: {}] }
   0x1   :  { %s4084_s6 = sld [smem:[%s5826_s0 + %s4407_s3]]   ;;  %s4409_s11 = smov 5   ;;  %vm309_vm4 = vcmask 64512   ;;  %vm583_vm5 = vcmask 130048   ;;  %vm585_vm6 = vcmask 195584  }
   0x2   :  { %s4083_s10 = sld [smem:[%s5826_s0 + %s4408_s7]]   ;;  %s4410_s15 = smov 3  }
   0x3   :  { %s4087_s14 = sld [smem:[%s5826_s0 + %s4409_s11]]   ;;  %s4411_s19 = smov 4  }
   0x4   :  { %s4470_s18 = sld [smem:[%s5826_s0 + %s4410_s15]]   ;;  %s4412_s26 = smov 6  }
   0x5   :  { %s4086_s22 = sld [smem:[%s5826_s0 + %s4411_s19]]   ;;  %s4413_s30 = smov 9  }
   0x6   :  { %s1_s25 = sld [smem:[%s5826_s0]]   ;;  %s4414_s4 = smov 8  }
   0x7   :  { %v145_v0 = vld [vmem:[%s4084_s6 + $0x8] sm:$0xf]  ;;  %v144_v1 = vld [vmem:[%s4084_s6] sm:$0xff]  ;;  %s4088_s29 = sld [smem:[%s5826_s0 + %s4412_s26]]   ;;  %s4415_s8 = smov 7  }
   0x8   :  { %4248 = vmatpush.msk.msra.mxu3 %vm157_vm0, %v145_v0  ;;  %v143_v2 = vld [vmem:[%s4083_s10 + $0x8] sm:$0xff]  ;;  %4117 = vmatpush.msk.msra.mxu0 %vm157_vm0, %v145_v0  ;;  %v142_v3 = vld [vmem:[%s4083_s10] sm:$0xff]  ;;  %s4091_s3 = sld [smem:[%s5826_s0 + %s4413_s30]]   ;;  %s4416_s12 = smov 104  }
   0x9   :  { %v192_v4 = vld [vmem:[%s4087_s14 + $0x8] sm:$0xf]  ;;  %v191_v5 = vld [vmem:[%s4087_s14] sm:$0xff]  ;;  %s4090_s7 = sld [smem:[%s5826_s0 + %s4414_s4]]   ;;  %s4417_s13 = smov 72  }
   0xa   :  { %4249 = vmatpush.msra.mxu3 %v144_v1  ;;  %176 = vmatpush.msra.mxu0 %v144_v1  ;;  %v4308_v11 = vld [vmem:[%s4470_s18] ss:$0 sm:$0xff]  ;;  %s4089_s11 = sld [smem:[%s5826_s0 + %s4415_s8]]   ;;  %s4418_s14 = smov 88  }
   0xb   :  { %4119 = vmatmul.msk.f32.vlgmr.msra.gmra.mxu3 %vm150_vm1, %v143_v2  ;;  %4118 = vmatmul.msk.f32.vlgmr.msra.gmra.mxu0 %vm150_vm1, %v142_v3  ;;  %v190_v6 = vld [vmem:[%s4086_s22 + $0x20] sm:$0xf]  ;;  %v189_v7 = vld [vmem:[%s4086_s22 + $0x18] sm:$0xff]  ;;  %v188_v8 = vld [vmem:[%s4086_s22 + $0x10] sm:$0xff]  ;;  %s4419_s15 = smov 96   ;;  %s4420_s16 = smov 120  }
   0xc   :  { %4250 = vmatpush.msk.msra.mxu2 %vm157_vm0, %v192_v4  ;;  %4120 = vmatpush.msk.msra.mxu1 %vm157_vm0, %v192_v4  ;;  %v187_v9 = vld [vmem:[%s4086_s22 + $0x8] sm:$0xff]  ;;  %v186_v10 = vld [vmem:[%s4086_s22] sm:$0xff]  ;;  %s4421_s17 = smov 112   ;;  %s4422_s18 = smov 80  }
   0xd   :  { %v184_v16 = vld [vmem:[%s1_s25] sm:$0xff]  ;;  %v185_v17 = vld [vmem:[%s1_s25 + $0x8] sm:$0xff]  ;;  %s4423_s19 = smov 64   ;;  %s4424_s20 = smov 56  }
   0xe   :  { %4251 = vmatpush.msra.mxu2 %v191_v5  ;;  %217 = vmatpush.msra.mxu1 %v191_v5  ;;  %v4309_v24 = vld [vmem:[%s4088_s29] ss:$0 sm:$0xff]  ;;  %s4425_s21 = smov 48   ;;  %s4426_s22 = smov 40  }
   0xf   :  { %v271_v18 = vld [vmem:[%s4090_s7 + $0x18] sm:$0xff]  ;;  %v270_v19 = vld [vmem:[%s4090_s7 + $0x10] sm:$0xff]  ;;  %v269_v20 = vld [vmem:[%s4090_s7 + $0x8] sm:$0xff]  ;;  %s4427_s23 = smov 24   ;;  %s4428_s27 = smov 16  }
  0x10   :  { %4123 = vmatpush.msk.msrb.mxu2 %vm157_vm0, %v190_v6  ;;  %295 = vmatpush.msrb.mxu3 %v271_v18  ;;  %v268_v21 = vld [vmem:[%s4090_s7] sm:$0xff]  ;;  %v265_v32 = vld [vmem:[%s4089_s11 + $0x8] sm:$0xff]  ;;  %s4614_s26 = sld [smem:[%s5826_s0 + %s4427_s23]]   ;;  %s4429_s28 = smov 11  }
  0x11   :  { %v264_v27 = vld [vmem:[%s4089_s11] sm:$0xff]  ;;  %s4093_s1 = sld [smem:[%s5826_s0 + %s4429_s28]]   ;;  %s4430_s2 = smov 10  }
  0x12   :  { %247 = vmatpush.msrb.mxu2 %v189_v7  ;;  %296 = vmatpush.msrb.mxu3 %v270_v19  ;;  %v4310_v35 = vld [vmem:[%s4091_s3] ss:$0 sm:$0xff]  ;;  %s4092_s6 = sld [smem:[%s5826_s0 + %s4430_s2]]   ;;  %s4431_s7 = smov 12  }
  0x13   :  { %s4645_s10 = sld [smem:[%s5826_s0 + %s4431_s7]]   ;;  %s4432_s11 = smov 13  }
  0x14   :  { %248 = vmatpush.msrb.mxu2 %v188_v8  ;;  %297 = vmatpush.msrb.mxu3 %v269_v20  ;;  %s4651_s28 = sld [smem:[%s5826_s0 + %s4432_s11]]   ;;  %s4434_s29 = smov 14  }
  0x15   :  { %s4667_s2 = sld [smem:[%s5826_s0 + %s4434_s29]]   ;;  %s4435_s7 = smov 15  }
  0x16   :  { %249 = vmatpush.msrb.mxu2 %v187_v9  ;;  %298 = vmatpush.msrb.mxu3 %v268_v21  ;;  %s4436_s11 = smov 17   ;;  %s4437_s29 = smov 18  }
  0x17   :  { %s4438_s3 = smov 19   ;;  %s4439_s8 = smov 21  }
  0x18   :  { %250 = vmatpush.msrb.mxu2 %v186_v10  ;;  %s4440_s24 = smov 20   ;;  %s4452_s30 = smov 34  }
  0x88   :  { %v178_v12 = vpop.f32.mrf.mxu0 }
  0x89   :  { %v179_v13 = vadd.f32 %v4308_v11, %v178_v12 }
  0x8b   :  { %4121 = vmatmul.msk.f32.vlgmr.msra.gmra.mxu1 %vm150_vm1, %v179_v13 }
  0x8e   :  { %v181_v14 = vpop.f32.mrf.mxu3 }
  0x8f   :  { %v182_v15 = vadd.f32 %v4308_v11, %v181_v14 }
  0x91   :  { %4122 = vmatmul.msk.f32.vlgmr.msra.gmra.mxu2 %vm150_vm1, %v182_v15 }
  0x99   :  { %4124 = vmatmul.msk.f32.vlgmr.msrb.gmra.mxu2 %vm225_vm2, %v184_v16 }
  0xa1   :  { %4125 = vmatmul.msk.f32.gmra.mxu2 %vm225_vm2, %v185_v17 }
 0x108   :  { %v219_v23 = vpop.f32.mrf.mxu1 }
 0x114   :  { %v222_v22 = vpop.f32.mrf.mxu2 }
 0x11c   :  { %v252_v25 = vpop.f32.mrf.mxu2 }
 0x11d   :  { %v253_v26 = vadd.f32 %v252_v25, %v219_v23 }
 0x11f   :  { %v262_v28 = vadd.f32 %v4309_v24, %v253_v26 }
 0x121   :  { %v4501_v29 = vadd.f32 %v264_v27, %v262_v28 }
 0x123   :  { %4126 = vmatmul.msk.f32.vlgmr.msrb.gmra.mxu3 %vm276_vm3, %v4501_v29 }
 0x124   :  { %v255_v30 = vpop.f32.mrf.mxu2 }
 0x125   :  { %v256_v31 = vadd.f32 %v255_v30, %v222_v22 }
 0x127   :  { %v263_v33 = vadd.f32 %v4309_v24, %v256_v31 }
 0x129   :  { %v4505_v34 = vadd.f32 %v265_v32, %v263_v33 }
 0x12b   :  { %4127 = vmatmul.msk.f32.gmra.mxu3 %vm276_vm3, %v4505_v34 }
 0x1a6   :  { %v300_v36 = vpop.f32.mrf.mxu3 }
 0x1a7   :  { %v4509_v37 = vadd.f32 %v4310_v35, %v300_v36 }
 0x1a9   :  { %504 = vrot.lane.b32.xlu2 %v4509_v37, %s4416_s12  ;;  %506 = vrot.lane.b32.xlu1 %v4509_v37, %s4417_s13 }
 0x1aa   :  { %374 = vrot.lane.b32.xlu0 %v4509_v37, %s4418_s14 }
 0x1ae   :  { %v303_v38 = vpop.f32.mrf.mxu3 }
 0x1af   :  { %v4517_v39 = vadd.f32 %v4310_v35, %v303_v38 }
 0x1b1   :  { %654 = vrot.lane.b32.xlu2 %v4517_v39, %s4418_s14  ;;  %307 = vrot.lane.b32.xlu1 %v4509_v37, %s4419_s15  ;;  %v4298_v9 = vpack.i.bf16 %v4517_v39, %v4509_v37 }
 0x1b2   :  { %372 = vrot.lane.b32.xlu0 %v4509_v37, %s4420_s16 }
 0x1b9   :  { %438 = vrot.lane.b32.xlu2 %v4509_v37, %s4421_s17  ;;  %652 = vrot.lane.b32.xlu1 %v4517_v39, %s4420_s16 }
 0x1ba   :  { %440 = vrot.lane.b32.xlu0 %v4509_v37, %s4422_s18 }
 0x1c1   :  { %784 = vrot.lane.b32.xlu2 %v4517_v39, %s4416_s12  ;;  %588 = vrot.lane.b32.xlu1 %v4517_v39, %s4419_s15 }
 0x1c2   :  { %786 = vrot.lane.b32.xlu0 %v4517_v39, %s4417_s13 }
 0x1c9   :  { %718 = vrot.lane.b32.xlu1 %v4517_v39, %s4421_s17 }
 0x1ca   :  { %720 = vrot.lane.b32.xlu0 %v4517_v39, %s4422_s18 }
 0x203   :  { %v505_v40 = vpop.permute.xlu2 %504 }
 0x20b   :  { %v655_v45 = vpop.permute.xlu2 %654 }
 0x213   :  { %v439_v48 = vpop.permute.xlu2 %438 }
 0x21b   :  { %v507_v41 = vpop.permute.xlu1 %506  ;;  %v785_v51 = vpop.permute.xlu2 %784 }
 0x21c   :  { %v375_v42 = vpop.permute.xlu0 %374 }
 0x21d   :  { %4131 = vmatpush.xpose.msk.msra.mxu3 %vm309_vm4, %v375_v42 }
 0x221   :  { %4137 = vmatpush.xpose.msk.msrb.mxu3 %vm309_vm4, %v507_v41 }
 0x223   :  { %v308_v43 = vpop.permute.xlu1 %307 }
 0x224   :  { %v373_v44 = vpop.permute.xlu0 %372  ;;  %4128 = vmatpush.xpose.msk.msrb.mxu0 %vm309_vm4, %v308_v43 }
 0x225   :  { %4132 = vmatmul.msk.f32.vlgmr.msra.gmra.mxu3 %vm309_vm4, %v373_v44 }
 0x226   :  { %4143 = vmatpush.xpose.msk.msra.mxu3 %vm309_vm4, %v655_v45 }
 0x227   :  { %4129 = vmatmul.msk.f32.vlgmr.msrb.gmra.mxu0 %vm309_vm4, %v4509_v37 }
 0x22b   :  { %v653_v46 = vpop.permute.xlu1 %652 }
 0x22c   :  { %v441_v47 = vpop.permute.xlu0 %440 }
 0x22d   :  { %4134 = vmatpush.xpose.msk.msra.mxu0 %vm309_vm4, %v441_v47  ;;  %4138 = vmatmul.msk.f32.vlgmr.msrb.gmra.mxu3 %vm309_vm4, %v505_v40 }
 0x230   :  { %4135 = vmatmul.msk.f32.vlgmr.msra.gmra.mxu0 %vm309_vm4, %v439_v48 }
 0x233   :  { %v589_v49 = vpop.permute.xlu1 %588 }
 0x234   :  { %v787_v50 = vpop.permute.xlu0 %786  ;;  %4140 = vmatpush.xpose.msk.msrb.mxu0 %vm309_vm4, %v589_v49 }
 0x235   :  { %4144 = vmatmul.msk.f32.vlgmr.msra.gmra.mxu3 %vm309_vm4, %v653_v46 }
 0x236   :  { %4149 = vmatpush.xpose.msk.msrb.mxu3 %vm309_vm4, %v787_v50 }
 0x238   :  { %4141 = vmatmul.msk.f32.vlgmr.msrb.gmra.mxu0 %vm309_vm4, %v4517_v39 }
 0x23b   :  { %v719_v53 = vpop.permute.xlu1 %718 }
 0x23c   :  { %v721_v52 = vpop.permute.xlu0 %720 }
 0x23d   :  { %4146 = vmatpush.xpose.msk.msra.mxu0 %vm309_vm4, %v721_v52  ;;  %4150 = vmatmul.msk.f32.vlgmr.msrb.gmra.mxu3 %vm309_vm4, %v785_v51 }
 0x240   :  { %4147 = vmatmul.msk.f32.vlgmr.msra.gmra.mxu0 %vm309_vm4, %v719_v53 }
 0x2a4   :  { %v331_v54 = vpop.f32.mrf.mxu0 }
 0x2a5   :  { %v334_v55 = vmul.f32 0.35355338, %v331_v54 }
 0x2a7   :  { %v335_v56 = vsel %vm309_vm4, %v334_v55, -inf }
 0x2a8   :  { %v397_v57 = vpop.f32.mrf.mxu3  ;;  %336 = vmax.xlane.f32.xlu0 %v335_v56 }
 0x2a9   :  { %v400_v58 = vmul.f32 0.35355338, %v397_v57 }
 0x2ab   :  { %v401_v59 = vsel %vm309_vm4, %v400_v58, -inf }
 0x2ac   :  { %402 = vmax.xlane.f32.xlu2 %v401_v59 }
 0x2ad   :  { %v463_v60 = vpop.f32.mrf.mxu0 }
 0x2ae   :  { %v466_v61 = vmul.f32 0.35355338, %v463_v60 }
 0x2b0   :  { %v529_v62 = vpop.f32.mrf.mxu3  ;;  %v467_v1 = vsel %vm309_vm4, %v466_v61, -inf }
 0x2b1   :  { %v532_v63 = vmul.f32 0.35355338, %v529_v62 }
 0x2b3   :  { %v533_v0 = vsel %vm309_vm4, %v532_v63, -inf }
 0x2b4   :  { %534 = vmax.xlane.f32.xlu1 %v533_v0  ;;  %468 = vmax.xlane.f32.xlu2 %v467_v1 }
 0x2b5   :  { %v611_v2 = vpop.f32.mrf.mxu0 }
 0x2b6   :  { %v614_v3 = vmul.f32 0.35355338, %v611_v2 }
 0x2b8   :  { %v677_v4 = vpop.f32.mrf.mxu3  ;;  %v615_v5 = vsel %vm309_vm4, %v614_v3, -inf }
 0x2b9   :  { %616 = vmax.xlane.f32.xlu0 %v615_v5  ;;  %v680_v10 = vmul.f32 0.35355338, %v677_v4 }
 0x2bb   :  { %v681_v11 = vsel %vm309_vm4, %v680_v10, -inf }
 0x2bd   :  { %v743_v12 = vpop.f32.mrf.mxu0 }
 0x2be   :  { %v4571_v13 = vmul.f32 0.35355338, %v743_v12 }
 0x2c0   :  { %v809_v6 = vpop.f32.mrf.mxu3  ;;  %v747_v14 = vsel %vm309_vm4, %v4571_v13, -inf }
 0x2c1   :  { %v812_v7 = vmul.f32 0.35355338, %v809_v6 }
 0x2c3   :  { %v813_v8 = vsel %vm309_vm4, %v812_v7, -inf }
 0x2c4   :  { %814 = vmax.xlane.f32.xlu1 %v813_v8 }
 0x2cc   :  { %346 = vrot.lane.b32.xlu2 %v4509_v37, %s4423_s19 }
 0x2cd   :  { %4299 = vrot.lane.b32.xlu0 %v4298_v9, %s4424_s20 }
 0x2f5   :  { %682 = vmax.xlane.f32.xlu2 %v681_v11 }
 0x2fd   :  { %748 = vmax.xlane.f32.xlu2 %v747_v14 }
 0x31b   :  { %v337_v15 = vpop.xlane.xlu0 %336 }
 0x31c   :  { %v338_v16 = vsub.f32 %v334_v55, %v337_v15 }
 0x31e   :  { %v339_v17 = vmul.f32 1.442695, %v338_v16 }
 0x31f   :  { %v403_v18 = vpop.xlane.xlu2 %402 }
 0x320   :  { %4325 = vpow2.f32 %v339_v17  ;;  %v404_v19 = vsub.f32 %v400_v58, %v403_v18 }
 0x322   :  { %v405_v20 = vmul.f32 1.442695, %v404_v19 }
 0x324   :  { %4327 = vpow2.f32 %v405_v20 }
 0x326   :  { %v4326_v21 = vpop.eup %4325 }
 0x327   :  { %v535_v22 = vpop.xlane.xlu1 %534  ;;  %v469_v23 = vpop.xlane.xlu2 %468  ;;  %v341_v24 = vsel %vm309_vm4, %v4326_v21, 0.0 }
 0x328   :  { %v536_v25 = vsub.f32 %v532_v63, %v535_v22  ;;  %v470_v26 = vsub.f32 %v466_v61, %v469_v23  ;;  %342 = vadd.xlane.f32.xlu1 %v341_v24 }
 0x32a   :  { %v4328_v27 = vpop.eup %4327  ;;  %v537_v28 = vmul.f32 1.442695, %v536_v25  ;;  %v471_v30 = vmul.f32 1.442695, %v470_v26 }
 0x32b   :  { %v407_v31 = vsel %vm309_vm4, %v4328_v27, 0.0 }
 0x32c   :  { %4329 = vpow2.f32 %v537_v28  ;;  %408 = vadd.xlane.f32.xlu0 %v407_v31  ;;  %v617_v32 = vpop.xlane.xlu0 %616 }
 0x32d   :  { %4331 = vpow2.f32 %v471_v30  ;;  %v618_v33 = vsub.f32 %v614_v3, %v617_v32 }
 0x32f   :  { %v619_v35 = vmul.f32 1.442695, %v618_v33  ;;  %v347_v36 = vpop.permute.xlu2 %346 }
 0x330   :  { %367 = vmatpush.msrb.mxu1 %v347_v36  ;;  %v868_v36 = vld [vmem:[%s4092_s6 + $0x18] sm:$0xff] }
 0x331   :  { %4333 = vpow2.f32 %v619_v35  ;;  %891 = vmatpush.msrb.mxu0 %v868_v36 }
 0x332   :  { %v4577_v38 = vpop.eup %4329 }
 0x333   :  { %v4332_v40 = vpop.eup %4331  ;;  %v539_v41 = vsel %vm309_vm4, %v4577_v38, 0.0 }
 0x334   :  { %540 = vadd.xlane.f32.xlu2 %v539_v41  ;;  %v473_v42 = vsel %vm309_vm4, %v4332_v40, 0.0  ;;  %v865_v41 = vld [vmem:[%s4092_s6] sm:$0xff] }
 0x335   :  { %474 = vadd.xlane.f32.xlu1 %v473_v42 }
 0x337   :  { %v4334_v43 = vpop.eup %4333  ;;  %v815_v47 = vpop.xlane.xlu1 %814 }
 0x338   :  { %v621_v44 = vsel %vm309_vm4, %v4334_v43, 0.0  ;;  %v816_v48 = vsub.f32 %v812_v7, %v815_v47 }
 0x339   :  { %622 = vadd.xlane.f32.xlu0 %v621_v44 }
 0x33a   :  { %v817_v49 = vmul.f32 1.442695, %v816_v48 }
 0x33c   :  { %4335 = vpow2.f32 %v817_v49 }
 0x33f   :  { %v4583_v45 = vpop.permute.xlu0 %4299 }
 0x340   :  { %v4301_v46 = vunpack.i.l.bf16 %v4583_v45  ;;  %v4302_v17 = vunpack.i.h.bf16 %v4583_v45 }
 0x342   :  { %433 = vmatpush.msra.mxu2 %v4301_v46  ;;  %v4592_v53 = vpop.eup %4335 }
 0x343   :  { %v819_v55 = vsel %vm309_vm4, %v4592_v53, 0.0 }
 0x34c   :  { %478 = vrot.lane.b32.xlu2 %v4509_v37, %s4425_s21 }
 0x34d   :  { %626 = vrot.lane.b32.xlu0 %v4517_v39, %s4423_s19 }
 0x355   :  { %758 = vrot.lane.b32.xlu0 %v4517_v39, %s4425_s21 }
 0x368   :  { %v683_v50 = vpop.xlane.xlu2 %682 }
 0x369   :  { %v684_v51 = vsub.f32 %v680_v10, %v683_v50 }
 0x36b   :  { %v685_v52 = vmul.f32 1.442695, %v684_v51 }
 0x36d   :  { %4337 = vpow2.f32 %v685_v52 }
 0x370   :  { %v749_v58 = vpop.xlane.xlu2 %748 }
 0x371   :  { %v750_v63 = vsub.f32 %v4571_v13, %v749_v58 }
 0x373   :  { %v4338_v54 = vpop.eup %4337 }
 0x374   :  { %v687_v56 = vsel %vm309_vm4, %v4338_v54, 0.0 }
 0x375   :  { %820 = vadd.xlane.f32.xlu2 %v819_v55  ;;  %688 = vadd.xlane.f32.xlu1 %v687_v56 }
 0x38d   :  { %824 = vrot.lane.b32.xlu2 %v4517_v39, %s4426_s22  ;;  %v751_v39 = vmul.f32 1.442695, %v750_v63 }
 0x38e   :  { %544 = vrot.lane.b32.xlu1 %v4509_v37, %s4426_s22 }
 0x39b   :  { %v343_v57 = vpop.xlane.xlu1 %342 }
 0x39c   :  { %4339 = vrcp.f32 %v343_v57 }
 0x39f   :  { %v409_v59 = vpop.xlane.xlu0 %408 }
 0x3a0   :  { %4341 = vrcp.f32 %v409_v59 }
 0x3a2   :  { %v4340_v60 = vpop.eup %4339 }
 0x3a3   :  { %v345_v61 = vmul.f32 %v4340_v60, %v4326_v21 }
 0x3a5   :  { %4130 = vmatmul.msk.f32.vlgmr.msrb.gmra.mxu1 %vm309_vm4, %v345_v61 }
 0x3a6   :  { %v4342_v62 = vpop.eup %4341 }
 0x3a7   :  { %v411_v0 = vmul.f32 %v4342_v62, %v4328_v27  ;;  %v541_v1 = vpop.xlane.xlu2 %540  ;;  %v4433_v62 = vmov 32.0  }
 0x3a8   :  { %v475_v2 = vpop.xlane.xlu1 %474 }
 0x3a9   :  { %4343 = vrcp.f32 %v475_v2  ;;  %4133 = vmatmul.msk.f32.vlgmr.msra.gmra.mxu2 %vm309_vm4, %v411_v0 }
 0x3aa   :  { %4345 = vpow2.f32 %v751_v39 }
 0x3ac   :  { %v623_v5 = vpop.xlane.xlu0 %622 }
 0x3ad   :  { %4347 = vrcp.f32 %v623_v5 }
 0x3ae   :  { %4349 = vrcp.f32 %v541_v1 }
 0x3af   :  { %v4344_v37 = vpop.eup %4343  ;;  %v479_v3 = vpop.permute.xlu2 %478 }
 0x3b0   :  { %v477_v4 = vmul.f32 %v4344_v37, %v4332_v40  ;;  %499 = vmatpush.msra.mxu1 %v479_v3  ;;  %v4346_v6 = vpop.eup %4345  ;;  %v866_v40 = vld [vmem:[%s4092_s6 + $0x8] sm:$0xff] }
 0x3b1   :  { %v753_v7 = vsel %vm309_vm4, %v4346_v6, 0.0 }
 0x3b2   :  { %4136 = vmatmul.msk.f32.vlgmr.msra.gmra.mxu1 %vm309_vm4, %v477_v4 }
 0x3b3   :  { %v4348_v8 = vpop.eup %4347 }
 0x3b4   :  { %v625_v9 = vmul.f32 %v4348_v8, %v4334_v43  ;;  %v4350_v14 = vpop.eup %4349 }
 0x3b5   :  { %v543_v15 = vmul.f32 %v4350_v14, %v4577_v38  ;;  %v867_v38 = vld [vmem:[%s4092_s6 + $0x10] sm:$0xff]  ;;  %s4774_s6 = sld [smem:[%s5826_s0 + %s4428_s27]]  }
 0x3b6   :  { %892 = vmatpush.msrb.mxu0 %v867_v38  ;;  %v1017_v14 = vld [vmem:[%s4667_s2 + $0x190] sm:$0xff] }
 0x3b8   :  { %754 = vadd.xlane.f32.xlu1 %v753_v7  ;;  %893 = vmatpush.msrb.mxu0 %v866_v40 }
 0x3ba   :  { %894 = vmatpush.msrb.mxu0 %v865_v41  ;;  %v4687_v41 = vld [vmem:[%s4645_s10] ss:$0 sm:$0xff]  ;;  %s4895_s10 = sld [smem:[%s5826_s0 + %s4435_s7]]  }
 0x3bb   :  { %s5157_s7 = sld [smem:[%s5826_s0 + %s4438_s3]]  }
 0x3bf   :  { %v627_v10 = vpop.permute.xlu0 %626 }
 0x3c0   :  { %647 = vmatpush.msrb.mxu1 %v627_v10 }
 0x3c1   :  { %4142 = vmatmul.msk.f32.vlgmr.msrb.gmra.mxu1 %vm309_vm4, %v625_v9 }
 0x3c7   :  { %v759_v11 = vpop.permute.xlu0 %758 }
 0x3c8   :  { %779 = vmatpush.msra.mxu1 %v759_v11 }
 0x3e8   :  { %v689_v12 = vpop.xlane.xlu1 %688  ;;  %v821_v13 = vpop.xlane.xlu2 %820 }
 0x3e9   :  { %4351 = vrcp.f32 %v689_v12  ;;  %v1015_v12 = vld [vmem:[%s4667_s2 + $0x180] sm:$0xff] }
 0x3ea   :  { %4353 = vrcp.f32 %v821_v13  ;;  %v1016_v13 = vld [vmem:[%s4667_s2 + $0x188] sm:$0xff]  ;;  %1085 = vmatpush.msrb.mxu1 %v1015_v12  ;;  %v991_v12 = vld [vmem:[%s4667_s2 + $0xc0] sm:$0xff] }
 0x3eb   :  { %1108 = vmatpush.msra.mxu3 %v1016_v13  ;;  %v992_v13 = vld [vmem:[%s4667_s2 + $0xc8] sm:$0xff] }
 0x3ef   :  { %v4352_v19 = vpop.eup %4351 }
 0x3f0   :  { %v825_v18 = vpop.permute.xlu2 %824  ;;  %v691_v20 = vmul.f32 %v4352_v19, %v4338_v54  ;;  %v4354_v21 = vpop.eup %4353  ;;  %v4311_v54 = vld [vmem:[%s4093_s1] ss:$0 sm:$0xff]  ;;  %v1002_v19 = vld [vmem:[%s4667_s2 + $0x118] sm:$0xff] }
 0x3f1   :  { %v823_v22 = vmul.f32 %v4354_v21, %v4592_v53  ;;  %v984_v21 = vld [vmem:[%s4667_s2 + $0x88] sm:$0xff] }
 0x400   :  { %v545_v16 = vpop.permute.xlu1 %544 }
 0x401   :  { %565 = vmatpush.msrb.mxu2 %v545_v16  ;;  %v999_v16 = vld [vmem:[%s4667_s2 + $0x100] sm:$0xff] }
 0x402   :  { %4139 = vmatmul.msk.f32.vlgmr.msrb.gmra.mxu2 %vm309_vm4, %v543_v15  ;;  %v1018_v15 = vld [vmem:[%s4667_s2 + $0x198] sm:$0xff]  ;;  %1086 = vmatpush.msrb.mxu1 %v999_v16 }
 0x403   :  { %713 = vmatpush.msra.mxu2 %v4302_v17  ;;  %1154 = vmatpush.msra.mxu0 %v1018_v15  ;;  %v1000_v17 = vld [vmem:[%s4667_s2 + $0x108] sm:$0xff]  ;;  %v994_v15 = vld [vmem:[%s4667_s2 + $0xd8] sm:$0xff] }
 0x404   :  { %1109 = vmatpush.msra.mxu3 %v1000_v17  ;;  %v975_v17 = vld [vmem:[%s4667_s2 + $0x40] sm:$0xff] }
 0x405   :  { %845 = vmatpush.msrb.mxu2 %v825_v18  ;;  %v1001_v18 = vld [vmem:[%s4667_s2 + $0x110] sm:$0xff]  ;;  %1155 = vmatpush.msra.mxu0 %v1002_v19 }
 0x406   :  { %1110 = vmatpush.msra.mxu3 %v984_v21  ;;  %v977_v19 = vld [vmem:[%s4667_s2 + $0x50] sm:$0xff] }
 0x40a   :  { %4145 = vmatmul.msk.f32.vlgmr.msra.gmra.mxu2 %vm309_vm4, %v691_v20  ;;  %v983_v20 = vld [vmem:[%s4667_s2 + $0x80] sm:$0xff] }
 0x40b   :  { %1131 = vmatpush.msra.mxu2 %v1017_v14  ;;  %1087 = vmatpush.msrb.mxu1 %v983_v20  ;;  %v993_v14 = vld [vmem:[%s4667_s2 + $0xd0] sm:$0xff]  ;;  %v978_v20 = vld [vmem:[%s4667_s2 + $0x58] sm:$0xff] }
 0x40d   :  { %1132 = vmatpush.msra.mxu2 %v1001_v18  ;;  %v976_v18 = vld [vmem:[%s4667_s2 + $0x48] sm:$0xff] }
 0x412   :  { %4151 = vmatmul.msk.f32.vlgmr.msrb.gmra.mxu2 %vm309_vm4, %v823_v22  ;;  %v985_v22 = vld [vmem:[%s4667_s2 + $0x90] sm:$0xff] }
 0x413   :  { %1133 = vmatpush.msra.mxu2 %v985_v22 }
 0x422   :  { %v369_v23 = vpop.f32.mrf.mxu1 }
 0x42b   :  { %v755_v24 = vpop.xlane.xlu1 %754 }
 0x42c   :  { %4355 = vrcp.f32 %v755_v24  ;;  %v435_v25 = vpop.f32.mrf.mxu2  ;;  %v967_v24 = vld [vmem:[%s4667_s2] sm:$0xff] }
 0x42d   :  { %571 = vrot.lane.b32.xlu1 %v435_v25, %s4414_s4  ;;  %4357 = vrcp.f32 %v4433_v62  ;;  %v968_v25 = vld [vmem:[%s4667_s2 + $0x8] sm:$0xff]  ;;  %1088 = vmatpush.msrb.mxu1 %v967_v24 }
 0x42e   :  { %1111 = vmatpush.msra.mxu3 %v968_v25 }
 0x42f   :  { %v501_v26 = vpop.f32.mrf.mxu1 }
 0x430   :  { %575 = vrot.lane.b32.xlu0 %v501_v26, %s4428_s27  ;;  %v969_v26 = vld [vmem:[%s4667_s2 + $0x10] sm:$0xff] }
 0x431   :  { %1134 = vmatpush.msra.mxu2 %v969_v26  ;;  %v1028_v26 = vld [vmem:[%s4667_s2 + $0x1e8] sm:$0xff] }
 0x432   :  { %v4356_v27 = vpop.eup %4355 }
 0x433   :  { %v757_v28 = vmul.f32 %v4356_v27, %v4346_v6  ;;  %v4358_v63 = vpop.eup %4357  ;;  %v970_v27 = vld [vmem:[%s4667_s2 + $0x18] sm:$0xff] }
 0x434   :  { %v913_v0 = vmul.f32 32.0, %v4358_v63  ;;  %vm917_vm7 = vweird.f32 %v4358_v63 }
 0x435   :  { %4148 = vmatmul.msk.f32.vlgmr.msra.gmra.mxu1 %vm309_vm4, %v757_v28 }
 0x436   :  { %v914_v1 = vsub.f32 1.0, %v913_v0  ;;  %v974_v0 = vld [vmem:[%s4667_s2 + $0x38] sm:$0xff] }
 0x438   :  { %v915_v2 = vmul.f32 %v4358_v63, %v914_v1 }
 0x43a   :  { %v916_v39 = vadd.f32 %v4358_v63, %v915_v2 }
 0x43c   :  { %v4654_v37 = vsel %vm917_vm7, %v4358_v63, %v916_v39  ;;  %v973_v63 = vld [vmem:[%s4667_s2 + $0x30] sm:$0xff] }
 0x43e   :  { %v649_v33 = vpop.f32.mrf.mxu1 }
 0x485   :  { %v567_v30 = vpop.f32.mrf.mxu2 }
 0x486   :  { %579 = vrot.lane.b32.xlu0 %v567_v30, %s4427_s23 }
 0x48d   :  { %v715_v31 = vpop.f32.mrf.mxu2 }
 0x48e   :  { %851 = vrot.lane.b32.xlu2 %v715_v31, %s4414_s4 }
 0x495   :  { %v847_v32 = vpop.f32.mrf.mxu2 }
 0x496   :  { %859 = vrot.lane.b32.xlu1 %v847_v32, %s4427_s23 }
 0x49f   :  { %v572_v43 = vpop.permute.xlu1 %571 }
 0x4a0   :  { %v582_v44 = vsel %vm309_vm4, %v369_v23, %v572_v43  ;;  %v986_v23 = vld [vmem:[%s4667_s2 + $0x98] sm:$0xff]  ;;  %v4690_v43 = vld [vmem:[%s4651_s28] ss:$0 sm:$0xff]  ;;  %s4931_s28 = sld [smem:[%s5826_s0 + %s4436_s11]]  }
 0x4a1   :  { %1156 = vmatpush.msra.mxu0 %v986_v23  ;;  %s5162_s11 = sld [smem:[%s5826_s0 + %s4439_s8]]  }
 0x4a2   :  { %v576_v42 = vpop.permute.xlu0 %575 }
 0x4a3   :  { %v584_v45 = vsel %vm583_vm5, %v582_v44, %v576_v42  ;;  %1157 = vmatpush.msra.mxu0 %v970_v27  ;;  %v1029_v27 = vld [vmem:[%s4667_s2 + $0x1f0] sm:$0xff] }
 0x4b2   :  { %v781_v35 = vpop.f32.mrf.mxu1 }
 0x4b3   :  { %855 = vrot.lane.b32.xlu0 %v781_v35, %s4428_s27 }
 0x4e8   :  { %v852_v48 = vpop.permute.xlu2 %851 }
 0x4e9   :  { %v862_v49 = vsel %vm309_vm4, %v649_v33, %v852_v48  ;;  %v1020_v48 = vld [vmem:[%s4667_s2 + $0x1a8] sm:$0xff] }
 0x4ea   :  { %1200 = vmatpush.msrb.mxu3 %v1020_v48  ;;  %v1504_v48 = vld [vmem:[%s4774_s6 + $0xf8] sm:$0xff] }
 0x4f8   :  { %v580_v46 = vpop.permute.xlu0 %579 }
 0x4f9   :  { %v586_v47 = vsel %vm585_vm6, %v584_v45, %v580_v46 }
 0x4fa   :  { %4152 = vmatmul.msk.f32.vlgmr.msrb.gmra.mxu0 %vm276_vm3, %v586_v47  ;;  %v1019_v47 = vld [vmem:[%s4667_s2 + $0x1a0] sm:$0xff] }
 0x4fb   :  { %1177 = vmatpush.msra.mxu1 %v1019_v47  ;;  %v1536_v47 = vld [vmem:[%s4774_s6 + $0x1f8] sm:$0xff] }
 0x508   :  { %v860_v51 = vpop.permute.xlu1 %859 }
 0x525   :  { %v856_v50 = vpop.permute.xlu0 %855 }
 0x526   :  { %v863_v52 = vsel %vm583_vm5, %v862_v49, %v856_v50  ;;  %v1021_v49 = vld [vmem:[%s4667_s2 + $0x1b0] sm:$0xff]  ;;  %v1022_v50 = vld [vmem:[%s4667_s2 + $0x1b8] sm:$0xff] }
 0x527   :  { %v864_v53 = vsel %vm585_vm6, %v863_v52, %v860_v51  ;;  %v1003_v51 = vld [vmem:[%s4667_s2 + $0x120] sm:$0xff]  ;;  %v1004_v52 = vld [vmem:[%s4667_s2 + $0x128] sm:$0xff]  ;;  %1223 = vmatpush.msrb.mxu2 %v1021_v49  ;;  %1246 = vmatpush.msrb.mxu0 %v1022_v50  ;;  %v1520_v49 = vld [vmem:[%s4774_s6 + $0x178] sm:$0xff] }
 0x528   :  { %4153 = vmatmul.msk.f32.gmra.mxu0 %vm276_vm3, %v864_v53  ;;  %1178 = vmatpush.msra.mxu1 %v1003_v51  ;;  %v1487_v50 = vld [vmem:[%s4774_s6 + $0x70] sm:$0xff] }
 0x529   :  { %1201 = vmatpush.msrb.mxu3 %v1004_v52  ;;  %v1535_v51 = vld [vmem:[%s4774_s6 + $0x1f0] sm:$0xff] }
 0x52a   :  { %v1503_v52 = vld [vmem:[%s4774_s6 + $0xf0] sm:$0xff] }
 0x577   :  { %v896_v55 = vpop.f32.mrf.mxu0 }
 0x578   :  { %v897_v56 = vadd.f32 %v4311_v54, %v896_v55  ;;  %v1006_v55 = vld [vmem:[%s4667_s2 + $0x138] sm:$0xff] }
 0x579   :  { %1247 = vmatpush.msrb.mxu0 %v1006_v55  ;;  %v1534_v55 = vld [vmem:[%s4774_s6 + $0x1e8] sm:$0xff] }
 0x57a   :  { %v902_v57 = vadd.f32 %v897_v56, %v4501_v29  ;;  %v987_v56 = vld [vmem:[%s4667_s2 + $0xa0] sm:$0xff] }
 0x57b   :  { %1179 = vmatpush.msra.mxu1 %v987_v56  ;;  %v1502_v56 = vld [vmem:[%s4774_s6 + $0xe8] sm:$0xff] }
 0x57c   :  { %v906_v58 = vsel %vm276_vm3, %v902_v57, 0.0 }
 0x57d   :  { %907 = vadd.xlane.f32.xlu2 %v906_v58  ;;  %v988_v58 = vld [vmem:[%s4667_s2 + $0xa8] sm:$0xff] }
 0x57e   :  { %1202 = vmatpush.msrb.mxu3 %v988_v58  ;;  %v1485_v58 = vld [vmem:[%s4774_s6 + $0x60] sm:$0xff] }
 0x5a5   :  { %v899_v59 = vpop.f32.mrf.mxu0 }
 0x5a6   :  { %v900_v60 = vadd.f32 %v4311_v54, %v899_v59  ;;  %v1005_v54 = vld [vmem:[%s4667_s2 + $0x130] sm:$0xff] }
 0x5a7   :  { %v989_v59 = vld [vmem:[%s4667_s2 + $0xb0] sm:$0xff]  ;;  %1224 = vmatpush.msrb.mxu2 %v1005_v54  ;;  %v1486_v54 = vld [vmem:[%s4774_s6 + $0x68] sm:$0xff] }
 0x5a8   :  { %v903_v61 = vadd.f32 %v900_v60, %v4505_v34  ;;  %v990_v60 = vld [vmem:[%s4667_s2 + $0xb8] sm:$0xff] }
 0x5a9   :  { %1225 = vmatpush.msrb.mxu2 %v989_v59  ;;  %1248 = vmatpush.msrb.mxu0 %v990_v60  ;;  %v1533_v59 = vld [vmem:[%s4774_s6 + $0x1e0] sm:$0xff] }
 0x5aa   :  { %v909_v29 = vsel %vm276_vm3, %v903_v61, 0.0  ;;  %v1501_v60 = vld [vmem:[%s4774_s6 + $0xe0] sm:$0xff] }
 0x5ab   :  { %910 = vadd.xlane.f32.xlu0 %v909_v29  ;;  %v972_v29 = vld [vmem:[%s4667_s2 + $0x28] sm:$0xff]  ;;  %1226 = vmatpush.msrb.mxu2 %v973_v63  ;;  %v1500_v63 = vld [vmem:[%s4774_s6 + $0xd8] sm:$0xff] }
 0x5ac   :  { %1203 = vmatpush.msrb.mxu3 %v972_v29  ;;  %1249 = vmatpush.msrb.mxu0 %v974_v0  ;;  %v1484_v29 = vld [vmem:[%s4774_s6 + $0x58] sm:$0xff] }
 0x5ad   :  { %v1516_v0 = vld [vmem:[%s4774_s6 + $0x158] sm:$0xff] }
 0x5f0   :  { %v908_v34 = vpop.xlane.xlu2 %907 }
 0x5f1   :  { %v919_v3 = vmul.f32 %v4654_v37, %v908_v34  ;;  %v1023_v34 = vld [vmem:[%s4667_s2 + $0x1c0] sm:$0xff] }
 0x5f3   :  { %v921_v4 = vsub.f32 %v902_v57, %v919_v3  ;;  %v1024_v3 = vld [vmem:[%s4667_s2 + $0x1c8] sm:$0xff] }
 0x5f5   :  { %v923_v5 = vmul.f32 %v921_v4, %v921_v4 }
 0x5f7   :  { %v925_v6 = vsel %vm276_vm3, %v923_v5, 0.0  ;;  %v1026_v5 = vld [vmem:[%s4667_s2 + $0x1d8] sm:$0xff] }
 0x5f8   :  { %926 = vadd.xlane.f32.xlu1 %v925_v6  ;;  %v1007_v6 = vld [vmem:[%s4667_s2 + $0x140] sm:$0xff] }
 0x61e   :  { %v911_v7 = vpop.xlane.xlu0 %910 }
 0x61f   :  { %v920_v8 = vmul.f32 %v4654_v37, %v911_v7  ;;  %v1008_v7 = vld [vmem:[%s4667_s2 + $0x148] sm:$0xff] }
 0x621   :  { %v4659_v9 = vsub.f32 %v903_v61, %v920_v8  ;;  %v971_v61 = vld [vmem:[%s4667_s2 + $0x20] sm:$0xff] }
 0x622   :  { %1180 = vmatpush.msra.mxu1 %v971_v61  ;;  %v1517_v61 = vld [vmem:[%s4774_s6 + $0x160] sm:$0xff] }
 0x623   :  { %v924_v10 = vmul.f32 %v4659_v9, %v4659_v9 }
 0x625   :  { %v928_v11 = vsel %vm276_vm3, %v924_v10, 0.0  ;;  %v1009_v10 = vld [vmem:[%s4667_s2 + $0x150] sm:$0xff] }
 0x626   :  { %929 = vadd.xlane.f32.xlu2 %v928_v11  ;;  %v1010_v11 = vld [vmem:[%s4667_s2 + $0x158] sm:$0xff] }
 0x66b   :  { %v927_v28 = vpop.xlane.xlu1 %926 }
 0x66c   :  { %v931_v30 = vmul.f32 %v927_v28, %v4654_v37  ;;  %v1030_v28 = vld [vmem:[%s4667_s2 + $0x1f8] sm:$0xff] }
 0x66e   :  { %v933_v31 = vadd.f32 1e-05, %v931_v30  ;;  %v1011_v30 = vld [vmem:[%s4667_s2 + $0x160] sm:$0xff] }
 0x670   :  { %4359 = vrsqrt.f32 %v933_v31  ;;  %vm941_vm9 = vweird.f32 %v933_v31 }
 0x676   :  { %v4360_v32 = vpop.eup %4359 }
 0x677   :  { %v936_v33 = vmul.f32 %v4360_v32, %v933_v31  ;;  %vm942_vm8 = vweird.f32 %v4360_v32  ;;  %v1012_v31 = vld [vmem:[%s4667_s2 + $0x168] sm:$0xff] }
 0x678   :  { %vm943_vm10 = vmor %vm941_vm9, %vm942_vm8 }
 0x679   :  { %v937_v35 = vmul.f32 %v4360_v32, %v936_v33  ;;  %v1014_v33 = vld [vmem:[%s4667_s2 + $0x178] sm:$0xff] }
 0x67b   :  { %v938_v36 = vmul.f32 0.5, %v937_v35  ;;  %v995_v35 = vld [vmem:[%s4667_s2 + $0xe0] sm:$0xff] }
 0x67d   :  { %v939_v38 = vsub.f32 1.5, %v938_v36  ;;  %v996_v36 = vld [vmem:[%s4667_s2 + $0xe8] sm:$0xff] }
 0x67f   :  { %v940_v40 = vmul.f32 %v4360_v32, %v939_v38  ;;  %v997_v38 = vld [vmem:[%s4667_s2 + $0xf0] sm:$0xff] }
 0x681   :  { %v944_v42 = vsel %vm943_vm10, %v4360_v32, %v940_v40  ;;  %v1013_v32 = vld [vmem:[%s4667_s2 + $0x170] sm:$0xff]  ;;  %v998_v40 = vld [vmem:[%s4667_s2 + $0xf8] sm:$0xff] }
 0x682   :  { %v955_v44 = vmul.f32 %v944_v42, %v921_v4  ;;  %v1025_v4 = vld [vmem:[%s4667_s2 + $0x1d0] sm:$0xff]  ;;  %v980_v42 = vld [vmem:[%s4667_s2 + $0x68] sm:$0xff] }
 0x684   :  { %v960_v45 = vmul.f32 %v4687_v41, %v955_v44  ;;  %v982_v44 = vld [vmem:[%s4667_s2 + $0x78] sm:$0xff] }
 0x686   :  { %v4694_v46 = vadd.f32 %v4690_v43, %v960_v45  ;;  %v1488_v45 = vld [vmem:[%s4774_s6 + $0x78] sm:$0xff] }
 0x688   :  { %4154 = vmatmul.msk.f32.vlgmr.msrb.gmra.mxu1 %vm276_vm3, %v4694_v46  ;;  %4156 = vmatmul.msk.f32.vlgmr.msra.gmra.mxu3 %vm276_vm3, %v4694_v46 }
 0x689   :  { %4158 = vmatmul.msk.f32.vlgmr.msra.gmra.mxu2 %vm276_vm3, %v4694_v46  ;;  %4160 = vmatmul.msk.f32.vlgmr.msra.gmra.mxu0 %vm276_vm3, %v4694_v46 }
 0x68a   :  { %1269 = vmatpush.msrb.mxu1 %v1023_v34  ;;  %1292 = vmatpush.msra.mxu3 %v1024_v3  ;;  %v1515_v34 = vld [vmem:[%s4774_s6 + $0x150] sm:$0xff]  ;;  %v1482_v3 = vld [vmem:[%s4774_s6 + $0x48] sm:$0xff] }
 0x68b   :  { %1315 = vmatpush.msra.mxu2 %v1025_v4  ;;  %1338 = vmatpush.msra.mxu0 %v1026_v5  ;;  %v1530_v4 = vld [vmem:[%s4774_s6 + $0x1c8] sm:$0xff] }
 0x68c   :  { %1270 = vmatpush.msrb.mxu1 %v1007_v6  ;;  %1293 = vmatpush.msra.mxu3 %v1008_v7  ;;  %v1498_v5 = vld [vmem:[%s4774_s6 + $0xc8] sm:$0xff]  ;;  %v1481_v7 = vld [vmem:[%s4774_s6 + $0x40] sm:$0xff] }
 0x68d   :  { %1316 = vmatpush.msra.mxu2 %v1009_v10  ;;  %1339 = vmatpush.msra.mxu0 %v1010_v11  ;;  %v1514_v6 = vld [vmem:[%s4774_s6 + $0x148] sm:$0xff]  ;;  %v1497_v10 = vld [vmem:[%s4774_s6 + $0xc0] sm:$0xff] }
 0x68e   :  { %1271 = vmatpush.msrb.mxu1 %v991_v12  ;;  %1294 = vmatpush.msra.mxu3 %v992_v13  ;;  %v1513_v11 = vld [vmem:[%s4774_s6 + $0x140] sm:$0xff]  ;;  %v1480_v12 = vld [vmem:[%s4774_s6 + $0x38] sm:$0xff] }
 0x68f   :  { %1317 = vmatpush.msra.mxu2 %v993_v14  ;;  %1340 = vmatpush.msra.mxu0 %v994_v15  ;;  %v1528_v13 = vld [vmem:[%s4774_s6 + $0x1b8] sm:$0xff] }
 0x690   :  { %1272 = vmatpush.msrb.mxu1 %v975_v17  ;;  %1295 = vmatpush.msra.mxu3 %v976_v18  ;;  %v1496_v14 = vld [vmem:[%s4774_s6 + $0xb8] sm:$0xff]  ;;  %v1527_v17 = vld [vmem:[%s4774_s6 + $0x1b0] sm:$0xff] }
 0x691   :  { %1318 = vmatpush.msra.mxu2 %v977_v19  ;;  %1341 = vmatpush.msra.mxu0 %v978_v20  ;;  %v1512_v15 = vld [vmem:[%s4774_s6 + $0x138] sm:$0xff]  ;;  %v1495_v18 = vld [vmem:[%s4774_s6 + $0xb0] sm:$0xff]  ;;  %v1478_v20 = vld [vmem:[%s4774_s6 + $0x28] sm:$0xff] }
 0x692   :  { %v1511_v19 = vld [vmem:[%s4774_s6 + $0x130] sm:$0xff] }
 0x699   :  { %v930_v53 = vpop.xlane.xlu2 %929 }
 0x69a   :  { %v932_v57 = vmul.f32 %v930_v53, %v4654_v37  ;;  %v1519_v53 = vld [vmem:[%s4774_s6 + $0x170] sm:$0xff] }
 0x69c   :  { %v934_v62 = vadd.f32 1e-05, %v932_v57  ;;  %v1518_v57 = vld [vmem:[%s4774_s6 + $0x168] sm:$0xff] }
 0x69e   :  { %4361 = vrsqrt.f32 %v934_v62  ;;  %vm951_vm12 = vweird.f32 %v934_v62 }
 0x6a4   :  { %v4362_v1 = vpop.eup %4361 }
 0x6a5   :  { %v946_v2 = vmul.f32 %v4362_v1, %v934_v62  ;;  %vm952_vm11 = vweird.f32 %v4362_v1  ;;  %v1532_v62 = vld [vmem:[%s4774_s6 + $0x1d8] sm:$0xff] }
 0x6a6   :  { %vm953_vm13 = vmor %vm951_vm12, %vm952_vm11 }
 0x6a7   :  { %v947_v39 = vmul.f32 %v4362_v1, %v946_v2  ;;  %v1531_v2 = vld [vmem:[%s4774_s6 + $0x1d0] sm:$0xff] }
 0x6a9   :  { %v948_v8 = vmul.f32 0.5, %v947_v39  ;;  %v1499_v39 = vld [vmem:[%s4774_s6 + $0xd0] sm:$0xff] }
 0x6ab   :  { %v949_v16 = vsub.f32 1.5, %v948_v8  ;;  %v1529_v8 = vld [vmem:[%s4774_s6 + $0x1c0] sm:$0xff] }
 0x6ad   :  { %v950_v21 = vmul.f32 %v4362_v1, %v949_v16  ;;  %v1479_v16 = vld [vmem:[%s4774_s6 + $0x30] sm:$0xff] }
 0x6af   :  { %v954_v22 = vsel %vm953_vm13, %v4362_v1, %v950_v21  ;;  %v1483_v1 = vld [vmem:[%s4774_s6 + $0x50] sm:$0xff]  ;;  %v1526_v21 = vld [vmem:[%s4774_s6 + $0x1a8] sm:$0xff] }
 0x6b0   :  { %v956_v23 = vmul.f32 %v954_v22, %v4659_v9  ;;  %v1027_v9 = vld [vmem:[%s4667_s2 + $0x1e0] sm:$0xff]  ;;  %v1494_v22 = vld [vmem:[%s4774_s6 + $0xa8] sm:$0xff] }
 0x6b2   :  { %v961_v24 = vmul.f32 %v4687_v41, %v956_v23  ;;  %v979_v41 = vld [vmem:[%s4667_s2 + $0x60] sm:$0xff]  ;;  %v1510_v23 = vld [vmem:[%s4774_s6 + $0x128] sm:$0xff] }
 0x6b4   :  { %v4740_v25 = vadd.f32 %v4690_v43, %v961_v24  ;;  %v981_v43 = vld [vmem:[%s4667_s2 + $0x70] sm:$0xff]  ;;  %v1477_v24 = vld [vmem:[%s4774_s6 + $0x20] sm:$0xff]  ;;  %s5146_s2 = sld [smem:[%s5826_s0 + %s4437_s29]]  }
 0x6b5   :  { %s4102_s29 = sld [smem:[%s5826_s0 + %s4440_s24]]  }
 0x6b6   :  { %4155 = vmatmul.msk.f32.gmra.mxu1 %vm276_vm3, %v4740_v25  ;;  %4157 = vmatmul.msk.f32.gmra.mxu3 %vm276_vm3, %v4740_v25 }
 0x6b7   :  { %4159 = vmatmul.msk.f32.gmra.mxu2 %vm276_vm3, %v4740_v25  ;;  %4161 = vmatmul.msk.f32.gmra.mxu0 %vm276_vm3, %v4740_v25 }
 0x6be   :  { %4162 = vmatmul.msk.f32.vlgmr.msra.gmra.mxu1 %vm276_vm3, %v4694_v46  ;;  %4164 = vmatmul.msk.f32.vlgmr.msrb.gmra.mxu3 %vm276_vm3, %v4694_v46 }
 0x6bf   :  { %4166 = vmatmul.msk.f32.vlgmr.msrb.gmra.mxu2 %vm276_vm3, %v4694_v46  ;;  %4168 = vmatmul.msk.f32.vlgmr.msrb.gmra.mxu0 %vm276_vm3, %v4694_v46 }
 0x6c0   :  { %1361 = vmatpush.msra.mxu1 %v1027_v9  ;;  %1384 = vmatpush.msrb.mxu3 %v1028_v26  ;;  %v1525_v9 = vld [vmem:[%s4774_s6 + $0x1a0] sm:$0xff] }
 0x6c1   :  { %1407 = vmatpush.msrb.mxu2 %v1029_v27  ;;  %1430 = vmatpush.msrb.mxu0 %v1030_v28  ;;  %v1493_v26 = vld [vmem:[%s4774_s6 + $0xa0] sm:$0xff]  ;;  %v1476_v28 = vld [vmem:[%s4774_s6 + $0x18] sm:$0xff] }
 0x6c2   :  { %1362 = vmatpush.msra.mxu1 %v1011_v30  ;;  %1385 = vmatpush.msrb.mxu3 %v1012_v31  ;;  %v1509_v27 = vld [vmem:[%s4774_s6 + $0x120] sm:$0xff]  ;;  %v1524_v30 = vld [vmem:[%s4774_s6 + $0x198] sm:$0xff] }
 0x6c3   :  { %1408 = vmatpush.msrb.mxu2 %v1013_v32  ;;  %1431 = vmatpush.msrb.mxu0 %v1014_v33  ;;  %v1492_v31 = vld [vmem:[%s4774_s6 + $0x98] sm:$0xff]  ;;  %v1475_v33 = vld [vmem:[%s4774_s6 + $0x10] sm:$0xff] }
 0x6c4   :  { %1363 = vmatpush.msra.mxu1 %v995_v35  ;;  %1386 = vmatpush.msrb.mxu3 %v996_v36  ;;  %v1508_v32 = vld [vmem:[%s4774_s6 + $0x118] sm:$0xff]  ;;  %v1523_v35 = vld [vmem:[%s4774_s6 + $0x190] sm:$0xff] }
 0x6c5   :  { %1409 = vmatpush.msrb.mxu2 %v997_v38  ;;  %1432 = vmatpush.msrb.mxu0 %v998_v40  ;;  %v1491_v36 = vld [vmem:[%s4774_s6 + $0x90] sm:$0xff]  ;;  %v1474_v40 = vld [vmem:[%s4774_s6 + $0x8] sm:$0xff] }
 0x6c6   :  { %4163 = vmatmul.msk.f32.gmra.mxu1 %vm276_vm3, %v4740_v25  ;;  %4165 = vmatmul.msk.f32.gmra.mxu3 %vm276_vm3, %v4740_v25  ;;  %v1507_v38 = vld [vmem:[%s4774_s6 + $0x110] sm:$0xff] }
 0x6c7   :  { %4167 = vmatmul.msk.f32.gmra.mxu2 %vm276_vm3, %v4740_v25  ;;  %4169 = vmatmul.msk.f32.gmra.mxu0 %vm276_vm3, %v4740_v25 }
 0x6c8   :  { %1364 = vmatpush.msra.mxu1 %v979_v41  ;;  %1387 = vmatpush.msrb.mxu3 %v980_v42  ;;  %v1522_v41 = vld [vmem:[%s4774_s6 + $0x188] sm:$0xff] }
 0x6c9   :  { %1410 = vmatpush.msrb.mxu2 %v981_v43  ;;  %1433 = vmatpush.msrb.mxu0 %v982_v44  ;;  %v1490_v42 = vld [vmem:[%s4774_s6 + $0x88] sm:$0xff]  ;;  %v1473_v44 = vld [vmem:[%s4774_s6] sm:$0xff] }
 0x6ca   :  { %v1506_v43 = vld [vmem:[%s4774_s6 + $0x108] sm:$0xff] }
 0x6ce   :  { %4170 = vmatmul.msk.f32.vlgmr.msrb.gmra.mxu1 %vm276_vm3, %v4694_v46  ;;  %4172 = vmatmul.msk.f32.vlgmr.msra.gmra.mxu3 %vm276_vm3, %v4694_v46 }
 0x6cf   :  { %4174 = vmatmul.msk.f32.vlgmr.msra.gmra.mxu2 %vm276_vm3, %v4694_v46  ;;  %4176 = vmatmul.msk.f32.vlgmr.msra.gmra.mxu0 %vm276_vm3, %v4694_v46 }
 0x6d0   :  { %1733 = vmatpush.msrb.mxu1 %v1488_v45  ;;  %1802 = vmatpush.msra.mxu0 %v1536_v47  ;;  %v1521_v45 = vld [vmem:[%s4774_s6 + $0x180] sm:$0xff]  ;;  %v1552_v47 = vld [vmem:[%s4774_s6 + $0x278] sm:$0xff] }
 0x6d1   :  { %1756 = vmatpush.msra.mxu3 %v1504_v48  ;;  %1779 = vmatpush.msra.mxu2 %v1520_v49  ;;  %v1600_v48 = vld [vmem:[%s4774_s6 + $0x3f8] sm:$0xff]  ;;  %v1489_v49 = vld [vmem:[%s4774_s6 + $0x80] sm:$0xff] }
 0x6d2   :  { %1734 = vmatpush.msrb.mxu1 %v1487_v50  ;;  %1803 = vmatpush.msra.mxu0 %v1535_v51  ;;  %v1505_v50 = vld [vmem:[%s4774_s6 + $0x100] sm:$0xff]  ;;  %v1551_v51 = vld [vmem:[%s4774_s6 + $0x270] sm:$0xff] }
 0x6d3   :  { %1757 = vmatpush.msra.mxu3 %v1503_v52  ;;  %1780 = vmatpush.msra.mxu2 %v1519_v53  ;;  %v1599_v52 = vld [vmem:[%s4774_s6 + $0x3f0] sm:$0xff]  ;;  %v1568_v53 = vld [vmem:[%s4774_s6 + $0x2f8] sm:$0xff] }
 0x6d4   :  { %1735 = vmatpush.msrb.mxu1 %v1486_v54  ;;  %1804 = vmatpush.msra.mxu0 %v1534_v55  ;;  %v1584_v54 = vld [vmem:[%s4774_s6 + $0x378] sm:$0xff]  ;;  %v1550_v55 = vld [vmem:[%s4774_s6 + $0x268] sm:$0xff] }
 0x6d5   :  { %1758 = vmatpush.msra.mxu3 %v1502_v56  ;;  %1781 = vmatpush.msra.mxu2 %v1518_v57  ;;  %v1598_v56 = vld [vmem:[%s4774_s6 + $0x3e8] sm:$0xff]  ;;  %v1567_v57 = vld [vmem:[%s4774_s6 + $0x2f0] sm:$0xff] }
 0x6d6   :  { %4171 = vmatmul.msk.f32.gmra.mxu1 %vm276_vm3, %v4740_v25  ;;  %4173 = vmatmul.msk.f32.gmra.mxu3 %vm276_vm3, %v4740_v25 }
 0x6d7   :  { %4175 = vmatmul.msk.f32.gmra.mxu2 %vm276_vm3, %v4740_v25  ;;  %4177 = vmatmul.msk.f32.gmra.mxu0 %vm276_vm3, %v4740_v25 }
 0x6d8   :  { %1736 = vmatpush.msrb.mxu1 %v1485_v58  ;;  %1805 = vmatpush.msra.mxu0 %v1533_v59  ;;  %v1583_v58 = vld [vmem:[%s4774_s6 + $0x370] sm:$0xff]  ;;  %v1549_v59 = vld [vmem:[%s4774_s6 + $0x260] sm:$0xff] }
 0x6d9   :  { %1759 = vmatpush.msra.mxu3 %v1501_v60  ;;  %1782 = vmatpush.msra.mxu2 %v1517_v61  ;;  %v1597_v60 = vld [vmem:[%s4774_s6 + $0x3e0] sm:$0xff]  ;;  %v1566_v61 = vld [vmem:[%s4774_s6 + $0x2e8] sm:$0xff] }
 0x6da   :  { %1737 = vmatpush.msrb.mxu1 %v1484_v29  ;;  %1806 = vmatpush.msra.mxu0 %v1532_v62  ;;  %v1582_v29 = vld [vmem:[%s4774_s6 + $0x368] sm:$0xff]  ;;  %v1548_v62 = vld [vmem:[%s4774_s6 + $0x258] sm:$0xff] }
 0x6db   :  { %1760 = vmatpush.msra.mxu3 %v1500_v63  ;;  %1783 = vmatpush.msra.mxu2 %v1516_v0  ;;  %v1596_v63 = vld [vmem:[%s4774_s6 + $0x3d8] sm:$0xff]  ;;  %v1565_v0 = vld [vmem:[%s4774_s6 + $0x2e0] sm:$0xff] }
 0x6dc   :  { %1738 = vmatpush.msrb.mxu1 %v1483_v1  ;;  %1807 = vmatpush.msra.mxu0 %v1531_v2  ;;  %v1581_v1 = vld [vmem:[%s4774_s6 + $0x360] sm:$0xff]  ;;  %v1547_v2 = vld [vmem:[%s4774_s6 + $0x250] sm:$0xff] }
 0x6dd   :  { %1761 = vmatpush.msra.mxu3 %v1499_v39  ;;  %1784 = vmatpush.msra.mxu2 %v1515_v34  ;;  %v1595_v39 = vld [vmem:[%s4774_s6 + $0x3d0] sm:$0xff]  ;;  %v1564_v34 = vld [vmem:[%s4774_s6 + $0x2d8] sm:$0xff] }
 0x6de   :  { %4178 = vmatmul.msk.f32.vlgmr.msra.gmra.mxu1 %vm276_vm3, %v4694_v46  ;;  %4180 = vmatmul.msk.f32.vlgmr.msrb.gmra.mxu3 %vm276_vm3, %v4694_v46 }
 0x6df   :  { %4182 = vmatmul.msk.f32.vlgmr.msrb.gmra.mxu2 %vm276_vm3, %v4694_v46  ;;  %4184 = vmatmul.msk.f32.vlgmr.msrb.gmra.mxu0 %vm276_vm3, %v4694_v46 }
 0x6e0   :  { %1739 = vmatpush.msrb.mxu1 %v1482_v3  ;;  %1808 = vmatpush.msra.mxu0 %v1530_v4  ;;  %v1580_v3 = vld [vmem:[%s4774_s6 + $0x358] sm:$0xff]  ;;  %v1546_v4 = vld [vmem:[%s4774_s6 + $0x248] sm:$0xff] }
 0x6e1   :  { %1762 = vmatpush.msra.mxu3 %v1498_v5  ;;  %1785 = vmatpush.msra.mxu2 %v1514_v6  ;;  %v1594_v5 = vld [vmem:[%s4774_s6 + $0x3c8] sm:$0xff]  ;;  %v4914_v6 = vld [vmem:[%s4895_s10] sm:$0xff] }
 0x6e2   :  { %1740 = vmatpush.msrb.mxu1 %v1481_v7  ;;  %1809 = vmatpush.msra.mxu0 %v1529_v8  ;;  %v1563_v7 = vld [vmem:[%s4774_s6 + $0x2d0] sm:$0xff] }
 0x6e3   :  { %1763 = vmatpush.msra.mxu3 %v1497_v10  ;;  %1786 = vmatpush.msra.mxu2 %v1513_v11  ;;  %v1579_v8 = vld [vmem:[%s4774_s6 + $0x350] sm:$0xff]  ;;  %v1545_v10 = vld [vmem:[%s4774_s6 + $0x240] sm:$0xff] }
 0x6e4   :  { %1741 = vmatpush.msrb.mxu1 %v1480_v12  ;;  %1810 = vmatpush.msra.mxu0 %v1528_v13  ;;  %v1593_v11 = vld [vmem:[%s4774_s6 + $0x3c0] sm:$0xff]  ;;  %v1562_v12 = vld [vmem:[%s4774_s6 + $0x2c8] sm:$0xff] }
 0x6e5   :  { %1764 = vmatpush.msra.mxu3 %v1496_v14  ;;  %1787 = vmatpush.msra.mxu2 %v1512_v15  ;;  %v1578_v13 = vld [vmem:[%s4774_s6 + $0x348] sm:$0xff]  ;;  %v1035_v14 = vperm.slane %v4914_v6, 0  ;;  %v1544_v15 = vld [vmem:[%s4774_s6 + $0x238] sm:$0xff] }
 0x6e6   :  { %4179 = vmatmul.msk.f32.gmra.mxu1 %vm276_vm3, %v4740_v25  ;;  %4181 = vmatmul.msk.f32.gmra.mxu3 %vm276_vm3, %v4740_v25 }
 0x6e7   :  { %4183 = vmatmul.msk.f32.gmra.mxu2 %vm276_vm3, %v4740_v25  ;;  %4185 = vmatmul.msk.f32.gmra.mxu0 %vm276_vm3, %v4740_v25 }
 0x6e8   :  { %1742 = vmatpush.msrb.mxu1 %v1479_v16  ;;  %1811 = vmatpush.msra.mxu0 %v1527_v17  ;;  %v1592_v16 = vld [vmem:[%s4774_s6 + $0x3b8] sm:$0xff]  ;;  %v1038_v17 = vperm.slane %v4914_v6, 3 }
 0x6e9   :  { %1765 = vmatpush.msra.mxu3 %v1495_v18  ;;  %1788 = vmatpush.msra.mxu2 %v1511_v19  ;;  %v1561_v18 = vld [vmem:[%s4774_s6 + $0x2c0] sm:$0xff] }
 0x6ea   :  { %1743 = vmatpush.msrb.mxu1 %v1478_v20  ;;  %1812 = vmatpush.msra.mxu0 %v1526_v21  ;;  %v1577_v19 = vld [vmem:[%s4774_s6 + $0x340] sm:$0xff]  ;;  %v1543_v20 = vld [vmem:[%s4774_s6 + $0x230] sm:$0xff] }
 0x6eb   :  { %1766 = vmatpush.msra.mxu3 %v1494_v22  ;;  %1789 = vmatpush.msra.mxu2 %v1510_v23  ;;  %v1591_v21 = vld [vmem:[%s4774_s6 + $0x3b0] sm:$0xff]  ;;  %v1560_v23 = vld [vmem:[%s4774_s6 + $0x2b8] sm:$0xff] }
 0x6ec   :  { %1744 = vmatpush.msrb.mxu1 %v1477_v24  ;;  %1813 = vmatpush.msra.mxu0 %v1525_v9  ;;  %v1576_v24 = vld [vmem:[%s4774_s6 + $0x338] sm:$0xff] }
 0x6ed   :  { %1767 = vmatpush.msra.mxu3 %v1493_v26  ;;  %1790 = vmatpush.msra.mxu2 %v1509_v27  ;;  %v1542_v27 = vld [vmem:[%s4774_s6 + $0x228] sm:$0xff] }
 0x6ee   :  { %1745 = vmatpush.msrb.mxu1 %v1476_v28  ;;  %1814 = vmatpush.msra.mxu0 %v1524_v30  ;;  %v1590_v28 = vld [vmem:[%s4774_s6 + $0x3a8] sm:$0xff] }
 0x6ef   :  { %1768 = vmatpush.msra.mxu3 %v1492_v31  ;;  %1791 = vmatpush.msra.mxu2 %v1508_v32  ;;  %v1559_v31 = vld [vmem:[%s4774_s6 + $0x2b0] sm:$0xff] }
 0x6f0   :  { %1746 = vmatpush.msrb.mxu1 %v1475_v33  ;;  %1815 = vmatpush.msra.mxu0 %v1523_v35  ;;  %v1036_v33 = vperm.slane %v4914_v6, 1  ;;  %v1541_v35 = vld [vmem:[%s4774_s6 + $0x220] sm:$0xff] }
 0x6f1   :  { %1769 = vmatpush.msra.mxu3 %v1491_v36  ;;  %1792 = vmatpush.msra.mxu2 %v1507_v38  ;;  %v1037_v38 = vperm.slane %v4914_v6, 2 }
 0x6f2   :  { %1747 = vmatpush.msrb.mxu1 %v1474_v40  ;;  %1816 = vmatpush.msra.mxu0 %v1522_v41  ;;  %v1589_v40 = vld [vmem:[%s4774_s6 + $0x3a0] sm:$0xff]  ;;  %v1575_v41 = vld [vmem:[%s4774_s6 + $0x330] sm:$0xff] }
 0x6f3   :  { %1770 = vmatpush.msra.mxu3 %v1490_v42  ;;  %1793 = vmatpush.msra.mxu2 %v1506_v43  ;;  %v1540_v42 = vld [vmem:[%s4774_s6 + $0x218] sm:$0xff]  ;;  %v1558_v43 = vld [vmem:[%s4774_s6 + $0x2a8] sm:$0xff] }
 0x6f4   :  { %1748 = vmatpush.msrb.mxu1 %v1473_v44  ;;  %1817 = vmatpush.msra.mxu0 %v1521_v45  ;;  %v1588_v45 = vld [vmem:[%s4774_s6 + $0x398] sm:$0xff] }
 0x6f5   :  { %1771 = vmatpush.msra.mxu3 %v1489_v49  ;;  %1794 = vmatpush.msra.mxu2 %v1505_v50  ;;  %v1539_v50 = vld [vmem:[%s4774_s6 + $0x210] sm:$0xff] }
 0x6f6   :  { %1825 = vmatpush.msra.mxu1 %v1552_v47  ;;  %1894 = vmatpush.msrb.mxu0 %v1600_v48  ;;  %v1574_v47 = vld [vmem:[%s4774_s6 + $0x328] sm:$0xff] }
 0x6f7   :  { %1848 = vmatpush.msrb.mxu3 %v1568_v53  ;;  %1871 = vmatpush.msrb.mxu2 %v1584_v54  ;;  %v1587_v53 = vld [vmem:[%s4774_s6 + $0x390] sm:$0xff] }
 0x6f8   :  { %1826 = vmatpush.msra.mxu1 %v1551_v51  ;;  %1895 = vmatpush.msrb.mxu0 %v1599_v52  ;;  %v1557_v51 = vld [vmem:[%s4774_s6 + $0x2a0] sm:$0xff] }
 0x6f9   :  { %1849 = vmatpush.msrb.mxu3 %v1567_v57  ;;  %1872 = vmatpush.msrb.mxu2 %v1583_v58  ;;  %v1573_v57 = vld [vmem:[%s4774_s6 + $0x320] sm:$0xff]  ;;  %v1586_v58 = vld [vmem:[%s4774_s6 + $0x388] sm:$0xff] }
 0x6fa   :  { %1827 = vmatpush.msra.mxu1 %v1550_v55  ;;  %1896 = vmatpush.msrb.mxu0 %v1598_v56  ;;  %v1538_v55 = vld [vmem:[%s4774_s6 + $0x208] sm:$0xff] }
 0x6fb   :  { %1850 = vmatpush.msrb.mxu3 %v1566_v61  ;;  %1873 = vmatpush.msrb.mxu2 %v1582_v29  ;;  %v1572_v61 = vld [vmem:[%s4774_s6 + $0x318] sm:$0xff]  ;;  %v1585_v29 = vld [vmem:[%s4774_s6 + $0x380] sm:$0xff] }
 0x6fc   :  { %1828 = vmatpush.msra.mxu1 %v1549_v59  ;;  %1897 = vmatpush.msrb.mxu0 %v1597_v60  ;;  %v1537_v59 = vld [vmem:[%s4774_s6 + $0x200] sm:$0xff]  ;;  %v1556_v60 = vld [vmem:[%s4774_s6 + $0x298] sm:$0xff] }
 0x6fd   :  { %1851 = vmatpush.msrb.mxu3 %v1565_v0  ;;  %1874 = vmatpush.msrb.mxu2 %v1581_v1  ;;  %v1555_v0 = vld [vmem:[%s4774_s6 + $0x290] sm:$0xff] }
 0x6fe   :  { %1829 = vmatpush.msra.mxu1 %v1548_v62  ;;  %1898 = vmatpush.msrb.mxu0 %v1596_v63  ;;  %v1616_v62 = vld [vmem:[%s4774_s6 + $0x478] sm:$0xff]  ;;  %v1571_v1 = vld [vmem:[%s4774_s6 + $0x310] sm:$0xff] }
 0x6ff   :  { %1852 = vmatpush.msrb.mxu3 %v1564_v34  ;;  %1875 = vmatpush.msrb.mxu2 %v1580_v3  ;;  %v1664_v63 = vld [vmem:[%s4774_s6 + $0x5f8] sm:$0xff]  ;;  %v1554_v34 = vld [vmem:[%s4774_s6 + $0x288] sm:$0xff] }
 0x700   :  { %1830 = vmatpush.msra.mxu1 %v1547_v2  ;;  %1899 = vmatpush.msrb.mxu0 %v1595_v39  ;;  %v1615_v2 = vld [vmem:[%s4774_s6 + $0x470] sm:$0xff]  ;;  %v1570_v3 = vld [vmem:[%s4774_s6 + $0x308] sm:$0xff] }
 0x701   :  { %1853 = vmatpush.msrb.mxu3 %v1563_v7  ;;  %1876 = vmatpush.msrb.mxu2 %v1579_v8  ;;  %v1663_v39 = vld [vmem:[%s4774_s6 + $0x5f0] sm:$0xff]  ;;  %v1553_v7 = vld [vmem:[%s4774_s6 + $0x280] sm:$0xff] }
 0x702   :  { %1831 = vmatpush.msra.mxu1 %v1546_v4  ;;  %1900 = vmatpush.msrb.mxu0 %v1594_v5  ;;  %v1614_v4 = vld [vmem:[%s4774_s6 + $0x468] sm:$0xff]  ;;  %v1569_v8 = vld [vmem:[%s4774_s6 + $0x300] sm:$0xff] }
 0x703   :  { %1854 = vmatpush.msrb.mxu3 %v1562_v12  ;;  %1877 = vmatpush.msrb.mxu2 %v1578_v13  ;;  %v1662_v5 = vld [vmem:[%s4774_s6 + $0x5e8] sm:$0xff]  ;;  %v1648_v12 = vld [vmem:[%s4774_s6 + $0x578] sm:$0xff]  ;;  %v1661_v13 = vld [vmem:[%s4774_s6 + $0x5e0] sm:$0xff] }
 0x704   :  { %1832 = vmatpush.msra.mxu1 %v1545_v10  ;;  %1901 = vmatpush.msrb.mxu0 %v1593_v11  ;;  %v1613_v10 = vld [vmem:[%s4774_s6 + $0x460] sm:$0xff]  ;;  %v1632_v11 = vld [vmem:[%s4774_s6 + $0x4f8] sm:$0xff] }
 0x705   :  { %v1090_v22 = vpop.f32.mrf.mxu1  ;;  %1855 = vmatpush.msrb.mxu3 %v1561_v18  ;;  %1878 = vmatpush.msrb.mxu2 %v1577_v19  ;;  %v1647_v18 = vld [vmem:[%s4774_s6 + $0x570] sm:$0xff]  ;;  %v1660_v19 = vld [vmem:[%s4774_s6 + $0x5d8] sm:$0xff] }
 0x706   :  { %1833 = vmatpush.msra.mxu1 %v1544_v15  ;;  %1902 = vmatpush.msrb.mxu0 %v1592_v16  ;;  %v1091_v9 = vadd.f32 %v1090_v22, %v1035_v14  ;;  %v1159_v26 = vpop.f32.mrf.mxu0  ;;  %v1612_v15 = vld [vmem:[%s4774_s6 + $0x458] sm:$0xff]  ;;  %v1631_v16 = vld [vmem:[%s4774_s6 + $0x4f0] sm:$0xff]  ;;  %v1646_v22 = vld [vmem:[%s4774_s6 + $0x568] sm:$0xff] }
 0x707   :  { %v1160_v30 = vadd.f32 %v1159_v26, %v1038_v17  ;;  %1856 = vmatpush.msrb.mxu3 %v1560_v23  ;;  %1879 = vmatpush.msrb.mxu2 %v1576_v24  ;;  %v1659_v23 = vld [vmem:[%s4774_s6 + $0x5d0] sm:$0xff]  ;;  %v1610_v24 = vld [vmem:[%s4774_s6 + $0x448] sm:$0xff]  ;;  %v1645_v26 = vld [vmem:[%s4774_s6 + $0x560] sm:$0xff] }
 0x708   :  { %1834 = vmatpush.msra.mxu1 %v1543_v20  ;;  %1903 = vmatpush.msrb.mxu0 %v1591_v21  ;;  %v1441_v32 = vmax.f32 %v1091_v9, 0.0  ;;  %v1611_v20 = vld [vmem:[%s4774_s6 + $0x450] sm:$0xff]  ;;  %v1630_v21 = vld [vmem:[%s4774_s6 + $0x4e8] sm:$0xff]  ;;  %v1629_v9 = vld [vmem:[%s4774_s6 + $0x4e0] sm:$0xff] }
 0x709   :  { %v1444_v36 = vmax.f32 %v1160_v30, 0.0  ;;  %1857 = vmatpush.msrb.mxu3 %v1559_v31  ;;  %1880 = vmatpush.msrb.mxu2 %v1575_v41  ;;  %v1628_v30 = vld [vmem:[%s4774_s6 + $0x4d8] sm:$0xff] }
 0x70a   :  { %1835 = vmatpush.msra.mxu1 %v1542_v27  ;;  %1904 = vmatpush.msrb.mxu0 %v1590_v28  ;;  %v1658_v27 = vld [vmem:[%s4774_s6 + $0x5c8] sm:$0xff]  ;;  %v1609_v28 = vld [vmem:[%s4774_s6 + $0x440] sm:$0xff]  ;;  %v1644_v31 = vld [vmem:[%s4774_s6 + $0x558] sm:$0xff] }
 0x70b   :  { %1749 = vmatmul.f32.vlgmr.msrb.gmra.mxu1 %v1441_v32  ;;  %1818 = vmatmul.f32.vlgmr.msra.gmra.mxu0 %v1444_v36  ;;  %v1113_v44 = vpop.f32.mrf.mxu3  ;;  %v1657_v32 = vld [vmem:[%s4774_s6 + $0x5c0] sm:$0xff]  ;;  %v1627_v36 = vld [vmem:[%s4774_s6 + $0x4d0] sm:$0xff]  ;;  %v1656_v41 = vld [vmem:[%s4774_s6 + $0x5b8] sm:$0xff] }
 0x70c   :  { %1836 = vmatpush.msra.mxu1 %v1541_v35  ;;  %v1114_v48 = vadd.f32 %v1113_v44, %v1036_v33  ;;  %v1136_v49 = vpop.f32.mrf.mxu2  ;;  %1905 = vmatpush.msrb.mxu0 %v1589_v40  ;;  %v1608_v35 = vld [vmem:[%s4774_s6 + $0x438] sm:$0xff]  ;;  %v1643_v40 = vld [vmem:[%s4774_s6 + $0x550] sm:$0xff]  ;;  %v1642_v44 = vld [vmem:[%s4774_s6 + $0x548] sm:$0xff] }
 0x70d   :  { %v1137_v52 = vadd.f32 %v1136_v49, %v1037_v38  ;;  %1858 = vmatpush.msrb.mxu3 %v1558_v43  ;;  %1881 = vmatpush.msrb.mxu2 %v1574_v47  ;;  %v1626_v43 = vld [vmem:[%s4774_s6 + $0x4c8] sm:$0xff]  ;;  %v1641_v49 = vld [vmem:[%s4774_s6 + $0x540] sm:$0xff] }
 0x70e   :  { %1837 = vmatpush.msra.mxu1 %v1540_v42  ;;  %v1442_v54 = vmax.f32 %v1114_v48, 0.0  ;;  %1906 = vmatpush.msrb.mxu0 %v1588_v45  ;;  %v1607_v42 = vld [vmem:[%s4774_s6 + $0x430] sm:$0xff]  ;;  %v1606_v47 = vld [vmem:[%s4774_s6 + $0x428] sm:$0xff]  ;;  %v1625_v48 = vld [vmem:[%s4774_s6 + $0x4c0] sm:$0xff] }
 0x70f   :  { %v1443_v56 = vmax.f32 %v1137_v52, 0.0  ;;  %1859 = vmatpush.msrb.mxu3 %v1557_v51  ;;  %1882 = vmatpush.msrb.mxu2 %v1573_v57  ;;  %v1655_v45 = vld [vmem:[%s4774_s6 + $0x5b0] sm:$0xff]  ;;  %v1605_v51 = vld [vmem:[%s4774_s6 + $0x420] sm:$0xff]  ;;  %v1624_v52 = vld [vmem:[%s4774_s6 + $0x4b8] sm:$0xff] }
 0x710   :  { %1838 = vmatpush.msra.mxu1 %v1539_v50  ;;  %1772 = vmatmul.f32.vlgmr.msra.gmra.mxu3 %v1442_v54  ;;  %v1654_v50 = vld [vmem:[%s4774_s6 + $0x5a8] sm:$0xff]  ;;  %v1653_v54 = vld [vmem:[%s4774_s6 + $0x5a0] sm:$0xff]  ;;  %v1639_v57 = vld [vmem:[%s4774_s6 + $0x530] sm:$0xff] }
 0x711   :  { %1907 = vmatpush.msrb.mxu0 %v1587_v53  ;;  %1795 = vmatmul.f32.vlgmr.msra.gmra.mxu2 %v1443_v56  ;;  %v1640_v53 = vld [vmem:[%s4774_s6 + $0x538] sm:$0xff]  ;;  %v1623_v56 = vld [vmem:[%s4774_s6 + $0x4b0] sm:$0xff] }
 0x712   :  { %1839 = vmatpush.msra.mxu1 %v1538_v55  ;;  %1860 = vmatpush.msrb.mxu3 %v1556_v60  ;;  %v1604_v55 = vld [vmem:[%s4774_s6 + $0x418] sm:$0xff]  ;;  %v1622_v60 = vld [vmem:[%s4774_s6 + $0x4a8] sm:$0xff] }
 0x713   :  { %1908 = vmatpush.msrb.mxu0 %v1586_v58  ;;  %1883 = vmatpush.msrb.mxu2 %v1572_v61  ;;  %v1652_v58 = vld [vmem:[%s4774_s6 + $0x598] sm:$0xff]  ;;  %v1638_v61 = vld [vmem:[%s4774_s6 + $0x528] sm:$0xff] }
 0x714   :  { %1840 = vmatpush.msra.mxu1 %v1537_v59  ;;  %1861 = vmatpush.msrb.mxu3 %v1555_v0  ;;  %v1603_v59 = vld [vmem:[%s4774_s6 + $0x410] sm:$0xff]  ;;  %v1637_v0 = vld [vmem:[%s4774_s6 + $0x520] sm:$0xff] }
 0x715   :  { %1909 = vmatpush.msrb.mxu0 %v1585_v29  ;;  %1884 = vmatpush.msrb.mxu2 %v1571_v1  ;;  %v1651_v29 = vld [vmem:[%s4774_s6 + $0x590] sm:$0xff]  ;;  %v1650_v1 = vld [vmem:[%s4774_s6 + $0x588] sm:$0xff] }
 0x716   :  { %1917 = vmatpush.msrb.mxu1 %v1616_v62  ;;  %1862 = vmatpush.msrb.mxu3 %v1554_v34  ;;  %v1602_v62 = vld [vmem:[%s4774_s6 + $0x408] sm:$0xff]  ;;  %v1636_v34 = vld [vmem:[%s4774_s6 + $0x518] sm:$0xff] }
 0x717   :  { %1986 = vmatpush.msra.mxu0 %v1664_v63  ;;  %1885 = vmatpush.msrb.mxu2 %v1570_v3  ;;  %v1621_v63 = vld [vmem:[%s4774_s6 + $0x4a0] sm:$0xff] }
 0x718   :  { %1918 = vmatpush.msrb.mxu1 %v1615_v2  ;;  %1863 = vmatpush.msrb.mxu3 %v1553_v7  ;;  %v1601_v2 = vld [vmem:[%s4774_s6 + $0x400] sm:$0xff]  ;;  %v1635_v7 = vld [vmem:[%s4774_s6 + $0x510] sm:$0xff] }
 0x719   :  { %1987 = vmatpush.msra.mxu0 %v1663_v39  ;;  %1886 = vmatpush.msrb.mxu2 %v1569_v8  ;;  %v1620_v39 = vld [vmem:[%s4774_s6 + $0x498] sm:$0xff]  ;;  %v1649_v3 = vld [vmem:[%s4774_s6 + $0x580] sm:$0xff] }
 0x71a   :  { %1919 = vmatpush.msrb.mxu1 %v1614_v4  ;;  %1940 = vmatpush.msra.mxu3 %v1632_v11  ;;  %v1619_v4 = vld [vmem:[%s4774_s6 + $0x490] sm:$0xff]  ;;  %v1618_v11 = vld [vmem:[%s4774_s6 + $0x488] sm:$0xff] }
 0x71b   :  { %1988 = vmatpush.msra.mxu0 %v1662_v5  ;;  %1963 = vmatpush.msra.mxu2 %v1648_v12 }
 0x71c   :  { %1920 = vmatpush.msrb.mxu1 %v1613_v10  ;;  %1941 = vmatpush.msra.mxu3 %v1631_v16  ;;  %v1617_v16 = vld [vmem:[%s4774_s6 + $0x480] sm:$0xff] }
 0x71d   :  { %1989 = vmatpush.msra.mxu0 %v1661_v13  ;;  %1964 = vmatpush.msra.mxu2 %v1647_v18  ;;  %v1634_v13 = vld [vmem:[%s4774_s6 + $0x508] sm:$0xff] }
 0x71e   :  { %1921 = vmatpush.msrb.mxu1 %v1612_v15  ;;  %1942 = vmatpush.msra.mxu3 %v1630_v21  ;;  %v1042_v21 = vperm.slane %v4914_v6, 7 }
 0x71f   :  { %1990 = vmatpush.msra.mxu0 %v1660_v19  ;;  %1965 = vmatpush.msra.mxu2 %v1646_v22  ;;  %v1633_v19 = vld [vmem:[%s4774_s6 + $0x500] sm:$0xff] }
 0x720   :  { %1922 = vmatpush.msrb.mxu1 %v1611_v20  ;;  %1943 = vmatpush.msra.mxu3 %v1629_v9  ;;  %v1039_v20 = vperm.slane %v4914_v6, 4 }
 0x721   :  { %1991 = vmatpush.msra.mxu0 %v1659_v23  ;;  %1966 = vmatpush.msra.mxu2 %v1645_v26 }
 0x722   :  { %1923 = vmatpush.msrb.mxu1 %v1610_v24  ;;  %1944 = vmatpush.msra.mxu3 %v1628_v30 }
 0x723   :  { %1992 = vmatpush.msra.mxu0 %v1658_v27  ;;  %1967 = vmatpush.msra.mxu2 %v1644_v31 }
 0x724   :  { %1924 = vmatpush.msrb.mxu1 %v1609_v28  ;;  %1945 = vmatpush.msra.mxu3 %v1627_v36  ;;  %v1041_v36 = vperm.slane %v4914_v6, 6 }
 0x725   :  { %1993 = vmatpush.msra.mxu0 %v1657_v32  ;;  %1968 = vmatpush.msra.mxu2 %v1643_v40  ;;  %v1040_v32 = vperm.slane %v4914_v6, 5  ;;  %v1679_v40 = vld [vmem:[%s4774_s6 + $0x670] sm:$0xff]  ;;  %v1726_v6 = vld [vmem:[%s4774_s6 + $0x7e8] sm:$0xff] }
 0x726   :  { %1925 = vmatpush.msrb.mxu1 %v1608_v35  ;;  %1946 = vmatpush.msra.mxu3 %v1626_v43 }
 0x727   :  { %1994 = vmatpush.msra.mxu0 %v1656_v41  ;;  %1969 = vmatpush.msra.mxu2 %v1642_v44 }
 0x728   :  { %1926 = vmatpush.msrb.mxu1 %v1607_v42  ;;  %1947 = vmatpush.msra.mxu3 %v1625_v48  ;;  %v1727_v42 = vld [vmem:[%s4774_s6 + $0x7f0] sm:$0xff] }
 0x729   :  { %1995 = vmatpush.msra.mxu0 %v1655_v45  ;;  %1970 = vmatpush.msra.mxu2 %v1641_v49  ;;  %v1678_v45 = vld [vmem:[%s4774_s6 + $0x668] sm:$0xff] }
 0x72a   :  { %1927 = vmatpush.msrb.mxu1 %v1606_v47  ;;  %1948 = vmatpush.msra.mxu3 %v1624_v52  ;;  %v1677_v52 = vld [vmem:[%s4774_s6 + $0x660] sm:$0xff] }
 0x72b   :  { %1996 = vmatpush.msra.mxu0 %v1654_v50  ;;  %1971 = vmatpush.msra.mxu2 %v1640_v53 }
 0x72c   :  { %1928 = vmatpush.msrb.mxu1 %v1605_v51  ;;  %1949 = vmatpush.msra.mxu3 %v1623_v56  ;;  %v1712_v56 = vld [vmem:[%s4774_s6 + $0x778] sm:$0xff] }
 0x72d   :  { %1997 = vmatpush.msra.mxu0 %v1653_v54  ;;  %1972 = vmatpush.msra.mxu2 %v1639_v57  ;;  %v5059_v57 = vld [vmem:[%s4895_s10 + $0x8] sm:$0xff]  ;;  %s4447_s10 = smov 29  }
 0x72e   :  { %1929 = vmatpush.msrb.mxu1 %v1604_v55  ;;  %1950 = vmatpush.msra.mxu3 %v1622_v60  ;;  %v1696_v55 = vld [vmem:[%s4774_s6 + $0x6f8] sm:$0xff]  ;;  %s5576_s25 = sld [smem:[%s5826_s0 + %s4447_s10]]  }
 0x72f   :  { %1998 = vmatpush.msra.mxu0 %v1652_v58  ;;  %1973 = vmatpush.msra.mxu2 %v1638_v61  ;;  %v1725_v58 = vld [vmem:[%s4774_s6 + $0x7e0] sm:$0xff]  ;;  %v1676_v61 = vld [vmem:[%s4774_s6 + $0x658] sm:$0xff] }
 0x730   :  { %1930 = vmatpush.msrb.mxu1 %v1603_v59  ;;  %1951 = vmatpush.msra.mxu3 %v1621_v63  ;;  %v1043_v63 = vperm.slane %v5059_v57, 0 }
 0x731   :  { %1999 = vmatpush.msra.mxu0 %v1651_v29  ;;  %1974 = vmatpush.msra.mxu2 %v1637_v0  ;;  %v1695_v29 = vld [vmem:[%s4774_s6 + $0x6f0] sm:$0xff] }
 0x732   :  { %1931 = vmatpush.msrb.mxu1 %v1602_v62  ;;  %1952 = vmatpush.msra.mxu3 %v1620_v39  ;;  %v1711_v62 = vld [vmem:[%s4774_s6 + $0x770] sm:$0xff] }
 0x733   :  { %2000 = vmatpush.msra.mxu0 %v1650_v1  ;;  %v1093_v5 = vpop.f32.mrf.mxu1  ;;  %1975 = vmatpush.msra.mxu2 %v1636_v34  ;;  %v1724_v1 = vld [vmem:[%s4774_s6 + $0x7d8] sm:$0xff]  ;;  %v1675_v39 = vld [vmem:[%s4774_s6 + $0x650] sm:$0xff] }
 0x734   :  { %1932 = vmatpush.msrb.mxu1 %v1601_v2  ;;  %v1094_v8 = vadd.f32 %v1093_v5, %v1035_v14  ;;  %v1162_v10 = vpop.f32.mrf.mxu0  ;;  %1953 = vmatpush.msra.mxu3 %v1619_v4  ;;  %v1046_v2 = vperm.slane %v5059_v57, 3  ;;  %v1694_v4 = vld [vmem:[%s4774_s6 + $0x6e8] sm:$0xff] }
 0x735   :  { %2001 = vmatpush.msra.mxu0 %v1649_v3  ;;  %v1163_v12 = vadd.f32 %v1162_v10, %v1038_v17  ;;  %1976 = vmatpush.msra.mxu2 %v1635_v7  ;;  %v1710_v5 = vld [vmem:[%s4774_s6 + $0x768] sm:$0xff]  ;;  %v1723_v10 = vld [vmem:[%s4774_s6 + $0x7d0] sm:$0xff] }
 0x736   :  { %v1457_v15 = vmax.f32 %v1094_v8, 0.0  ;;  %1954 = vmatpush.msra.mxu3 %v1618_v11  ;;  %v1674_v11 = vld [vmem:[%s4774_s6 + $0x648] sm:$0xff] }
 0x737   :  { %v1460_v18 = vmax.f32 %v1163_v12, 0.0  ;;  %1977 = vmatpush.msra.mxu2 %v1634_v13 }
 0x738   :  { %1752 = vmatmul.f32.gmra.mxu1 %v1457_v15  ;;  %1955 = vmatpush.msra.mxu3 %v1617_v16  ;;  %v1693_v15 = vld [vmem:[%s4774_s6 + $0x6e0] sm:$0xff] }
 0x739   :  { %1821 = vmatmul.f32.gmra.mxu0 %v1460_v18  ;;  %v1116_v14 = vpop.f32.mrf.mxu3  ;;  %1978 = vmatpush.msra.mxu2 %v1633_v19  ;;  %v1709_v16 = vld [vmem:[%s4774_s6 + $0x760] sm:$0xff] }
 0x73a   :  { %v1117_v17 = vadd.f32 %v1116_v14, %v1036_v33  ;;  %v1139_v22 = vpop.f32.mrf.mxu2  ;;  %v1680_v33 = vld [vmem:[%s4774_s6 + $0x678] sm:$0xff] }
 0x73b   :  { %v1140_v23 = vadd.f32 %v1139_v22, %v1037_v38  ;;  %v1182_v24 = vpop.f32.mrf.mxu1  ;;  %v1728_v38 = vld [vmem:[%s4774_s6 + $0x7f8] sm:$0xff] }
 0x73c   :  { %v1183_v9 = vadd.f32 %v1182_v24, %v1039_v20  ;;  %v1251_v26 = vpop.f32.mrf.mxu0  ;;  %v1458_v27 = vmax.f32 %v1117_v17, 0.0  ;;  %v1044_v17 = vperm.slane %v5059_v57, 1  ;;  %v1708_v24 = vld [vmem:[%s4774_s6 + $0x758] sm:$0xff] }
 0x73d   :  { %v1252_v28 = vadd.f32 %v1251_v26, %v1042_v21  ;;  %v1459_v30 = vmax.f32 %v1140_v23, 0.0  ;;  %v1692_v23 = vld [vmem:[%s4774_s6 + $0x6d8] sm:$0xff] }
 0x73e   :  { %v1445_v31 = vmax.f32 %v1183_v9, 0.0  ;;  %1775 = vmatmul.f32.gmra.mxu3 %v1458_v27  ;;  %v1045_v9 = vperm.slane %v5059_v57, 2  ;;  %v1721_v27 = vld [vmem:[%s4774_s6 + $0x7c0] sm:$0xff] }
 0x73f   :  { %v1448_v35 = vmax.f32 %v1252_v28, 0.0  ;;  %1798 = vmatmul.f32.gmra.mxu2 %v1459_v30  ;;  %v1672_v30 = vld [vmem:[%s4774_s6 + $0x638] sm:$0xff] }
 0x740   :  { %1841 = vmatmul.f32.vlgmr.msra.gmra.mxu1 %v1445_v31 }
 0x741   :  { %1910 = vmatmul.f32.vlgmr.msrb.gmra.mxu0 %v1448_v35  ;;  %v1205_v41 = vpop.f32.mrf.mxu3  ;;  %2009 = vmatpush.msra.mxu1 %v1680_v33  ;;  %v1691_v33 = vld [vmem:[%s4774_s6 + $0x6d0] sm:$0xff] }
 0x742   :  { %v1206_v43 = vadd.f32 %v1205_v41, %v1040_v32  ;;  %v1228_v44 = vpop.f32.mrf.mxu2  ;;  %2078 = vmatpush.msrb.mxu0 %v1728_v38  ;;  %v1707_v35 = vld [vmem:[%s4774_s6 + $0x750] sm:$0xff]  ;;  %v1720_v38 = vld [vmem:[%s4774_s6 + $0x7b8] sm:$0xff] }
 0x743   :  { %v1229_v47 = vadd.f32 %v1228_v44, %v1041_v36  ;;  %v1185_v48 = vpop.f32.mrf.mxu1  ;;  %2010 = vmatpush.msra.mxu1 %v1679_v40  ;;  %v1671_v41 = vld [vmem:[%s4774_s6 + $0x630] sm:$0xff]  ;;  %v1706_v44 = vld [vmem:[%s4774_s6 + $0x748] sm:$0xff] }
 0x744   :  { %v1446_v49 = vmax.f32 %v1206_v43, 0.0  ;;  %v1186_v50 = vadd.f32 %v1185_v48, %v1039_v20  ;;  %v1254_v51 = vpop.f32.mrf.mxu0  ;;  %2079 = vmatpush.msrb.mxu0 %v1727_v42  ;;  %v1722_v20 = vld [vmem:[%s4774_s6 + $0x7c8] sm:$0xff] }
 0x745   :  { %v1447_v53 = vmax.f32 %v1229_v47, 0.0  ;;  %v1255_v54 = vadd.f32 %v1254_v51, %v1042_v21  ;;  %2011 = vmatpush.msra.mxu1 %v1678_v45  ;;  %v1673_v21 = vld [vmem:[%s4774_s6 + $0x640] sm:$0xff]  ;;  %v1690_v43 = vld [vmem:[%s4774_s6 + $0x6c8] sm:$0xff]  ;;  %v1719_v47 = vld [vmem:[%s4774_s6 + $0x7b0] sm:$0xff] }
 0x746   :  { %2080 = vmatpush.msrb.mxu0 %v1726_v6  ;;  %1864 = vmatmul.f32.vlgmr.msrb.gmra.mxu3 %v1446_v49  ;;  %v1461_v59 = vmax.f32 %v1186_v50, 0.0  ;;  %v1670_v48 = vld [vmem:[%s4774_s6 + $0x628] sm:$0xff]  ;;  %v1689_v50 = vld [vmem:[%s4774_s6 + $0x6c0] sm:$0xff] }
 0x747   :  { %1887 = vmatmul.f32.vlgmr.msrb.gmra.mxu2 %v1447_v53  ;;  %2012 = vmatpush.msra.mxu1 %v1677_v52  ;;  %v1464_v60 = vmax.f32 %v1255_v54, 0.0  ;;  %v1705_v51 = vld [vmem:[%s4774_s6 + $0x740] sm:$0xff]  ;;  %v1718_v53 = vld [vmem:[%s4774_s6 + $0x7a8] sm:$0xff] }
 0x748   :  { %2032 = vmatpush.msrb.mxu3 %v1696_v55  ;;  %2055 = vmatpush.msrb.mxu2 %v1712_v56  ;;  %v1669_v54 = vld [vmem:[%s4774_s6 + $0x620] sm:$0xff]  ;;  %v1688_v55 = vld [vmem:[%s4774_s6 + $0x6b8] sm:$0xff] }
 0x749   :  { %2081 = vmatpush.msrb.mxu0 %v1725_v58  ;;  %1844 = vmatmul.f32.gmra.mxu1 %v1461_v59  ;;  %v1208_v0 = vpop.f32.mrf.mxu3  ;;  %v1704_v56 = vld [vmem:[%s4774_s6 + $0x738] sm:$0xff] }
 0x74a   :  { %1913 = vmatmul.f32.gmra.mxu0 %v1464_v60  ;;  %v1209_v34 = vadd.f32 %v1208_v0, %v1040_v32  ;;  %v1231_v3 = vpop.f32.mrf.mxu2  ;;  %2013 = vmatpush.msra.mxu1 %v1676_v61  ;;  %v1717_v60 = vld [vmem:[%s4774_s6 + $0x7a0] sm:$0xff] }
 0x74b   :  { %v1232_v7 = vadd.f32 %v1231_v3, %v1041_v36  ;;  %2033 = vmatpush.msrb.mxu3 %v1695_v29  ;;  %2056 = vmatpush.msrb.mxu2 %v1711_v62  ;;  %v1274_v8 = vpop.f32.mrf.mxu1  ;;  %v1668_v62 = vld [vmem:[%s4774_s6 + $0x618] sm:$0xff] }
 0x74c   :  { %2082 = vmatpush.msrb.mxu0 %v1724_v1  ;;  %v1275_v12 = vadd.f32 %v1274_v8, %v1043_v63  ;;  %v1343_v13 = vpop.f32.mrf.mxu0  ;;  %2014 = vmatpush.msra.mxu1 %v1675_v39  ;;  %v1462_v18 = vmax.f32 %v1209_v34, 0.0  ;;  %v1703_v39 = vld [vmem:[%s4774_s6 + $0x730] sm:$0xff]  ;;  %v1050_v34 = vperm.slane %v5059_v57, 7  ;;  %v1686_v8 = vld [vmem:[%s4774_s6 + $0x6a8] sm:$0xff] }
 0x74d   :  { %v1344_v19 = vadd.f32 %v1343_v13, %v1046_v2  ;;  %2034 = vmatpush.msrb.mxu3 %v1694_v4  ;;  %2057 = vmatpush.msrb.mxu2 %v1710_v5  ;;  %v1463_v14 = vmax.f32 %v1232_v7, 0.0  ;;  %v1716_v5 = vld [vmem:[%s4774_s6 + $0x798] sm:$0xff]  ;;  %v1667_v7 = vld [vmem:[%s4774_s6 + $0x610] sm:$0xff]  ;;  %v1666_v13 = vld [vmem:[%s4774_s6 + $0x608] sm:$0xff] }
 0x74e   :  { %2083 = vmatpush.msrb.mxu0 %v1723_v10  ;;  %2015 = vmatpush.msra.mxu1 %v1674_v11  ;;  %v1449_v22 = vmax.f32 %v1275_v12, 0.0  ;;  %v1702_v10 = vld [vmem:[%s4774_s6 + $0x728] sm:$0xff]  ;;  %v1715_v12 = vld [vmem:[%s4774_s6 + $0x790] sm:$0xff] }
 0x74f   :  { %2035 = vmatpush.msrb.mxu3 %v1693_v15  ;;  %2058 = vmatpush.msrb.mxu2 %v1709_v16  ;;  %v1452_v26 = vmax.f32 %v1344_v19, 0.0  ;;  %v1685_v16 = vld [vmem:[%s4774_s6 + $0x6a0] sm:$0xff] }
 0x750   :  { %2084 = vmatpush.msrb.mxu0 %v1722_v20  ;;  %1867 = vmatmul.f32.gmra.mxu3 %v1462_v18  ;;  %v1701_v18 = vld [vmem:[%s4774_s6 + $0x720] sm:$0xff]  ;;  %v1714_v20 = vld [vmem:[%s4774_s6 + $0x788] sm:$0xff] }
 0x751   :  { %1890 = vmatmul.f32.gmra.mxu2 %v1463_v14  ;;  %2016 = vmatpush.msra.mxu1 %v1673_v21  ;;  %v1297_v28 = vpop.f32.mrf.mxu3  ;;  %v1048_v21 = vperm.slane %v5059_v57, 5 }
 0x752   :  { %2036 = vmatpush.msrb.mxu3 %v1692_v23  ;;  %2059 = vmatpush.msrb.mxu2 %v1708_v24  ;;  %v1298_v31 = vadd.f32 %v1297_v28, %v1044_v17  ;;  %v1320_v32 = vpop.f32.mrf.mxu2  ;;  %v1049_v23 = vperm.slane %v5059_v57, 6 }
 0x753   :  { %2085 = vmatpush.msrb.mxu0 %v1721_v27  ;;  %1933 = vmatmul.f32.vlgmr.msrb.gmra.mxu1 %v1449_v22  ;;  %v1321_v36 = vadd.f32 %v1320_v32, %v1045_v9  ;;  %v1277_v40 = vpop.f32.mrf.mxu1  ;;  %v1665_v22 = vld [vmem:[%s4774_s6 + $0x600] sm:$0xff]  ;;  %v1700_v27 = vld [vmem:[%s4774_s6 + $0x718] sm:$0xff] }
 0x754   :  { %2002 = vmatmul.f32.vlgmr.msra.gmra.mxu0 %v1452_v26  ;;  %2017 = vmatpush.msra.mxu1 %v1672_v30  ;;  %v1346_v42 = vpop.f32.mrf.mxu0  ;;  %v1278_v45 = vadd.f32 %v1277_v40, %v1043_v63  ;;  %v1450_v6 = vmax.f32 %v1298_v31, 0.0  ;;  %v1047_v63 = vperm.slane %v5059_v57, 4  ;;  %v1684_v26 = vld [vmem:[%s4774_s6 + $0x698] sm:$0xff]  ;;  %v1713_v30 = vld [vmem:[%s4774_s6 + $0x780] sm:$0xff]  ;;  %v1682_v40 = vld [vmem:[%s4774_s6 + $0x688] sm:$0xff] }
 0x755   :  { %2037 = vmatpush.msrb.mxu3 %v1691_v33  ;;  %2060 = vmatpush.msrb.mxu2 %v1707_v35  ;;  %v1347_v49 = vadd.f32 %v1346_v42, %v1046_v2  ;;  %v1451_v52 = vmax.f32 %v1321_v36, 0.0  ;;  %v1687_v2 = vld [vmem:[%s4774_s6 + $0x6b0] sm:$0xff]  ;;  %v1698_v42 = vld [vmem:[%s4774_s6 + $0x708] sm:$0xff] }
 0x756   :  { %2086 = vmatpush.msrb.mxu0 %v1720_v38  ;;  %2018 = vmatpush.msra.mxu1 %v1671_v41  ;;  %v1465_v58 = vmax.f32 %v1278_v45, 0.0  ;;  %v1683_v33 = vld [vmem:[%s4774_s6 + $0x690] sm:$0xff] }
 0x757   :  { %2038 = vmatpush.msrb.mxu3 %v1690_v43  ;;  %2061 = vmatpush.msrb.mxu2 %v1706_v44  ;;  %v1468_v61 = vmax.f32 %v1347_v49, 0.0  ;;  %v1699_v36 = vld [vmem:[%s4774_s6 + $0x710] sm:$0xff]  ;;  %v1681_v44 = vld [vmem:[%s4774_s6 + $0x680] sm:$0xff] }
 0x758   :  { %2087 = vmatpush.msrb.mxu0 %v1719_v47  ;;  %2019 = vmatpush.msra.mxu1 %v1670_v48  ;;  %v1697_v47 = vld [vmem:[%s4774_s6 + $0x700] sm:$0xff]  ;;  %s4446_s6 = smov 27  }
 0x759   :  { %2039 = vmatpush.msrb.mxu3 %v1689_v50  ;;  %2062 = vmatpush.msrb.mxu2 %v1705_v51  ;;  %v1300_v59 = vpop.f32.mrf.mxu3  ;;  %s5538_s9 = sld [smem:[%s5826_s0 + %s4446_s6]]  }
 0x75a   :  { %2088 = vmatpush.msrb.mxu0 %v1718_v53  ;;  %1956 = vmatmul.f32.vlgmr.msra.gmra.mxu3 %v1450_v6  ;;  %v1323_v29 = vpop.f32.mrf.mxu2  ;;  %v1301_v1 = vadd.f32 %v1300_v59, %v1044_v17 }
 0x75b   :  { %1979 = vmatmul.f32.vlgmr.msra.gmra.mxu2 %v1451_v52  ;;  %2020 = vmatpush.msra.mxu1 %v1669_v54  ;;  %v1366_v0 = vpop.f32.mrf.mxu1  ;;  %v1324_v4 = vadd.f32 %v1323_v29, %v1045_v9 }
 0x75c   :  { %2040 = vmatpush.msrb.mxu3 %v1688_v55  ;;  %2063 = vmatpush.msrb.mxu2 %v1704_v56  ;;  %v1435_v3 = vpop.f32.mrf.mxu0  ;;  %v1367_v11 = vadd.f32 %v1366_v0, %v1047_v63  ;;  %v1466_v19 = vmax.f32 %v1301_v1, 0.0 }
 0x75d   :  { %2089 = vmatpush.msrb.mxu0 %v1717_v60  ;;  %1936 = vmatmul.f32.gmra.mxu1 %v1465_v58  ;;  %v1436_v15 = vadd.f32 %v1435_v3, %v1050_v34  ;;  %v1467_v14 = vmax.f32 %v1324_v4, 0.0 }
 0x75e   :  { %2005 = vmatmul.f32.gmra.mxu0 %v1468_v61  ;;  %2021 = vmatpush.msra.mxu1 %v1668_v62  ;;  %v1453_v9 = vmax.f32 %v1367_v11, 0.0 }
 0x75f   :  { %2041 = vmatpush.msrb.mxu3 %v1687_v2  ;;  %2064 = vmatpush.msrb.mxu2 %v1703_v39  ;;  %v1456_v28 = vmax.f32 %v1436_v15, 0.0 }
 0x760   :  { %2090 = vmatpush.msrb.mxu0 %v1716_v5  ;;  %2022 = vmatpush.msra.mxu1 %v1667_v7 }
 0x761   :  { %2042 = vmatpush.msrb.mxu3 %v1686_v8  ;;  %2065 = vmatpush.msrb.mxu2 %v1702_v10  ;;  %v1389_v17 = vpop.f32.mrf.mxu3 }
 0x762   :  { %2091 = vmatpush.msrb.mxu0 %v1715_v12  ;;  %2023 = vmatpush.msra.mxu1 %v1666_v13  ;;  %v1412_v24 = vpop.f32.mrf.mxu2  ;;  %v1390_v32 = vadd.f32 %v1389_v17, %v1048_v21 }
 0x763   :  { %2043 = vmatpush.msrb.mxu3 %v1685_v16  ;;  %2066 = vmatpush.msrb.mxu2 %v1701_v18  ;;  %v1369_v31 = vpop.f32.mrf.mxu1  ;;  %v1413_v35 = vadd.f32 %v1412_v24, %v1049_v23 }
 0x764   :  { %2092 = vmatpush.msrb.mxu0 %v1714_v20  ;;  %1959 = vmatmul.f32.gmra.mxu3 %v1466_v19  ;;  %v1438_v57 = vpop.f32.mrf.mxu0  ;;  %v1370_v38 = vadd.f32 %v1369_v31, %v1047_v63  ;;  %v1454_v43 = vmax.f32 %v1390_v32, 0.0  ;;  %v4314_v63 = vld [vmem:[%s4931_s28] ss:$0 sm:$0xff]  ;;  %s4448_s28 = smov 30  }
 0x765   :  { %1982 = vmatmul.f32.gmra.mxu2 %v1467_v14  ;;  %2024 = vmatpush.msra.mxu1 %v1665_v22  ;;  %v1439_v41 = vadd.f32 %v1438_v57, %v1050_v34  ;;  %v1455_v45 = vmax.f32 %v1413_v35, 0.0 }
 0x766   :  { %2044 = vmatpush.msrb.mxu3 %v1684_v26  ;;  %2067 = vmatpush.msrb.mxu2 %v1700_v27  ;;  %v1469_v6 = vmax.f32 %v1370_v38, 0.0 }
 0x767   :  { %2093 = vmatpush.msrb.mxu0 %v1713_v30  ;;  %2025 = vmatmul.f32.vlgmr.msra.gmra.mxu1 %v1453_v9  ;;  %v1472_v50 = vmax.f32 %v1439_v41, 0.0 }
 0x768   :  { %2094 = vmatmul.f32.vlgmr.msrb.gmra.mxu0 %v1456_v28  ;;  %2045 = vmatpush.msrb.mxu3 %v1683_v33 }
 0x769   :  { %2068 = vmatpush.msrb.mxu2 %v1699_v36  ;;  %v1392_v48 = vpop.f32.mrf.mxu3 }
 0x76a   :  { %2046 = vmatpush.msrb.mxu3 %v1682_v40  ;;  %v1415_v49 = vpop.f32.mrf.mxu2  ;;  %v1393_v51 = vadd.f32 %v1392_v48, %v1048_v21 }
 0x76b   :  { %2069 = vmatpush.msrb.mxu2 %v1698_v42  ;;  %v1416_v52 = vadd.f32 %v1415_v49, %v1049_v23 }
 0x76c   :  { %2047 = vmatpush.msrb.mxu3 %v1681_v44  ;;  %v1470_v53 = vmax.f32 %v1393_v51, 0.0 }
 0x76d   :  { %2070 = vmatpush.msrb.mxu2 %v1697_v47  ;;  %2048 = vmatmul.f32.vlgmr.msrb.gmra.mxu3 %v1454_v43  ;;  %v1471_v54 = vmax.f32 %v1416_v52, 0.0 }
 0x76e   :  { %2071 = vmatmul.f32.vlgmr.msrb.gmra.mxu2 %v1455_v45 }
 0x76f   :  { %2028 = vmatmul.f32.gmra.mxu1 %v1469_v6 }
 0x770   :  { %2097 = vmatmul.f32.gmra.mxu0 %v1472_v50 }
 0x775   :  { %2051 = vmatmul.f32.gmra.mxu3 %v1470_v53 }
 0x776   :  { %2074 = vmatmul.f32.gmra.mxu2 %v1471_v54 }
 0x788   :  { %v1750_v55 = vpop.f32.mrf.mxu1  ;;  %v1819_v56 = vpop.f32.mrf.mxu0 }
 0x789   :  { %v1751_v1 = vadd.f32 %v4314_v63, %v1750_v55 }
 0x793   :  { %v1773_v58 = vpop.f32.mrf.mxu3 }
 0x794   :  { %v1796_v59 = vpop.f32.mrf.mxu2  ;;  %v1774_v2 = vadd.f32 %v1773_v58, %v1751_v1 }
 0x796   :  { %v1797_v4 = vadd.f32 %v1796_v59, %v1774_v2 }
 0x798   :  { %v1820_v10 = vadd.f32 %v1819_v56, %v1797_v4 }
 0x7b5   :  { %v1753_v60 = vpop.f32.mrf.mxu1 }
 0x7b6   :  { %v1822_v61 = vpop.f32.mrf.mxu0  ;;  %v1754_v5 = vadd.f32 %v4314_v63, %v1753_v60 }
 0x7bd   :  { %v1842_v0 = vpop.f32.mrf.mxu1 }
 0x7be   :  { %v1911_v34 = vpop.f32.mrf.mxu0  ;;  %v1843_v11 = vadd.f32 %v1842_v0, %v1820_v10  ;;  %v2159_v10 = vld [vmem:[%s4102_s29] sm:$0xff] }
 0x7c1   :  { %v1776_v29 = vpop.f32.mrf.mxu3 }
 0x7c2   :  { %v1799_v62 = vpop.f32.mrf.mxu2  ;;  %v1777_v8 = vadd.f32 %v1776_v29, %v1754_v5 }
 0x7c4   :  { %v1800_v12 = vadd.f32 %v1799_v62, %v1777_v8  ;;  %v2160_v8 = vld [vmem:[%s4102_s29 + $0x8] sm:$0xff] }
 0x7c6   :  { %v1845_v7 = vpop.f32.mrf.mxu1  ;;  %v1823_v19 = vadd.f32 %v1822_v61, %v1800_v12 }
 0x7c7   :  { %v1914_v15 = vpop.f32.mrf.mxu0 }
 0x7c8   :  { %v1846_v21 = vadd.f32 %v1845_v7, %v1823_v19  ;;  %v2161_v7 = vld [vmem:[%s4102_s29 + $0x10] sm:$0xff] }
 0x7c9   :  { %v1865_v39 = vpop.f32.mrf.mxu3 }
 0x7ca   :  { %v1888_v3 = vpop.f32.mrf.mxu2  ;;  %v1866_v18 = vadd.f32 %v1865_v39, %v1843_v11 }
 0x7cc   :  { %v1889_v14 = vadd.f32 %v1888_v3, %v1866_v18 }
 0x7ce   :  { %v1912_v17 = vadd.f32 %v1911_v34, %v1889_v14 }
 0x7d0   :  { %v1934_v20 = vpop.f32.mrf.mxu1 }
 0x7d1   :  { %v2003_v24 = vpop.f32.mrf.mxu0  ;;  %v1935_v26 = vadd.f32 %v1934_v20, %v1912_v17 }
 0x7d3   :  { %v1868_v13 = vpop.f32.mrf.mxu3 }
 0x7d4   :  { %v1891_v16 = vpop.f32.mrf.mxu2  ;;  %v1869_v22 = vadd.f32 %v1868_v13, %v1846_v21 }
 0x7d6   :  { %v1892_v27 = vadd.f32 %v1891_v16, %v1869_v22 }
 0x7d8   :  { %v1915_v31 = vadd.f32 %v1914_v15, %v1892_v27 }
 0x7da   :  { %v1937_v28 = vpop.f32.mrf.mxu1 }
 0x7db   :  { %v2006_v57 = vpop.f32.mrf.mxu0  ;;  %v1938_v36 = vadd.f32 %v1937_v28, %v1915_v31 }
 0x7dd   :  { %v1957_v23 = vpop.f32.mrf.mxu3 }
 0x7de   :  { %v1980_v9 = vpop.f32.mrf.mxu2  ;;  %v1958_v30 = vadd.f32 %v1957_v23, %v1935_v26 }
 0x7e0   :  { %v1981_v32 = vadd.f32 %v1980_v9, %v1958_v30  ;;  %v4315_v9 = vld [vmem:[%s5146_s2] ss:$0 sm:$0xff]  ;;  %s4116_s2 = sld [smem:[%s5826_s0 + %s4452_s30]]  }
 0x7e1   :  { %v4316_v30 = vld [vmem:[%s5157_s7] ss:$0 sm:$0xff] }
 0x7e2   :  { %v2004_v38 = vadd.f32 %v2003_v24, %v1981_v32 }
 0x7e4   :  { %v2026_v41 = vpop.f32.mrf.mxu1 }
 0x7e5   :  { %v2027_v42 = vadd.f32 %v2026_v41, %v2004_v38  ;;  %v2095_v48 = vpop.f32.mrf.mxu0 }
 0x7e7   :  { %v1960_v33 = vpop.f32.mrf.mxu3 }
 0x7e8   :  { %v1983_v35 = vpop.f32.mrf.mxu2  ;;  %v1961_v40 = vadd.f32 %v1960_v33, %v1938_v36 }
 0x7ea   :  { %v1984_v43 = vadd.f32 %v1983_v35, %v1961_v40 }
 0x7ec   :  { %v2007_v6 = vadd.f32 %v2006_v57, %v1984_v43  ;;  %v2029_v51 = vpop.f32.mrf.mxu1 }
 0x7ed   :  { %v2098_v60 = vpop.f32.mrf.mxu0 }
 0x7ee   :  { %v2030_v52 = vadd.f32 %v2029_v51, %v2007_v6 }
 0x7f0   :  { %v2049_v44 = vpop.f32.mrf.mxu3 }
 0x7f1   :  { %v2050_v45 = vadd.f32 %v2049_v44, %v2027_v42  ;;  %v2072_v47 = vpop.f32.mrf.mxu2  ;;  %v4317_v42 = vld [vmem:[%s5162_s11] ss:$0 sm:$0xff] }
 0x7f3   :  { %v2073_v49 = vadd.f32 %v2072_v47, %v2050_v45 }
 0x7f5   :  { %v2096_v50 = vadd.f32 %v2095_v48, %v2073_v49 }
 0x7f7   :  { %v2101_v53 = vadd.f32 %v2096_v50, %v4694_v46 }
 0x7f8   :  { %v2052_v54 = vpop.f32.mrf.mxu3 }
 0x7f9   :  { %v2053_v55 = vadd.f32 %v2052_v54, %v2030_v52  ;;  %v2105_v56 = vsel %vm276_vm3, %v2101_v53, 0.0  ;;  %v2075_v58 = vpop.f32.mrf.mxu2 }
 0x7fa   :  { %2106 = vadd.xlane.f32.xlu0 %v2105_v56 }
 0x7fb   :  { %v2076_v59 = vadd.f32 %v2075_v58, %v2053_v55 }
 0x7fd   :  { %v2099_v61 = vadd.f32 %v2098_v60, %v2076_v59 }
 0x7ff   :  { %v2102_v29 = vadd.f32 %v2099_v61, %v4740_v25  ;;  %v2162_v25 = vld [vmem:[%s4102_s29 + $0x18] sm:$0xff] }
 0x800   :  { %2185 = vmatpush.msrb.mxu1 %v2162_v25 }
 0x801   :  { %v2108_v62 = vsel %vm276_vm3, %v2102_v29, 0.0 }
 0x802   :  { %2109 = vadd.xlane.f32.xlu1 %v2108_v62  ;;  %2186 = vmatpush.msrb.mxu1 %v2161_v7 }
 0x804   :  { %2187 = vmatpush.msrb.mxu1 %v2160_v8 }
 0x806   :  { %2188 = vmatpush.msrb.mxu1 %v2159_v10 }
 0x86d   :  { %v2107_v46 = vpop.xlane.xlu0 %2106 }
 0x86e   :  { %v2111_v63 = vmul.f32 %v2107_v46, %v4654_v37 }
 0x870   :  { %v2113_v0 = vsub.f32 %v2101_v53, %v2111_v63 }
 0x872   :  { %v2115_v1 = vmul.f32 %v2113_v0, %v2113_v0 }
 0x874   :  { %v2117_v2 = vsel %vm276_vm3, %v2115_v1, 0.0 }
 0x875   :  { %v2110_v39 = vpop.xlane.xlu1 %2109  ;;  %2118 = vadd.xlane.f32.xlu2 %v2117_v2 }
 0x876   :  { %v2112_v34 = vmul.f32 %v2110_v39, %v4654_v37 }
 0x878   :  { %v2114_v3 = vsub.f32 %v2102_v29, %v2112_v34 }
 0x87a   :  { %v2116_v4 = vmul.f32 %v2114_v3, %v2114_v3 }
 0x87c   :  { %v2120_v5 = vsel %vm276_vm3, %v2116_v4, 0.0 }
 0x87d   :  { %2121 = vadd.xlane.f32.xlu0 %v2120_v5 }
 0x8e8   :  { %v2119_v11 = vpop.xlane.xlu2 %2118 }
 0x8e9   :  { %v2123_v12 = vmul.f32 %v2119_v11, %v4654_v37 }
 0x8eb   :  { %v2125_v13 = vadd.f32 1e-05, %v2123_v12 }
 0x8ed   :  { %4363 = vrsqrt.f32 %v2125_v13  ;;  %vm2133_vm15 = vweird.f32 %v2125_v13 }
 0x8f0   :  { %v2122_v15 = vpop.xlane.xlu0 %2121 }
 0x8f1   :  { %v2124_v16 = vmul.f32 %v2122_v15, %v4654_v37 }
 0x8f3   :  { %v4364_v18 = vpop.eup %4363  ;;  %v2126_v19 = vadd.f32 1e-05, %v2124_v16 }
 0x8f4   :  { %v2128_v20 = vmul.f32 %v4364_v18, %v2125_v13  ;;  %vm2134_vm14 = vweird.f32 %v4364_v18 }
 0x8f5   :  { %4365 = vrsqrt.f32 %v2126_v19  ;;  %vm2135_vm0 = vmor %vm2133_vm15, %vm2134_vm14  ;;  %vm2143_vm2 = vweird.f32 %v2126_v19 }
 0x8f6   :  { %v2129_v14 = vmul.f32 %v4364_v18, %v2128_v20 }
 0x8f8   :  { %v2130_v21 = vmul.f32 0.5, %v2129_v14 }
 0x8fa   :  { %v2131_v17 = vsub.f32 1.5, %v2130_v21 }
 0x8fb   :  { %v4366_v22 = vpop.eup %4365 }
 0x8fc   :  { %v2132_v23 = vmul.f32 %v4364_v18, %v2131_v17  ;;  %v2138_v24 = vmul.f32 %v4366_v22, %v2126_v19  ;;  %vm2144_vm1 = vweird.f32 %v4366_v22 }
 0x8fd   :  { %vm2145_vm7 = vmor %vm2143_vm2, %vm2144_vm1  ;;  %vm4076_vm1 = vcmask 48128  }
 0x8fe   :  { %v2136_v26 = vsel %vm2135_vm0, %v4364_v18, %v2132_v23  ;;  %v2139_v27 = vmul.f32 %v4366_v22, %v2138_v24 }
 0x8ff   :  { %v2147_v28 = vmul.f32 %v2136_v26, %v2113_v0 }
 0x900   :  { %v2140_v31 = vmul.f32 0.5, %v2139_v27 }
 0x901   :  { %v2152_v32 = vmul.f32 %v4315_v9, %v2147_v28 }
 0x902   :  { %v2141_v33 = vsub.f32 1.5, %v2140_v31 }
 0x903   :  { %v5171_v57 = vadd.f32 %v4316_v30, %v2152_v32 }
 0x904   :  { %v2142_v35 = vmul.f32 %v4366_v22, %v2141_v33 }
 0x905   :  { %4186 = vmatmul.msk.f32.vlgmr.msrb.gmra.mxu1 %vm276_vm3, %v5171_v57 }
 0x906   :  { %v2146_v36 = vsel %vm2145_vm7, %v4366_v22, %v2142_v35 }
 0x907   :  { %v2148_v38 = vmul.f32 %v2146_v36, %v2114_v3 }
 0x909   :  { %v2153_v40 = vmul.f32 %v4315_v9, %v2148_v38 }
 0x90b   :  { %v5175_v41 = vadd.f32 %v4316_v30, %v2153_v40 }
 0x90d   :  { %4187 = vmatmul.msk.f32.gmra.mxu1 %vm276_vm3, %v5175_v41 }
 0x982   :  { %v2190_v43 = vpop.f32.mrf.mxu1 }
 0x983   :  { %v5180_v44 = vadd.f32 %v4317_v42, %v2190_v43 }
 0x985   :  { %2261 = vrot.lane.b32.xlu0 %v5180_v44, %s4420_s16  ;;  %2263 = vrot.lane.b32.xlu2 %v5180_v44, %s4418_s14 }
 0x986   :  { %2197 = vrot.lane.b32.xlu1 %v5180_v44, %s4419_s15 }
 0x98a   :  { %v2193_v45 = vpop.f32.mrf.mxu1 }
 0x98b   :  { %v5188_v47 = vadd.f32 %v4317_v42, %v2193_v45 }
 0x98d   :  { %2393 = vrot.lane.b32.xlu0 %v5180_v44, %s4416_s12  ;;  %2541 = vrot.lane.b32.xlu2 %v5188_v47, %s4418_s14  ;;  %v4303_v18 = vpack.i.bf16 %v5188_v47, %v5180_v44  ;;  %s4449_s14 = smov 31  }
 0x98e   :  { %2395 = vrot.lane.b32.xlu1 %v5180_v44, %s4417_s13 }
 0x995   :  { %2539 = vrot.lane.b32.xlu0 %v5188_v47, %s4420_s16  ;;  %2327 = vrot.lane.b32.xlu2 %v5180_v44, %s4421_s17  ;;  %s4442_s16 = smov 22  }
 0x996   :  { %2329 = vrot.lane.b32.xlu1 %v5180_v44, %s4422_s18 }
 0x99d   :  { %2475 = vrot.lane.b32.xlu0 %v5188_v47, %s4419_s15  ;;  %2671 = vrot.lane.b32.xlu2 %v5188_v47, %s4416_s12  ;;  %s4441_s12 = smov 23  }
 0x99e   :  { %2673 = vrot.lane.b32.xlu1 %v5188_v47, %s4417_s13  ;;  %s4105_s15 = sld [smem:[%s5826_s0 + %s4441_s12]]  }
 0x99f   :  { %s5795_s13 = sld [smem:[%s5826_s0 + %s4448_s28]]  }
 0x9a5   :  { %2605 = vrot.lane.b32.xlu0 %v5188_v47, %s4421_s17  ;;  %s5801_s17 = sld [smem:[%s5826_s0 + %s4449_s14]]  }
 0x9a6   :  { %2607 = vrot.lane.b32.xlu1 %v5188_v47, %s4422_s18  ;;  %s4450_s18 = smov 33  }
 0x9df   :  { %v2264_v48 = vpop.permute.xlu2 %2263 }
 0x9e7   :  { %v2542_v52 = vpop.permute.xlu2 %2541 }
 0x9ef   :  { %v2328_v55 = vpop.permute.xlu2 %2327 }
 0x9f7   :  { %v2262_v6 = vpop.permute.xlu0 %2261  ;;  %v2672_v60 = vpop.permute.xlu2 %2671 }
 0x9f8   :  { %v2198_v49 = vpop.permute.xlu1 %2197 }
 0x9f9   :  { %4188 = vmatpush.xpose.msk.msra.mxu3 %vm309_vm4, %v2198_v49 }
 0x9fc   :  { %4189 = vmatmul.msk.f32.vlgmr.msra.gmra.mxu3 %vm309_vm4, %v5180_v44 }
 0x9fd   :  { %4191 = vmatpush.xpose.msk.msrb.mxu3 %vm309_vm4, %v2264_v48 }
 0x9ff   :  { %v2394_v50 = vpop.permute.xlu0 %2393 }
 0xa00   :  { %v2396_v51 = vpop.permute.xlu1 %2395 }
 0xa01   :  { %4197 = vmatpush.xpose.msk.msra.mxu3 %vm309_vm4, %v2396_v51 }
 0xa04   :  { %4192 = vmatmul.msk.f32.vlgmr.msrb.gmra.mxu3 %vm309_vm4, %v2262_v6 }
 0xa05   :  { %4203 = vmatpush.xpose.msk.msrb.mxu3 %vm309_vm4, %v2542_v52 }
 0xa07   :  { %v2540_v53 = vpop.permute.xlu0 %2539 }
 0xa08   :  { %v2330_v54 = vpop.permute.xlu1 %2329 }
 0xa09   :  { %4194 = vmatpush.xpose.msk.msra.mxu0 %vm309_vm4, %v2330_v54 }
 0xa0c   :  { %4195 = vmatmul.msk.f32.vlgmr.msra.gmra.mxu0 %vm309_vm4, %v2328_v55  ;;  %4198 = vmatmul.msk.f32.vlgmr.msra.gmra.mxu3 %vm309_vm4, %v2394_v50 }
 0xa0f   :  { %v2476_v56 = vpop.permute.xlu0 %2475 }
 0xa10   :  { %v2674_v58 = vpop.permute.xlu1 %2673  ;;  %4200 = vmatpush.xpose.msk.msrb.mxu0 %vm309_vm4, %v2476_v56 }
 0xa11   :  { %4209 = vmatpush.xpose.msk.msra.mxu3 %vm309_vm4, %v2674_v58 }
 0xa14   :  { %4201 = vmatmul.msk.f32.vlgmr.msrb.gmra.mxu0 %vm309_vm4, %v5188_v47  ;;  %4204 = vmatmul.msk.f32.vlgmr.msrb.gmra.mxu3 %vm309_vm4, %v2540_v53 }
 0xa17   :  { %v2606_v61 = vpop.permute.xlu0 %2605 }
 0xa18   :  { %v2608_v59 = vpop.permute.xlu1 %2607 }
 0xa19   :  { %4206 = vmatpush.xpose.msk.msra.mxu0 %vm309_vm4, %v2608_v59 }
 0xa1c   :  { %4207 = vmatmul.msk.f32.vlgmr.msra.gmra.mxu0 %vm309_vm4, %v2606_v61  ;;  %4210 = vmatmul.msk.f32.vlgmr.msra.gmra.mxu3 %vm309_vm4, %v2672_v60 }
 0xa7f   :  { %v2220_v29 = vpop.f32.mrf.mxu3 }
 0xa80   :  { %v2223_v39 = vmul.f32 0.35355338, %v2220_v29 }
 0xa82   :  { %v2224_v5 = vsel %vm309_vm4, %v2223_v39, -inf }
 0xa87   :  { %v2286_v62 = vpop.f32.mrf.mxu3 }
 0xa88   :  { %v2289_v46 = vmul.f32 0.35355338, %v2286_v62 }
 0xa89   :  { %v2352_v63 = vpop.f32.mrf.mxu0 }
 0xa8a   :  { %v2355_v0 = vmul.f32 0.35355338, %v2352_v63  ;;  %v2290_v1 = vsel %vm309_vm4, %v2289_v46, -inf }
 0xa8b   :  { %2291 = vmax.xlane.f32.xlu1 %v2290_v1 }
 0xa8c   :  { %v2356_v2 = vsel %vm309_vm4, %v2355_v0, -inf }
 0xa8d   :  { %2357 = vmax.xlane.f32.xlu2 %v2356_v2 }
 0xa8f   :  { %v2418_v4 = vpop.f32.mrf.mxu3 }
 0xa90   :  { %v2421_v7 = vmul.f32 0.35355338, %v2418_v4 }
 0xa91   :  { %v2498_v34 = vpop.f32.mrf.mxu0 }
 0xa92   :  { %v2501_v3 = vmul.f32 0.35355338, %v2498_v34  ;;  %v2422_v11 = vsel %vm309_vm4, %v2421_v7, -inf }
 0xa94   :  { %v2502_v25 = vsel %vm309_vm4, %v2501_v3, -inf }
 0xa95   :  { %2225 = vmax.xlane.f32.xlu2 %v2224_v5  ;;  %2503 = vmax.xlane.f32.xlu0 %v2502_v25 }
 0xa97   :  { %v2564_v13 = vpop.f32.mrf.mxu3 }
 0xa98   :  { %v2567_v15 = vmul.f32 0.35355338, %v2564_v13 }
 0xa99   :  { %v2630_v8 = vpop.f32.mrf.mxu0 }
 0xa9a   :  { %v2633_v10 = vmul.f32 0.35355338, %v2630_v8  ;;  %v2568_v16 = vsel %vm309_vm4, %v2567_v15, -inf }
 0xa9c   :  { %v2634_v12 = vsel %vm309_vm4, %v2633_v10, -inf }
 0xa9d   :  { %2423 = vmax.xlane.f32.xlu0 %v2422_v11  ;;  %2635 = vmax.xlane.f32.xlu1 %v2634_v12 }
 0xa9f   :  { %v2696_v19 = vpop.f32.mrf.mxu3 }
 0xaa0   :  { %v2699_v20 = vmul.f32 0.35355338, %v2696_v19 }
 0xaa2   :  { %v2700_v14 = vsel %vm309_vm4, %v2699_v20, -inf }
 0xaa5   :  { %2569 = vmax.xlane.f32.xlu1 %v2568_v16 }
 0xaad   :  { %4304 = vrot.lane.b32.xlu2 %v4303_v18, %s4424_s20  ;;  %s5811_s20 = sld [smem:[%s5826_s0 + %s4450_s18]]  }
 0xab1   :  { %2433 = vrot.lane.b32.xlu0 %v5180_v44, %s4426_s22 }
 0xabe   :  { %2235 = vrot.lane.b32.xlu1 %v5180_v44, %s4423_s19 }
 0xad6   :  { %2701 = vmax.xlane.f32.xlu2 %v2700_v14 }
 0xaee   :  { %2367 = vrot.lane.b32.xlu2 %v5180_v44, %s4425_s21 }
 0xafe   :  { %v2292_v17 = vpop.xlane.xlu1 %2291 }
 0xaff   :  { %v2293_v24 = vsub.f32 %v2289_v46, %v2292_v17 }
 0xb00   :  { %v2358_v21 = vpop.xlane.xlu2 %2357 }
 0xb01   :  { %v2359_v22 = vsub.f32 %v2355_v0, %v2358_v21  ;;  %v2294_v9 = vmul.f32 1.442695, %v2293_v24 }
 0xb03   :  { %v2360_v23 = vmul.f32 1.442695, %v2359_v22 }
 0xb05   :  { %4367 = vpow2.f32 %v2360_v23 }
 0xb06   :  { %4369 = vpow2.f32 %v2294_v9 }
 0xb08   :  { %v2226_v26 = vpop.xlane.xlu2 %2225  ;;  %v2504_v27 = vpop.xlane.xlu0 %2503 }
 0xb09   :  { %v2227_v28 = vsub.f32 %v2223_v39, %v2226_v26  ;;  %v2505_v30 = vsub.f32 %v2501_v3, %v2504_v27 }
 0xb0b   :  { %v4368_v31 = vpop.eup %4367  ;;  %v2228_v32 = vmul.f32 1.442695, %v2227_v28  ;;  %v2506_v33 = vmul.f32 1.442695, %v2505_v30 }
 0xb0c   :  { %v2362_v35 = vsel %vm309_vm4, %v4368_v31, 0.0  ;;  %v4370_v42 = vpop.eup %4369 }
 0xb0d   :  { %4371 = vpow2.f32 %v2228_v32  ;;  %2363 = vadd.xlane.f32.xlu0 %v2362_v35  ;;  %v2296_v50 = vsel %vm309_vm4, %v4370_v42, 0.0 }
 0xb0e   :  { %4373 = vpow2.f32 %v2506_v33 }
 0xb10   :  { %v2636_v36 = vpop.xlane.xlu1 %2635  ;;  %v2424_v40 = vpop.xlane.xlu0 %2423 }
 0xb11   :  { %v2637_v38 = vsub.f32 %v2633_v10, %v2636_v36  ;;  %v2425_v45 = vsub.f32 %v2421_v7, %v2424_v40  ;;  %v4305_v29 = vpop.permute.xlu2 %4304 }
 0xb12   :  { %v4306_v62 = vunpack.i.l.bf16 %v4305_v29  ;;  %v4307_v18 = vunpack.i.h.bf16 %v4305_v29 }
 0xb13   :  { %v4372_v43 = vpop.eup %4371  ;;  %v2638_v44 = vmul.f32 1.442695, %v2637_v38  ;;  %v2426_v51 = vmul.f32 1.442695, %v2425_v45 }
 0xb14   :  { %v5248_v48 = vpop.eup %4373  ;;  %v2230_v6 = vsel %vm309_vm4, %v4372_v43, 0.0 }
 0xb15   :  { %4375 = vpow2.f32 %v2638_v44  ;;  %2231 = vadd.xlane.f32.xlu0 %v2230_v6  ;;  %v2508_v49 = vsel %vm309_vm4, %v5248_v48, 0.0 }
 0xb16   :  { %2509 = vadd.xlane.f32.xlu1 %v2508_v49  ;;  %4377 = vpow2.f32 %v2426_v51 }
 0xb17   :  { %2297 = vadd.xlane.f32.xlu2 %v2296_v50 }
 0xb18   :  { %v2570_v52 = vpop.xlane.xlu1 %2569 }
 0xb19   :  { %v2571_v54 = vsub.f32 %v2567_v15, %v2570_v52 }
 0xb1b   :  { %v5254_v53 = vpop.eup %4375  ;;  %v2572_v56 = vmul.f32 1.442695, %v2571_v54 }
 0xb1c   :  { %v2640_v55 = vsel %vm309_vm4, %v5254_v53, 0.0  ;;  %v4378_v58 = vpop.eup %4377 }
 0xb1d   :  { %2641 = vadd.xlane.f32.xlu0 %v2640_v55  ;;  %4379 = vpow2.f32 %v2572_v56  ;;  %v2428_v59 = vsel %vm309_vm4, %v4378_v58, 0.0 }
 0xb23   :  { %v4380_v60 = vpop.eup %4379  ;;  %v2434_v3 = vpop.permute.xlu0 %2433 }
 0xb24   :  { %v2574_v61 = vsel %vm309_vm4, %v4380_v60, 0.0 }
 0xb25   :  { %2429 = vadd.xlane.f32.xlu0 %v2428_v59 }
 0xb2d   :  { %2575 = vadd.xlane.f32.xlu0 %v2574_v61 }
 0xb2f   :  { %2513 = vrot.lane.b32.xlu1 %v5188_v47, %s4423_s19  ;;  %s4104_s19 = sld [smem:[%s5826_s0 + %s4442_s16]]  }
 0xb30   :  { %v2236_v46 = vpop.permute.xlu1 %2235 }
 0xb31   :  { %2256 = vmatpush.msra.mxu2 %v2236_v46 }
 0xb33   :  { %2322 = vmatpush.msrb.mxu2 %v4306_v62  ;;  %v4318_v62 = vld [vmem:[%s4105_s15] ss:$0 sm:$0xff] }
 0xb35   :  { %v2755_v45 = vld [vmem:[%s4104_s19 + $0x18] sm:$0xff]  ;;  %v2753_v6 = vld [vmem:[%s4104_s19 + $0x8] sm:$0xff]  ;;  %v2752_v49 = vld [vmem:[%s4104_s19] sm:$0xff] }
 0xb36   :  { %2778 = vmatpush.msrb.mxu0 %v2755_v45 }
 0xb41   :  { %2645 = vrot.lane.b32.xlu0 %v5188_v47, %s4425_s21  ;;  %s4451_s21 = smov 32  }
 0xb49   :  { %v2702_v63 = vpop.xlane.xlu2 %2701 }
 0xb4a   :  { %v2703_v0 = vsub.f32 %v2699_v20, %v2702_v63 }
 0xb4c   :  { %v2704_v1 = vmul.f32 1.442695, %v2703_v0 }
 0xb4e   :  { %4381 = vpow2.f32 %v2704_v1 }
 0xb51   :  { %v2368_v2 = vpop.permute.xlu2 %2367 }
 0xb52   :  { %2388 = vmatpush.msra.mxu1 %v2368_v2 }
 0xb54   :  { %v4382_v39 = vpop.eup %4381 }
 0xb55   :  { %v2706_v34 = vsel %vm309_vm4, %v4382_v39, 0.0 }
 0xb56   :  { %2707 = vadd.xlane.f32.xlu2 %v2706_v34 }
 0xb6e   :  { %2711 = vrot.lane.b32.xlu2 %v5188_v47, %s4426_s22 }
 0xb80   :  { %v2364_v4 = vpop.xlane.xlu0 %2363 }
 0xb81   :  { %4383 = vrcp.f32 %v2364_v4 }
 0xb87   :  { %v4384_v5 = vpop.eup %4383 }
 0xb88   :  { %v2366_v25 = vmul.f32 %v4384_v5, %v4368_v31  ;;  %v2232_v7 = vpop.xlane.xlu0 %2231 }
 0xb89   :  { %4385 = vrcp.f32 %v2232_v7  ;;  %v2510_v15 = vpop.xlane.xlu1 %2509 }
 0xb8a   :  { %4196 = vmatmul.msk.f32.vlgmr.msra.gmra.mxu1 %vm309_vm4, %v2366_v25  ;;  %v2298_v8 = vpop.xlane.xlu2 %2297 }
 0xb8b   :  { %4387 = vrcp.f32 %v2298_v8 }
 0xb8c   :  { %4389 = vrcp.f32 %v2510_v15 }
 0xb8f   :  { %v4386_v10 = vpop.eup %4385 }
 0xb90   :  { %v2234_v11 = vmul.f32 %v4386_v10, %v4372_v43  ;;  %v2642_v12 = vpop.xlane.xlu0 %2641 }
 0xb91   :  { %v4388_v13 = vpop.eup %4387 }
 0xb92   :  { %4190 = vmatmul.msk.f32.vlgmr.msra.gmra.mxu2 %vm309_vm4, %v2234_v11  ;;  %v2300_v47 = vmul.f32 %v4388_v13, %v4370_v42  ;;  %v4390_v19 = vpop.eup %4389 }
 0xb93   :  { %2454 = vmatpush.msra.mxu2 %v2434_v3  ;;  %v2512_v17 = vmul.f32 %v4390_v19, %v5248_v48  ;;  %v2754_v48 = vld [vmem:[%s4104_s19 + $0x10] sm:$0xff] }
 0xb94   :  { %2779 = vmatpush.msrb.mxu0 %v2754_v48 }
 0xb96   :  { %2780 = vmatpush.msrb.mxu0 %v2753_v6 }
 0xb98   :  { %v2430_v16 = vpop.xlane.xlu0 %2429  ;;  %2781 = vmatpush.msrb.mxu0 %v2752_v49 }
 0xb99   :  { %4391 = vrcp.f32 %v2430_v16 }
 0xb9a   :  { %4193 = vmatmul.msk.f32.vlgmr.msrb.gmra.mxu2 %vm309_vm4, %v2300_v47 }
 0xb9b   :  { %2600 = vmatpush.msrb.mxu2 %v4307_v18 }
 0xb9f   :  { %v4392_v20 = vpop.eup %4391 }
 0xba0   :  { %v2432_v14 = vmul.f32 %v4392_v20, %v4378_v58  ;;  %v2576_v21 = vpop.xlane.xlu0 %2575 }
 0xba1   :  { %v2514_v22 = vpop.permute.xlu1 %2513  ;;  %4393 = vrcp.f32 %v2576_v21 }
 0xba2   :  { %2534 = vmatpush.msrb.mxu1 %v2514_v22  ;;  %4199 = vmatmul.msk.f32.vlgmr.msra.gmra.mxu2 %vm309_vm4, %v2432_v14  ;;  %4395 = vrcp.f32 %v2642_v12 }
 0xba3   :  { %4202 = vmatmul.msk.f32.vlgmr.msrb.gmra.mxu1 %vm309_vm4, %v2512_v17 }
 0xba7   :  { %v4394_v23 = vpop.eup %4393 }
 0xba8   :  { %v2578_v24 = vmul.f32 %v4394_v23, %v4380_v60  ;;  %v4396_v9 = vpop.eup %4395 }
 0xba9   :  { %v2644_v26 = vmul.f32 %v4396_v9, %v5254_v53 }
 0xbaa   :  { %4205 = vmatmul.msk.f32.vlgmr.msrb.gmra.mxu2 %vm309_vm4, %v2578_v24 }
 0xbb3   :  { %v2646_v27 = vpop.permute.xlu0 %2645 }
 0xbb4   :  { %2666 = vmatpush.msra.mxu1 %v2646_v27 }
 0xbb5   :  { %4208 = vmatmul.msk.f32.vlgmr.msra.gmra.mxu1 %vm309_vm4, %v2644_v26 }
 0xbc9   :  { %v2708_v28 = vpop.xlane.xlu2 %2707 }
 0xbca   :  { %4397 = vrcp.f32 %v2708_v28 }
 0xbd0   :  { %v4398_v30 = vpop.eup %4397 }
 0xbd1   :  { %v2710_v31 = vmul.f32 %v4398_v30, %v4382_v39  ;;  %v2712_v32 = vpop.permute.xlu2 %2711 }
 0xbd2   :  { %2732 = vmatpush.msra.mxu2 %v2712_v32 }
 0xbd3   :  { %4211 = vmatmul.msk.f32.vlgmr.msra.gmra.mxu2 %vm309_vm4, %v2710_v31 }
 0xc07   :  { %v2390_v33 = vpop.f32.mrf.mxu1 }
 0xc08   :  { %2464 = vrot.lane.b32.xlu2 %v2390_v33, %s4428_s27 }
 0xc15   :  { %v2258_v35 = vpop.f32.mrf.mxu2 }
 0xc1d   :  { %v2324_v36 = vpop.f32.mrf.mxu2 }
 0xc1e   :  { %2460 = vrot.lane.b32.xlu1 %v2324_v36, %s4414_s4 }
 0xc20   :  { %v2536_v40 = vpop.f32.mrf.mxu1 }
 0xc25   :  { %v2456_v38 = vpop.f32.mrf.mxu2 }
 0xc26   :  { %2468 = vrot.lane.b32.xlu1 %v2456_v38, %s4427_s23 }
 0xc2d   :  { %v2602_v42 = vpop.f32.mrf.mxu2 }
 0xc2e   :  { %2738 = vrot.lane.b32.xlu2 %v2602_v42, %s4414_s4  ;;  %s4443_s4 = smov 25   ;;  %v5337_v42 = vld [vmem:[%s4614_s26] ss:$0 sm:$0xff]  ;;  %s4445_s26 = smov 28  }
 0xc2f   :  { %s5302_s22 = sld [smem:[%s5826_s0 + %s4443_s4]]  }
 0xc30   :  { %s5425_s5 = sld [smem:[%s5826_s0 + %s4445_s26]]  }
 0xc32   :  { %v2668_v43 = vpop.f32.mrf.mxu1 }
 0xc33   :  { %2742 = vrot.lane.b32.xlu0 %v2668_v43, %s4428_s27  ;;  %s4114_s27 = sld [smem:[%s5826_s0 + %s4451_s21]]  }
 0xc56   :  { %v2734_v44 = vpop.f32.mrf.mxu2 }
 0xc57   :  { %2746 = vrot.lane.b32.xlu1 %v2734_v44, %s4427_s23  ;;  %s4444_s23 = smov 26   ;;  %v5340_v44 = vld [vmem:[%s5302_s22] ss:$0 sm:$0xff] }
 0xc58   :  { %s5317_s1 = sld [smem:[%s5826_s0 + %s4444_s23]]  }
 0xc5e   :  { %v2895_v13 = vld [vmem:[%s5317_s1 + $0x180] sm:$0xff]  ;;  %v2896_v15 = vld [vmem:[%s5317_s1 + $0x188] sm:$0xff]  ;;  %v2897_v47 = vld [vmem:[%s5317_s1 + $0x190] sm:$0xff] }
 0xc5f   :  { %2965 = vmatpush.msrb.mxu1 %v2895_v13  ;;  %2988 = vmatpush.msrb.mxu3 %v2896_v15  ;;  %v2898_v16 = vld [vmem:[%s5317_s1 + $0x198] sm:$0xff]  ;;  %v2879_v18 = vld [vmem:[%s5317_s1 + $0x100] sm:$0xff]  ;;  %v2880_v19 = vld [vmem:[%s5317_s1 + $0x108] sm:$0xff] }
 0xc60   :  { %3011 = vmatpush.msrb.mxu2 %v2897_v47  ;;  %3034 = vmatpush.msra.mxu0 %v2898_v16  ;;  %v2881_v20 = vld [vmem:[%s5317_s1 + $0x110] sm:$0xff]  ;;  %v2882_v14 = vld [vmem:[%s5317_s1 + $0x118] sm:$0xff]  ;;  %v2863_v21 = vld [vmem:[%s5317_s1 + $0x80] sm:$0xff] }
 0xc61   :  { %2966 = vmatpush.msrb.mxu1 %v2879_v18  ;;  %2989 = vmatpush.msrb.mxu3 %v2880_v19  ;;  %v2864_v17 = vld [vmem:[%s5317_s1 + $0x88] sm:$0xff]  ;;  %v2865_v22 = vld [vmem:[%s5317_s1 + $0x90] sm:$0xff]  ;;  %v2866_v23 = vld [vmem:[%s5317_s1 + $0x98] sm:$0xff] }
 0xc62   :  { %v2465_v52 = vpop.permute.xlu2 %2464  ;;  %3012 = vmatpush.msrb.mxu2 %v2881_v20  ;;  %3035 = vmatpush.msra.mxu0 %v2882_v14  ;;  %v2847_v24 = vld [vmem:[%s5317_s1] sm:$0xff]  ;;  %v2848_v9 = vld [vmem:[%s5317_s1 + $0x8] sm:$0xff]  ;;  %v2849_v26 = vld [vmem:[%s5317_s1 + $0x10] sm:$0xff] }
 0xc63   :  { %2967 = vmatpush.msrb.mxu1 %v2863_v21  ;;  %2990 = vmatpush.msrb.mxu3 %v2864_v17  ;;  %v2850_v27 = vld [vmem:[%s5317_s1 + $0x18] sm:$0xff]  ;;  %v2899_v49 = vld [vmem:[%s5317_s1 + $0x1a0] sm:$0xff]  ;;  %v2872_v15 = vld [vmem:[%s5317_s1 + $0xc8] sm:$0xff] }
 0xc64   :  { %3013 = vmatpush.msrb.mxu2 %v2865_v22  ;;  %3036 = vmatpush.msra.mxu0 %v2866_v23  ;;  %v2871_v13 = vld [vmem:[%s5317_s1 + $0xc0] sm:$0xff]  ;;  %v2873_v47 = vld [vmem:[%s5317_s1 + $0xd0] sm:$0xff]  ;;  %v2874_v16 = vld [vmem:[%s5317_s1 + $0xd8] sm:$0xff] }
 0xc65   :  { %2968 = vmatpush.msrb.mxu1 %v2847_v24  ;;  %2991 = vmatpush.msrb.mxu3 %v2848_v9  ;;  %v2855_v19 = vld [vmem:[%s5317_s1 + $0x40] sm:$0xff]  ;;  %v2856_v20 = vld [vmem:[%s5317_s1 + $0x48] sm:$0xff]  ;;  %v2857_v14 = vld [vmem:[%s5317_s1 + $0x50] sm:$0xff] }
 0xc66   :  { %3014 = vmatpush.msrb.mxu2 %v2849_v26  ;;  %3037 = vmatpush.msra.mxu0 %v2850_v27  ;;  %v2858_v21 = vld [vmem:[%s5317_s1 + $0x58] sm:$0xff]  ;;  %v2908_v26 = vld [vmem:[%s5317_s1 + $0x1e8] sm:$0xff]  ;;  %v2909_v27 = vld [vmem:[%s5317_s1 + $0x1f0] sm:$0xff] }
 0xc67   :  { %3057 = vmatpush.msra.mxu1 %v2899_v49  ;;  %v3416_v49 = vld [vmem:[%s5425_s5 + $0x1f8] sm:$0xff] }
 0xc88   :  { %v2739_v56 = vpop.permute.xlu2 %2738 }
 0xc89   :  { %v2749_v59 = vsel %vm309_vm4, %v2536_v40, %v2739_v56  ;;  %v2885_v56 = vld [vmem:[%s5317_s1 + $0x130] sm:$0xff] }
 0xc90   :  { %v2461_v50 = vpop.permute.xlu1 %2460 }
 0xc91   :  { %v2471_v51 = vsel %vm309_vm4, %v2258_v35, %v2461_v50  ;;  %v2900_v50 = vld [vmem:[%s5317_s1 + $0x1a8] sm:$0xff] }
 0xc92   :  { %v2472_v53 = vsel %vm583_vm5, %v2471_v51, %v2465_v52  ;;  %v2901_v51 = vld [vmem:[%s5317_s1 + $0x1b0] sm:$0xff]  ;;  %3080 = vmatpush.msra.mxu3 %v2900_v50  ;;  %v2902_v52 = vld [vmem:[%s5317_s1 + $0x1b8] sm:$0xff] }
 0xc93   :  { %3103 = vmatpush.msra.mxu2 %v2901_v51  ;;  %v3384_v50 = vld [vmem:[%s5425_s5 + $0xf8] sm:$0xff] }
 0xc94   :  { %v3400_v51 = vld [vmem:[%s5425_s5 + $0x178] sm:$0xff] }
 0xc95   :  { %3104 = vmatpush.msra.mxu2 %v2885_v56  ;;  %v3366_v56 = vld [vmem:[%s5425_s5 + $0x68] sm:$0xff] }
 0xc98   :  { %v2469_v54 = vpop.permute.xlu1 %2468 }
 0xc99   :  { %v2473_v55 = vsel %vm585_vm6, %v2472_v53, %v2469_v54  ;;  %v2883_v53 = vld [vmem:[%s5317_s1 + $0x120] sm:$0xff]  ;;  %v2884_v54 = vld [vmem:[%s5317_s1 + $0x128] sm:$0xff] }
 0xc9a   :  { %4212 = vmatmul.msk.f32.vlgmr.msrb.gmra.mxu0 %vm276_vm3, %v2473_v55  ;;  %3058 = vmatpush.msra.mxu1 %v2883_v53  ;;  %v3415_v53 = vld [vmem:[%s5425_s5 + $0x1f0] sm:$0xff] }
 0xc9b   :  { %3126 = vmatpush.msrb.mxu0 %v2902_v52  ;;  %3081 = vmatpush.msra.mxu3 %v2884_v54  ;;  %v3367_v52 = vld [vmem:[%s5425_s5 + $0x70] sm:$0xff] }
 0xc9c   :  { %v3383_v54 = vld [vmem:[%s5425_s5 + $0xf0] sm:$0xff] }
 0xca5   :  { %v2743_v58 = vpop.permute.xlu0 %2742 }
 0xca6   :  { %v2750_v60 = vsel %vm583_vm5, %v2749_v59, %v2743_v58  ;;  %v2886_v58 = vld [vmem:[%s5317_s1 + $0x138] sm:$0xff]  ;;  %v2867_v59 = vld [vmem:[%s5317_s1 + $0xa0] sm:$0xff] }
 0xca7   :  { %3127 = vmatpush.msrb.mxu0 %v2886_v58  ;;  %3059 = vmatpush.msra.mxu1 %v2867_v59  ;;  %v3414_v58 = vld [vmem:[%s5425_s5 + $0x1e8] sm:$0xff] }
 0xca8   :  { %v3382_v59 = vld [vmem:[%s5425_s5 + $0xe8] sm:$0xff] }
 0xcc9   :  { %v2747_v61 = vpop.permute.xlu1 %2746 }
 0xcca   :  { %v2751_v29 = vsel %vm585_vm6, %v2750_v60, %v2747_v61  ;;  %v2868_v61 = vld [vmem:[%s5317_s1 + $0xa8] sm:$0xff] }
 0xccb   :  { %4213 = vmatmul.msk.f32.gmra.mxu0 %vm276_vm3, %v2751_v29  ;;  %v2869_v29 = vld [vmem:[%s5317_s1 + $0xb0] sm:$0xff]  ;;  %3082 = vmatpush.msra.mxu3 %v2868_v61  ;;  %v3365_v61 = vld [vmem:[%s5425_s5 + $0x60] sm:$0xff] }
 0xccc   :  { %3105 = vmatpush.msra.mxu2 %v2869_v29  ;;  %v3413_v29 = vld [vmem:[%s5425_s5 + $0x1e0] sm:$0xff] }
 0xd17   :  { %v2783_v46 = vpop.f32.mrf.mxu0 }
 0xd18   :  { %v2784_v63 = vadd.f32 %v4318_v62, %v2783_v46  ;;  %v2851_v46 = vld [vmem:[%s5317_s1 + $0x20] sm:$0xff] }
 0xd19   :  { %3060 = vmatpush.msra.mxu1 %v2851_v46  ;;  %v3397_v46 = vld [vmem:[%s5425_s5 + $0x160] sm:$0xff] }
 0xd1a   :  { %v2789_v0 = vadd.f32 %v2784_v63, %v5171_v57  ;;  %v2852_v63 = vld [vmem:[%s5317_s1 + $0x28] sm:$0xff] }
 0xd1b   :  { %3083 = vmatpush.msra.mxu3 %v2852_v63  ;;  %v3364_v63 = vld [vmem:[%s5425_s5 + $0x58] sm:$0xff] }
 0xd1c   :  { %v2793_v1 = vsel %vm276_vm3, %v2789_v0, 0.0 }
 0xd1d   :  { %2794 = vadd.xlane.f32.xlu2 %v2793_v1  ;;  %v2853_v1 = vld [vmem:[%s5317_s1 + $0x30] sm:$0xff] }
 0xd1e   :  { %3106 = vmatpush.msra.mxu2 %v2853_v1  ;;  %v3380_v1 = vld [vmem:[%s5425_s5 + $0xd8] sm:$0xff] }
 0xd48   :  { %v2786_v2 = vpop.f32.mrf.mxu0 }
 0xd49   :  { %v2787_v39 = vadd.f32 %v4318_v62, %v2786_v2  ;;  %v2870_v62 = vld [vmem:[%s5317_s1 + $0xb8] sm:$0xff] }
 0xd4a   :  { %v2854_v2 = vld [vmem:[%s5317_s1 + $0x38] sm:$0xff]  ;;  %3128 = vmatpush.msrb.mxu0 %v2870_v62  ;;  %v3381_v62 = vld [vmem:[%s5425_s5 + $0xe0] sm:$0xff] }
 0xd4b   :  { %v2790_v34 = vadd.f32 %v2787_v39, %v5175_v41 }
 0xd4c   :  { %3129 = vmatpush.msrb.mxu0 %v2854_v2  ;;  %v3396_v2 = vld [vmem:[%s5425_s5 + $0x158] sm:$0xff] }
 0xd4d   :  { %v2796_v3 = vsel %vm276_vm3, %v2790_v34, 0.0 }
 0xd4e   :  { %2797 = vadd.xlane.f32.xlu0 %v2796_v3 }
 0xd90   :  { %v2795_v4 = vpop.xlane.xlu2 %2794 }
 0xd91   :  { %v2799_v5 = vmul.f32 %v2795_v4, %v4654_v37  ;;  %v2903_v4 = vld [vmem:[%s5317_s1 + $0x1c0] sm:$0xff] }
 0xd93   :  { %v2801_v57 = vsub.f32 %v2789_v0, %v2799_v5  ;;  %v2904_v5 = vld [vmem:[%s5317_s1 + $0x1c8] sm:$0xff] }
 0xd95   :  { %v2803_v25 = vmul.f32 %v2801_v57, %v2801_v57 }
 0xd97   :  { %v2805_v7 = vsel %vm276_vm3, %v2803_v25, 0.0  ;;  %v2906_v25 = vld [vmem:[%s5317_s1 + $0x1d8] sm:$0xff] }
 0xd98   :  { %2806 = vadd.xlane.f32.xlu1 %v2805_v7  ;;  %v2887_v7 = vld [vmem:[%s5317_s1 + $0x140] sm:$0xff] }
 0xdc1   :  { %v2798_v8 = vpop.xlane.xlu0 %2797 }
 0xdc2   :  { %v2800_v10 = vmul.f32 %v2798_v8, %v4654_v37  ;;  %v2888_v8 = vld [vmem:[%s5317_s1 + $0x148] sm:$0xff] }
 0xdc4   :  { %v5309_v11 = vsub.f32 %v2790_v34, %v2800_v10 }
 0xdc6   :  { %v2804_v12 = vmul.f32 %v5309_v11, %v5309_v11 }
 0xdc8   :  { %v2808_v41 = vsel %vm276_vm3, %v2804_v12, 0.0  ;;  %v2889_v12 = vld [vmem:[%s5317_s1 + $0x150] sm:$0xff] }
 0xdc9   :  { %2809 = vadd.xlane.f32.xlu2 %v2808_v41  ;;  %v2890_v41 = vld [vmem:[%s5317_s1 + $0x158] sm:$0xff] }
 0xe0b   :  { %v2807_v28 = vpop.xlane.xlu1 %2806 }
 0xe0c   :  { %v2811_v30 = vmul.f32 %v2807_v28, %v4654_v37  ;;  %v2910_v28 = vld [vmem:[%s5317_s1 + $0x1f8] sm:$0xff] }
 0xe0e   :  { %v2813_v31 = vadd.f32 1e-05, %v2811_v30  ;;  %v2891_v30 = vld [vmem:[%s5317_s1 + $0x160] sm:$0xff] }
 0xe10   :  { %4399 = vrsqrt.f32 %v2813_v31  ;;  %vm2821_vm5 = vweird.f32 %v2813_v31 }
 0xe16   :  { %v4400_v32 = vpop.eup %4399 }
 0xe17   :  { %v2816_v33 = vmul.f32 %v4400_v32, %v2813_v31  ;;  %vm2822_vm4 = vweird.f32 %v4400_v32  ;;  %v2892_v31 = vld [vmem:[%s5317_s1 + $0x168] sm:$0xff] }
 0xe18   :  { %vm2823_vm6 = vmor %vm2821_vm5, %vm2822_vm4 }
 0xe19   :  { %v2817_v35 = vmul.f32 %v4400_v32, %v2816_v33  ;;  %v2894_v33 = vld [vmem:[%s5317_s1 + $0x178] sm:$0xff] }
 0xe1b   :  { %v2818_v36 = vmul.f32 0.5, %v2817_v35  ;;  %v2875_v35 = vld [vmem:[%s5317_s1 + $0xe0] sm:$0xff] }
 0xe1d   :  { %v2819_v38 = vsub.f32 1.5, %v2818_v36  ;;  %v2876_v36 = vld [vmem:[%s5317_s1 + $0xe8] sm:$0xff] }
 0xe1f   :  { %v2820_v40 = vmul.f32 %v4400_v32, %v2819_v38  ;;  %v2877_v38 = vld [vmem:[%s5317_s1 + $0xf0] sm:$0xff] }
 0xe21   :  { %v2824_v43 = vsel %vm2823_vm6, %v4400_v32, %v2820_v40  ;;  %v2893_v32 = vld [vmem:[%s5317_s1 + $0x170] sm:$0xff]  ;;  %v2878_v40 = vld [vmem:[%s5317_s1 + $0xf8] sm:$0xff] }
 0xe22   :  { %v2835_v45 = vmul.f32 %v2824_v43, %v2801_v57  ;;  %v2905_v57 = vld [vmem:[%s5317_s1 + $0x1d0] sm:$0xff]  ;;  %v2860_v43 = vld [vmem:[%s5317_s1 + $0x68] sm:$0xff] }
 0xe24   :  { %v2840_v48 = vmul.f32 %v5337_v42, %v2835_v45  ;;  %v2862_v45 = vld [vmem:[%s5317_s1 + $0x78] sm:$0xff] }
 0xe26   :  { %v5344_v6 = vadd.f32 %v5340_v44, %v2840_v48  ;;  %v3368_v48 = vld [vmem:[%s5425_s5 + $0x78] sm:$0xff] }
 0xe28   :  { %4214 = vmatmul.msk.f32.vlgmr.msrb.gmra.mxu1 %vm276_vm3, %v5344_v6  ;;  %4216 = vmatmul.msk.f32.vlgmr.msrb.gmra.mxu3 %vm276_vm3, %v5344_v6 }
 0xe29   :  { %4218 = vmatmul.msk.f32.vlgmr.msrb.gmra.mxu2 %vm276_vm3, %v5344_v6  ;;  %4220 = vmatmul.msk.f32.vlgmr.msra.gmra.mxu0 %vm276_vm3, %v5344_v6 }
 0xe2a   :  { %3149 = vmatpush.msrb.mxu1 %v2903_v4  ;;  %3172 = vmatpush.msrb.mxu3 %v2904_v5  ;;  %v3395_v4 = vld [vmem:[%s5425_s5 + $0x150] sm:$0xff]  ;;  %v3362_v5 = vld [vmem:[%s5425_s5 + $0x48] sm:$0xff] }
 0xe2b   :  { %3195 = vmatpush.msrb.mxu2 %v2905_v57  ;;  %3218 = vmatpush.msra.mxu0 %v2906_v25  ;;  %v3410_v57 = vld [vmem:[%s5425_s5 + $0x1c8] sm:$0xff] }
 0xe2c   :  { %3150 = vmatpush.msrb.mxu1 %v2887_v7  ;;  %3173 = vmatpush.msrb.mxu3 %v2888_v8  ;;  %v3378_v25 = vld [vmem:[%s5425_s5 + $0xc8] sm:$0xff]  ;;  %v3361_v8 = vld [vmem:[%s5425_s5 + $0x40] sm:$0xff] }
 0xe2d   :  { %3196 = vmatpush.msrb.mxu2 %v2889_v12  ;;  %3219 = vmatpush.msra.mxu0 %v2890_v41  ;;  %v3394_v7 = vld [vmem:[%s5425_s5 + $0x148] sm:$0xff]  ;;  %v3377_v12 = vld [vmem:[%s5425_s5 + $0xc0] sm:$0xff] }
 0xe2e   :  { %3151 = vmatpush.msrb.mxu1 %v2871_v13  ;;  %3174 = vmatpush.msrb.mxu3 %v2872_v15  ;;  %v3393_v41 = vld [vmem:[%s5425_s5 + $0x140] sm:$0xff]  ;;  %v3360_v13 = vld [vmem:[%s5425_s5 + $0x38] sm:$0xff] }
 0xe2f   :  { %3197 = vmatpush.msrb.mxu2 %v2873_v47  ;;  %3220 = vmatpush.msra.mxu0 %v2874_v16  ;;  %v3408_v15 = vld [vmem:[%s5425_s5 + $0x1b8] sm:$0xff] }
 0xe30   :  { %3152 = vmatpush.msrb.mxu1 %v2855_v19  ;;  %3175 = vmatpush.msrb.mxu3 %v2856_v20  ;;  %v3376_v47 = vld [vmem:[%s5425_s5 + $0xb8] sm:$0xff]  ;;  %v3407_v19 = vld [vmem:[%s5425_s5 + $0x1b0] sm:$0xff] }
 0xe31   :  { %3198 = vmatpush.msrb.mxu2 %v2857_v14  ;;  %3221 = vmatpush.msra.mxu0 %v2858_v21  ;;  %v3392_v16 = vld [vmem:[%s5425_s5 + $0x138] sm:$0xff]  ;;  %v3375_v20 = vld [vmem:[%s5425_s5 + $0xb0] sm:$0xff]  ;;  %v3358_v21 = vld [vmem:[%s5425_s5 + $0x28] sm:$0xff] }
 0xe32   :  { %v3391_v14 = vld [vmem:[%s5425_s5 + $0x130] sm:$0xff] }
 0xe3c   :  { %v2810_v55 = vpop.xlane.xlu2 %2809 }
 0xe3d   :  { %v2812_v60 = vmul.f32 %v2810_v55, %v4654_v37  ;;  %v3399_v55 = vld [vmem:[%s5425_s5 + $0x170] sm:$0xff] }
 0xe3f   :  { %v2814_v0 = vadd.f32 1e-05, %v2812_v60  ;;  %v3398_v60 = vld [vmem:[%s5425_s5 + $0x168] sm:$0xff] }
 0xe41   :  { %4401 = vrsqrt.f32 %v2814_v0  ;;  %vm2831_vm9 = vweird.f32 %v2814_v0 }
 0xe47   :  { %v4402_v39 = vpop.eup %4401 }
 0xe48   :  { %v2826_v34 = vmul.f32 %v4402_v39, %v2814_v0  ;;  %vm2832_vm8 = vweird.f32 %v4402_v39  ;;  %v3412_v0 = vld [vmem:[%s5425_s5 + $0x1d8] sm:$0xff] }
 0xe49   :  { %vm2833_vm10 = vmor %vm2831_vm9, %vm2832_vm8 }
 0xe4a   :  { %v2827_v3 = vmul.f32 %v4402_v39, %v2826_v34  ;;  %v3411_v34 = vld [vmem:[%s5425_s5 + $0x1d0] sm:$0xff] }
 0xe4c   :  { %v2828_v10 = vmul.f32 0.5, %v2827_v3  ;;  %v3379_v3 = vld [vmem:[%s5425_s5 + $0xd0] sm:$0xff] }
 0xe4e   :  { %v2829_v18 = vsub.f32 1.5, %v2828_v10  ;;  %v3409_v10 = vld [vmem:[%s5425_s5 + $0x1c0] sm:$0xff] }
 0xe50   :  { %v2830_v17 = vmul.f32 %v4402_v39, %v2829_v18  ;;  %v3359_v18 = vld [vmem:[%s5425_s5 + $0x30] sm:$0xff] }
 0xe52   :  { %v2834_v22 = vsel %vm2833_vm10, %v4402_v39, %v2830_v17  ;;  %v3363_v39 = vld [vmem:[%s5425_s5 + $0x50] sm:$0xff]  ;;  %v3406_v17 = vld [vmem:[%s5425_s5 + $0x1a8] sm:$0xff] }
 0xe53   :  { %v2836_v23 = vmul.f32 %v2834_v22, %v5309_v11  ;;  %v2907_v11 = vld [vmem:[%s5317_s1 + $0x1e0] sm:$0xff]  ;;  %v3374_v22 = vld [vmem:[%s5425_s5 + $0xa8] sm:$0xff] }
 0xe55   :  { %v2841_v24 = vmul.f32 %v5337_v42, %v2836_v23  ;;  %v2859_v42 = vld [vmem:[%s5317_s1 + $0x60] sm:$0xff]  ;;  %v3390_v23 = vld [vmem:[%s5425_s5 + $0x128] sm:$0xff] }
 0xe57   :  { %v5390_v9 = vadd.f32 %v5340_v44, %v2841_v24  ;;  %v2861_v44 = vld [vmem:[%s5317_s1 + $0x70] sm:$0xff]  ;;  %v3357_v24 = vld [vmem:[%s5425_s5 + $0x20] sm:$0xff] }
 0xe59   :  { %4215 = vmatmul.msk.f32.gmra.mxu1 %vm276_vm3, %v5390_v9  ;;  %4217 = vmatmul.msk.f32.gmra.mxu3 %vm276_vm3, %v5390_v9 }
 0xe5a   :  { %4219 = vmatmul.msk.f32.gmra.mxu2 %vm276_vm3, %v5390_v9  ;;  %4221 = vmatmul.msk.f32.gmra.mxu0 %vm276_vm3, %v5390_v9 }
 0xe61   :  { %4222 = vmatmul.msk.f32.vlgmr.msra.gmra.mxu1 %vm276_vm3, %v5344_v6  ;;  %4224 = vmatmul.msk.f32.vlgmr.msra.gmra.mxu3 %vm276_vm3, %v5344_v6 }
 0xe62   :  { %4226 = vmatmul.msk.f32.vlgmr.msra.gmra.mxu2 %vm276_vm3, %v5344_v6  ;;  %4228 = vmatmul.msk.f32.vlgmr.msrb.gmra.mxu0 %vm276_vm3, %v5344_v6 }
 0xe63   :  { %3241 = vmatpush.msra.mxu1 %v2907_v11  ;;  %3264 = vmatpush.msra.mxu3 %v2908_v26  ;;  %v3405_v11 = vld [vmem:[%s5425_s5 + $0x1a0] sm:$0xff] }
 0xe64   :  { %3287 = vmatpush.msra.mxu2 %v2909_v27  ;;  %3310 = vmatpush.msrb.mxu0 %v2910_v28  ;;  %v3373_v26 = vld [vmem:[%s5425_s5 + $0xa0] sm:$0xff]  ;;  %v3356_v28 = vld [vmem:[%s5425_s5 + $0x18] sm:$0xff] }
 0xe65   :  { %3242 = vmatpush.msra.mxu1 %v2891_v30  ;;  %3265 = vmatpush.msra.mxu3 %v2892_v31  ;;  %v3389_v27 = vld [vmem:[%s5425_s5 + $0x120] sm:$0xff]  ;;  %v3404_v30 = vld [vmem:[%s5425_s5 + $0x198] sm:$0xff] }
 0xe66   :  { %3288 = vmatpush.msra.mxu2 %v2893_v32  ;;  %3311 = vmatpush.msrb.mxu0 %v2894_v33  ;;  %v3372_v31 = vld [vmem:[%s5425_s5 + $0x98] sm:$0xff]  ;;  %v3355_v33 = vld [vmem:[%s5425_s5 + $0x10] sm:$0xff] }
 0xe67   :  { %3243 = vmatpush.msra.mxu1 %v2875_v35  ;;  %3266 = vmatpush.msra.mxu3 %v2876_v36  ;;  %v3388_v32 = vld [vmem:[%s5425_s5 + $0x118] sm:$0xff]  ;;  %v3403_v35 = vld [vmem:[%s5425_s5 + $0x190] sm:$0xff] }
 0xe68   :  { %3289 = vmatpush.msra.mxu2 %v2877_v38  ;;  %3312 = vmatpush.msrb.mxu0 %v2878_v40  ;;  %v3371_v36 = vld [vmem:[%s5425_s5 + $0x90] sm:$0xff]  ;;  %v3354_v40 = vld [vmem:[%s5425_s5 + $0x8] sm:$0xff] }
 0xe69   :  { %4223 = vmatmul.msk.f32.gmra.mxu1 %vm276_vm3, %v5390_v9  ;;  %4225 = vmatmul.msk.f32.gmra.mxu3 %vm276_vm3, %v5390_v9  ;;  %v3387_v38 = vld [vmem:[%s5425_s5 + $0x110] sm:$0xff] }
 0xe6a   :  { %4227 = vmatmul.msk.f32.gmra.mxu2 %vm276_vm3, %v5390_v9  ;;  %4229 = vmatmul.msk.f32.gmra.mxu0 %vm276_vm3, %v5390_v9 }
 0xe6b   :  { %3244 = vmatpush.msra.mxu1 %v2859_v42  ;;  %3267 = vmatpush.msra.mxu3 %v2860_v43  ;;  %v3402_v42 = vld [vmem:[%s5425_s5 + $0x188] sm:$0xff] }
 0xe6c   :  { %3290 = vmatpush.msra.mxu2 %v2861_v44  ;;  %3313 = vmatpush.msrb.mxu0 %v2862_v45  ;;  %v3370_v43 = vld [vmem:[%s5425_s5 + $0x88] sm:$0xff]  ;;  %v3353_v45 = vld [vmem:[%s5425_s5] sm:$0xff] }
 0xe6d   :  { %v3386_v44 = vld [vmem:[%s5425_s5 + $0x108] sm:$0xff] }
 0xe71   :  { %4230 = vmatmul.msk.f32.vlgmr.msrb.gmra.mxu1 %vm276_vm3, %v5344_v6  ;;  %4232 = vmatmul.msk.f32.vlgmr.msrb.gmra.mxu3 %vm276_vm3, %v5344_v6 }
 0xe72   :  { %4234 = vmatmul.msk.f32.vlgmr.msrb.gmra.mxu2 %vm276_vm3, %v5344_v6  ;;  %4236 = vmatmul.msk.f32.vlgmr.msra.gmra.mxu0 %vm276_vm3, %v5344_v6 }
 0xe73   :  { %3613 = vmatpush.msrb.mxu1 %v3368_v48  ;;  %3682 = vmatpush.msra.mxu0 %v3416_v49  ;;  %v3401_v48 = vld [vmem:[%s5425_s5 + $0x180] sm:$0xff]  ;;  %v3432_v49 = vld [vmem:[%s5425_s5 + $0x278] sm:$0xff] }
 0xe74   :  { %3636 = vmatpush.msrb.mxu3 %v3384_v50  ;;  %3659 = vmatpush.msrb.mxu2 %v3400_v51  ;;  %v3480_v50 = vld [vmem:[%s5425_s5 + $0x3f8] sm:$0xff]  ;;  %v3369_v51 = vld [vmem:[%s5425_s5 + $0x80] sm:$0xff] }
 0xe75   :  { %3614 = vmatpush.msrb.mxu1 %v3367_v52  ;;  %3683 = vmatpush.msra.mxu0 %v3415_v53  ;;  %v3385_v52 = vld [vmem:[%s5425_s5 + $0x100] sm:$0xff]  ;;  %v3431_v53 = vld [vmem:[%s5425_s5 + $0x270] sm:$0xff] }
 0xe76   :  { %3637 = vmatpush.msrb.mxu3 %v3383_v54  ;;  %3660 = vmatpush.msrb.mxu2 %v3399_v55  ;;  %v3479_v54 = vld [vmem:[%s5425_s5 + $0x3f0] sm:$0xff]  ;;  %v3448_v55 = vld [vmem:[%s5425_s5 + $0x2f8] sm:$0xff] }
 0xe77   :  { %3615 = vmatpush.msrb.mxu1 %v3366_v56  ;;  %3684 = vmatpush.msra.mxu0 %v3414_v58  ;;  %v3464_v56 = vld [vmem:[%s5425_s5 + $0x378] sm:$0xff]  ;;  %v3430_v58 = vld [vmem:[%s5425_s5 + $0x268] sm:$0xff] }
 0xe78   :  { %3638 = vmatpush.msrb.mxu3 %v3382_v59  ;;  %3661 = vmatpush.msrb.mxu2 %v3398_v60  ;;  %v3478_v59 = vld [vmem:[%s5425_s5 + $0x3e8] sm:$0xff]  ;;  %v3447_v60 = vld [vmem:[%s5425_s5 + $0x2f0] sm:$0xff] }
 0xe79   :  { %4231 = vmatmul.msk.f32.gmra.mxu1 %vm276_vm3, %v5390_v9  ;;  %4233 = vmatmul.msk.f32.gmra.mxu3 %vm276_vm3, %v5390_v9 }
 0xe7a   :  { %4235 = vmatmul.msk.f32.gmra.mxu2 %vm276_vm3, %v5390_v9  ;;  %4237 = vmatmul.msk.f32.gmra.mxu0 %vm276_vm3, %v5390_v9 }
 0xe7b   :  { %3616 = vmatpush.msrb.mxu1 %v3365_v61  ;;  %3685 = vmatpush.msra.mxu0 %v3413_v29  ;;  %v3463_v61 = vld [vmem:[%s5425_s5 + $0x370] sm:$0xff]  ;;  %v3429_v29 = vld [vmem:[%s5425_s5 + $0x260] sm:$0xff] }
 0xe7c   :  { %3639 = vmatpush.msrb.mxu3 %v3381_v62  ;;  %3662 = vmatpush.msrb.mxu2 %v3397_v46  ;;  %v3477_v62 = vld [vmem:[%s5425_s5 + $0x3e0] sm:$0xff]  ;;  %v3446_v46 = vld [vmem:[%s5425_s5 + $0x2e8] sm:$0xff] }
 0xe7d   :  { %3617 = vmatpush.msrb.mxu1 %v3364_v63  ;;  %3686 = vmatpush.msra.mxu0 %v3412_v0  ;;  %v3462_v63 = vld [vmem:[%s5425_s5 + $0x368] sm:$0xff]  ;;  %v3428_v0 = vld [vmem:[%s5425_s5 + $0x258] sm:$0xff] }
 0xe7e   :  { %3640 = vmatpush.msrb.mxu3 %v3380_v1  ;;  %3663 = vmatpush.msrb.mxu2 %v3396_v2  ;;  %v3476_v1 = vld [vmem:[%s5425_s5 + $0x3d8] sm:$0xff]  ;;  %v3445_v2 = vld [vmem:[%s5425_s5 + $0x2e0] sm:$0xff] }
 0xe7f   :  { %3618 = vmatpush.msrb.mxu1 %v3363_v39  ;;  %3687 = vmatpush.msra.mxu0 %v3411_v34  ;;  %v3461_v39 = vld [vmem:[%s5425_s5 + $0x360] sm:$0xff] }
 0xe80   :  { %3641 = vmatpush.msrb.mxu3 %v3379_v3  ;;  %3664 = vmatpush.msrb.mxu2 %v3395_v4  ;;  %v5557_v34 = vld [vmem:[%s5538_s9] sm:$0xff]  ;;  %v3427_v3 = vld [vmem:[%s5425_s5 + $0x250] sm:$0xff] }
 0xe81   :  { %4238 = vmatmul.msk.f32.vlgmr.msra.gmra.mxu1 %vm276_vm3, %v5344_v6  ;;  %4240 = vmatmul.msk.f32.vlgmr.msra.gmra.mxu3 %vm276_vm3, %v5344_v6  ;;  %v3475_v4 = vld [vmem:[%s5425_s5 + $0x3d0] sm:$0xff] }
 0xe82   :  { %4242 = vmatmul.msk.f32.vlgmr.msra.gmra.mxu2 %vm276_vm3, %v5344_v6  ;;  %4244 = vmatmul.msk.f32.vlgmr.msrb.gmra.mxu0 %vm276_vm3, %v5344_v6 }
 0xe83   :  { %3619 = vmatpush.msrb.mxu1 %v3362_v5  ;;  %3688 = vmatpush.msra.mxu0 %v3410_v57  ;;  %v3444_v5 = vld [vmem:[%s5425_s5 + $0x2d8] sm:$0xff] }
 0xe84   :  { %3642 = vmatpush.msrb.mxu3 %v3378_v25  ;;  %3665 = vmatpush.msrb.mxu2 %v3394_v7  ;;  %v3460_v57 = vld [vmem:[%s5425_s5 + $0x358] sm:$0xff]  ;;  %v3426_v25 = vld [vmem:[%s5425_s5 + $0x248] sm:$0xff] }
 0xe85   :  { %3620 = vmatpush.msrb.mxu1 %v3361_v8  ;;  %3689 = vmatpush.msra.mxu0 %v3409_v10  ;;  %v3474_v7 = vld [vmem:[%s5425_s5 + $0x3c8] sm:$0xff]  ;;  %v2915_v8 = vperm.slane %v5557_v34, 0  ;;  %v3443_v10 = vld [vmem:[%s5425_s5 + $0x2d0] sm:$0xff] }
 0xe86   :  { %3643 = vmatpush.msrb.mxu3 %v3377_v12  ;;  %3666 = vmatpush.msrb.mxu2 %v3393_v41  ;;  %v3459_v12 = vld [vmem:[%s5425_s5 + $0x350] sm:$0xff]  ;;  %v2918_v41 = vperm.slane %v5557_v34, 3 }
 0xe87   :  { %3621 = vmatpush.msrb.mxu1 %v3360_v13  ;;  %3690 = vmatpush.msra.mxu0 %v3408_v15  ;;  %v3425_v13 = vld [vmem:[%s5425_s5 + $0x240] sm:$0xff] }
 0xe88   :  { %3644 = vmatpush.msrb.mxu3 %v3376_v47  ;;  %3667 = vmatpush.msrb.mxu2 %v3392_v16  ;;  %v3473_v15 = vld [vmem:[%s5425_s5 + $0x3c0] sm:$0xff]  ;;  %v3442_v47 = vld [vmem:[%s5425_s5 + $0x2c8] sm:$0xff] }
 0xe89   :  { %4239 = vmatmul.msk.f32.gmra.mxu1 %vm276_vm3, %v5390_v9  ;;  %4241 = vmatmul.msk.f32.gmra.mxu3 %vm276_vm3, %v5390_v9  ;;  %v3458_v16 = vld [vmem:[%s5425_s5 + $0x348] sm:$0xff] }
 0xe8a   :  { %4243 = vmatmul.msk.f32.gmra.mxu2 %vm276_vm3, %v5390_v9  ;;  %4245 = vmatmul.msk.f32.gmra.mxu0 %vm276_vm3, %v5390_v9 }
 0xe8b   :  { %3622 = vmatpush.msrb.mxu1 %v3359_v18  ;;  %3691 = vmatpush.msra.mxu0 %v3407_v19  ;;  %v3424_v19 = vld [vmem:[%s5425_s5 + $0x238] sm:$0xff] }
 0xe8c   :  { %3645 = vmatpush.msrb.mxu3 %v3375_v20  ;;  %3668 = vmatpush.msrb.mxu2 %v3391_v14  ;;  %v3472_v20 = vld [vmem:[%s5425_s5 + $0x3b8] sm:$0xff] }
 0xe8d   :  { %3623 = vmatpush.msrb.mxu1 %v3358_v21  ;;  %3692 = vmatpush.msra.mxu0 %v3406_v17  ;;  %v3441_v17 = vld [vmem:[%s5425_s5 + $0x2c0] sm:$0xff] }
 0xe8e   :  { %3646 = vmatpush.msrb.mxu3 %v3374_v22  ;;  %3669 = vmatpush.msrb.mxu2 %v3390_v23  ;;  %v3457_v22 = vld [vmem:[%s5425_s5 + $0x340] sm:$0xff] }
 0xe8f   :  { %3624 = vmatpush.msrb.mxu1 %v3357_v24  ;;  %3693 = vmatpush.msra.mxu0 %v3405_v11  ;;  %v3471_v24 = vld [vmem:[%s5425_s5 + $0x3b0] sm:$0xff] }
 0xe90   :  { %3647 = vmatpush.msrb.mxu3 %v3373_v26  ;;  %3670 = vmatpush.msrb.mxu2 %v3389_v27  ;;  %v2916_v26 = vperm.slane %v5557_v34, 1  ;;  %v3423_v27 = vld [vmem:[%s5425_s5 + $0x230] sm:$0xff] }
 0xe91   :  { %3625 = vmatpush.msrb.mxu1 %v3356_v28  ;;  %3694 = vmatpush.msra.mxu0 %v3404_v30  ;;  %v2917_v30 = vperm.slane %v5557_v34, 2 }
 0xe92   :  { %3648 = vmatpush.msrb.mxu3 %v3372_v31  ;;  %3671 = vmatpush.msrb.mxu2 %v3388_v32  ;;  %v3470_v31 = vld [vmem:[%s5425_s5 + $0x3a8] sm:$0xff]  ;;  %v3440_v32 = vld [vmem:[%s5425_s5 + $0x2b8] sm:$0xff] }
 0xe93   :  { %3626 = vmatpush.msrb.mxu1 %v3355_v33  ;;  %3695 = vmatpush.msra.mxu0 %v3403_v35  ;;  %v3422_v33 = vld [vmem:[%s5425_s5 + $0x228] sm:$0xff]  ;;  %v3456_v35 = vld [vmem:[%s5425_s5 + $0x338] sm:$0xff] }
 0xe94   :  { %3649 = vmatpush.msrb.mxu3 %v3371_v36  ;;  %3672 = vmatpush.msrb.mxu2 %v3387_v38  ;;  %v3469_v38 = vld [vmem:[%s5425_s5 + $0x3a0] sm:$0xff] }
 0xe95   :  { %3627 = vmatpush.msrb.mxu1 %v3354_v40  ;;  %3696 = vmatpush.msra.mxu0 %v3402_v42  ;;  %v3439_v40 = vld [vmem:[%s5425_s5 + $0x2b0] sm:$0xff] }
 0xe96   :  { %3650 = vmatpush.msrb.mxu3 %v3370_v43  ;;  %3673 = vmatpush.msrb.mxu2 %v3386_v44  ;;  %v3421_v44 = vld [vmem:[%s5425_s5 + $0x220] sm:$0xff] }
 0xe97   :  { %3628 = vmatpush.msrb.mxu1 %v3353_v45  ;;  %3697 = vmatpush.msra.mxu0 %v3401_v48  ;;  %v3455_v45 = vld [vmem:[%s5425_s5 + $0x330] sm:$0xff] }
 0xe98   :  { %3651 = vmatpush.msrb.mxu3 %v3369_v51  ;;  %3674 = vmatpush.msrb.mxu2 %v3385_v52  ;;  %v3420_v51 = vld [vmem:[%s5425_s5 + $0x218] sm:$0xff] }
 0xe99   :  { %3705 = vmatpush.msra.mxu1 %v3432_v49  ;;  %3774 = vmatpush.msrb.mxu0 %v3480_v50  ;;  %v3468_v49 = vld [vmem:[%s5425_s5 + $0x398] sm:$0xff] }
 0xe9a   :  { %3728 = vmatpush.msra.mxu3 %v3448_v55  ;;  %3751 = vmatpush.msra.mxu2 %v3464_v56  ;;  %v3419_v55 = vld [vmem:[%s5425_s5 + $0x210] sm:$0xff] }
 0xe9b   :  { %3706 = vmatpush.msra.mxu1 %v3431_v53  ;;  %3775 = vmatpush.msrb.mxu0 %v3479_v54  ;;  %v3438_v53 = vld [vmem:[%s5425_s5 + $0x2a8] sm:$0xff]  ;;  %v3467_v56 = vld [vmem:[%s5425_s5 + $0x390] sm:$0xff] }
 0xe9c   :  { %3729 = vmatpush.msra.mxu3 %v3447_v60  ;;  %3752 = vmatpush.msra.mxu2 %v3463_v61  ;;  %v3454_v54 = vld [vmem:[%s5425_s5 + $0x328] sm:$0xff] }
 0xe9d   :  { %3707 = vmatpush.msra.mxu1 %v3430_v58  ;;  %3776 = vmatpush.msrb.mxu0 %v3478_v59  ;;  %v3437_v58 = vld [vmem:[%s5425_s5 + $0x2a0] sm:$0xff]  ;;  %v3418_v60 = vld [vmem:[%s5425_s5 + $0x208] sm:$0xff] }
 0xe9e   :  { %3730 = vmatpush.msra.mxu3 %v3446_v46  ;;  %3753 = vmatpush.msra.mxu2 %v3462_v63  ;;  %v3453_v59 = vld [vmem:[%s5425_s5 + $0x320] sm:$0xff]  ;;  %v3466_v61 = vld [vmem:[%s5425_s5 + $0x388] sm:$0xff] }
 0xe9f   :  { %3708 = vmatpush.msra.mxu1 %v3429_v29  ;;  %3777 = vmatpush.msrb.mxu0 %v3477_v62  ;;  %v3436_v29 = vld [vmem:[%s5425_s5 + $0x298] sm:$0xff]  ;;  %v3417_v46 = vld [vmem:[%s5425_s5 + $0x200] sm:$0xff] }
 0xea0   :  { %3731 = vmatpush.msra.mxu3 %v3445_v2  ;;  %3754 = vmatpush.msra.mxu2 %v3461_v39  ;;  %v3452_v62 = vld [vmem:[%s5425_s5 + $0x318] sm:$0xff]  ;;  %v3465_v63 = vld [vmem:[%s5425_s5 + $0x380] sm:$0xff]  ;;  %v3435_v2 = vld [vmem:[%s5425_s5 + $0x290] sm:$0xff] }
 0xea1   :  { %3709 = vmatpush.msra.mxu1 %v3428_v0  ;;  %3778 = vmatpush.msrb.mxu0 %v3476_v1  ;;  %v3496_v0 = vld [vmem:[%s5425_s5 + $0x478] sm:$0xff]  ;;  %v3451_v39 = vld [vmem:[%s5425_s5 + $0x310] sm:$0xff] }
 0xea2   :  { %3732 = vmatpush.msra.mxu3 %v3444_v5  ;;  %3755 = vmatpush.msra.mxu2 %v3460_v57  ;;  %v3544_v1 = vld [vmem:[%s5425_s5 + $0x5f8] sm:$0xff]  ;;  %v3434_v5 = vld [vmem:[%s5425_s5 + $0x288] sm:$0xff] }
 0xea3   :  { %3710 = vmatpush.msra.mxu1 %v3427_v3  ;;  %3779 = vmatpush.msrb.mxu0 %v3475_v4  ;;  %v3495_v3 = vld [vmem:[%s5425_s5 + $0x470] sm:$0xff]  ;;  %v3450_v57 = vld [vmem:[%s5425_s5 + $0x308] sm:$0xff] }
 0xea4   :  { %3733 = vmatpush.msra.mxu3 %v3443_v10  ;;  %3756 = vmatpush.msra.mxu2 %v3459_v12  ;;  %v3543_v4 = vld [vmem:[%s5425_s5 + $0x5f0] sm:$0xff]  ;;  %v3433_v10 = vld [vmem:[%s5425_s5 + $0x280] sm:$0xff] }
 0xea5   :  { %3711 = vmatpush.msra.mxu1 %v3426_v25  ;;  %3780 = vmatpush.msrb.mxu0 %v3474_v7  ;;  %v2970_v18 = vpop.f32.mrf.mxu1  ;;  %v3494_v25 = vld [vmem:[%s5425_s5 + $0x468] sm:$0xff]  ;;  %v3449_v12 = vld [vmem:[%s5425_s5 + $0x300] sm:$0xff] }
 0xea6   :  { %v2971_v14 = vadd.f32 %v2970_v18, %v2915_v8  ;;  %v3039_v21 = vpop.f32.mrf.mxu0  ;;  %3734 = vmatpush.msra.mxu3 %v3442_v47  ;;  %3757 = vmatpush.msra.mxu2 %v3458_v16  ;;  %v3542_v7 = vld [vmem:[%s5425_s5 + $0x5e8] sm:$0xff]  ;;  %v3528_v47 = vld [vmem:[%s5425_s5 + $0x578] sm:$0xff]  ;;  %v3541_v16 = vld [vmem:[%s5425_s5 + $0x5e0] sm:$0xff] }
 0xea7   :  { %3712 = vmatpush.msra.mxu1 %v3425_v13  ;;  %3781 = vmatpush.msrb.mxu0 %v3473_v15  ;;  %v3040_v23 = vadd.f32 %v3039_v21, %v2918_v41  ;;  %v3493_v13 = vld [vmem:[%s5425_s5 + $0x460] sm:$0xff]  ;;  %v3512_v15 = vld [vmem:[%s5425_s5 + $0x4f8] sm:$0xff]  ;;  %v3491_v21 = vld [vmem:[%s5425_s5 + $0x450] sm:$0xff] }
 0xea8   :  { %v3321_v11 = vmax.f32 %v2971_v14, 0.0  ;;  %3735 = vmatpush.msra.mxu3 %v3441_v17  ;;  %3758 = vmatpush.msra.mxu2 %v3457_v22  ;;  %v3492_v18 = vld [vmem:[%s5425_s5 + $0x458] sm:$0xff]  ;;  %v3510_v17 = vld [vmem:[%s5425_s5 + $0x4e8] sm:$0xff] }
 0xea9   :  { %3713 = vmatpush.msra.mxu1 %v3424_v19  ;;  %3782 = vmatpush.msrb.mxu0 %v3472_v20  ;;  %v3324_v28 = vmax.f32 %v3040_v23, 0.0  ;;  %v3511_v19 = vld [vmem:[%s5425_s5 + $0x4f0] sm:$0xff]  ;;  %v3540_v14 = vld [vmem:[%s5425_s5 + $0x5d8] sm:$0xff]  ;;  %v3526_v22 = vld [vmem:[%s5425_s5 + $0x568] sm:$0xff] }
 0xeaa   :  { %3629 = vmatmul.f32.vlgmr.msrb.gmra.mxu1 %v3321_v11  ;;  %3736 = vmatpush.msra.mxu3 %v3440_v32  ;;  %v3527_v20 = vld [vmem:[%s5425_s5 + $0x570] sm:$0xff]  ;;  %v3509_v11 = vld [vmem:[%s5425_s5 + $0x4e0] sm:$0xff]  ;;  %v3508_v32 = vld [vmem:[%s5425_s5 + $0x4d8] sm:$0xff] }
 0xeab   :  { %3783 = vmatpush.msrb.mxu0 %v3471_v24  ;;  %v2993_v36 = vpop.f32.mrf.mxu3  ;;  %3714 = vmatpush.msra.mxu1 %v3423_v27  ;;  %v3539_v23 = vld [vmem:[%s5425_s5 + $0x5d0] sm:$0xff]  ;;  %v3490_v24 = vld [vmem:[%s5425_s5 + $0x448] sm:$0xff]  ;;  %v3525_v27 = vld [vmem:[%s5425_s5 + $0x560] sm:$0xff] }
 0xeac   :  { %3698 = vmatmul.f32.vlgmr.msra.gmra.mxu0 %v3324_v28  ;;  %v2994_v42 = vadd.f32 %v2993_v36, %v2916_v26  ;;  %v3016_v43 = vpop.f32.mrf.mxu2  ;;  %3759 = vmatpush.msra.mxu2 %v3456_v35  ;;  %v3538_v28 = vld [vmem:[%s5425_s5 + $0x5c8] sm:$0xff]  ;;  %v3537_v35 = vld [vmem:[%s5425_s5 + $0x5c0] sm:$0xff]  ;;  %v3488_v36 = vld [vmem:[%s5425_s5 + $0x438] sm:$0xff] }
 0xead   :  { %3784 = vmatpush.msrb.mxu0 %v3470_v31  ;;  %v3017_v48 = vadd.f32 %v3016_v43, %v2917_v30  ;;  %3715 = vmatpush.msra.mxu1 %v3422_v33  ;;  %v3489_v31 = vld [vmem:[%s5425_s5 + $0x440] sm:$0xff]  ;;  %v3524_v33 = vld [vmem:[%s5425_s5 + $0x558] sm:$0xff]  ;;  %v3487_v43 = vld [vmem:[%s5425_s5 + $0x430] sm:$0xff] }
 0xeae   :  { %v3322_v50 = vmax.f32 %v2994_v42, 0.0  ;;  %3737 = vmatpush.msra.mxu3 %v3439_v40  ;;  %3760 = vmatpush.msra.mxu2 %v3455_v45  ;;  %v3523_v40 = vld [vmem:[%s5425_s5 + $0x550] sm:$0xff]  ;;  %v3536_v42 = vld [vmem:[%s5425_s5 + $0x5b8] sm:$0xff]  ;;  %v3522_v45 = vld [vmem:[%s5425_s5 + $0x548] sm:$0xff] }
 0xeaf   :  { %3785 = vmatpush.msrb.mxu0 %v3469_v38  ;;  %v3323_v52 = vmax.f32 %v3017_v48, 0.0  ;;  %3716 = vmatpush.msra.mxu1 %v3421_v44  ;;  %v3507_v38 = vld [vmem:[%s5425_s5 + $0x4d0] sm:$0xff]  ;;  %v3506_v44 = vld [vmem:[%s5425_s5 + $0x4c8] sm:$0xff] }
 0xeb0   :  { %3652 = vmatmul.f32.vlgmr.msrb.gmra.mxu3 %v3322_v50  ;;  %3761 = vmatpush.msra.mxu2 %v3454_v54  ;;  %v3535_v48 = vld [vmem:[%s5425_s5 + $0x5b0] sm:$0xff]  ;;  %v3505_v50 = vld [vmem:[%s5425_s5 + $0x4c0] sm:$0xff]  ;;  %v3504_v54 = vld [vmem:[%s5425_s5 + $0x4b8] sm:$0xff] }
 0xeb1   :  { %3786 = vmatpush.msrb.mxu0 %v3468_v49  ;;  %3675 = vmatmul.f32.vlgmr.msrb.gmra.mxu2 %v3323_v52  ;;  %v3486_v49 = vld [vmem:[%s5425_s5 + $0x428] sm:$0xff] }
 0xeb2   :  { %3717 = vmatpush.msra.mxu1 %v3420_v51  ;;  %3738 = vmatpush.msra.mxu3 %v3438_v53  ;;  %v3521_v51 = vld [vmem:[%s5425_s5 + $0x540] sm:$0xff]  ;;  %v3534_v52 = vld [vmem:[%s5425_s5 + $0x5a8] sm:$0xff] }
 0xeb3   :  { %3787 = vmatpush.msrb.mxu0 %v3467_v56  ;;  %3762 = vmatpush.msra.mxu2 %v3453_v59  ;;  %v3485_v53 = vld [vmem:[%s5425_s5 + $0x420] sm:$0xff]  ;;  %v3503_v59 = vld [vmem:[%s5425_s5 + $0x4b0] sm:$0xff] }
 0xeb4   :  { %3718 = vmatpush.msra.mxu1 %v3419_v55  ;;  %3739 = vmatpush.msra.mxu3 %v3437_v58  ;;  %v3520_v55 = vld [vmem:[%s5425_s5 + $0x538] sm:$0xff]  ;;  %v3533_v56 = vld [vmem:[%s5425_s5 + $0x5a0] sm:$0xff] }
 0xeb5   :  { %3788 = vmatpush.msrb.mxu0 %v3466_v61  ;;  %3763 = vmatpush.msra.mxu2 %v3452_v62  ;;  %v3484_v58 = vld [vmem:[%s5425_s5 + $0x418] sm:$0xff]  ;;  %v3502_v62 = vld [vmem:[%s5425_s5 + $0x4a8] sm:$0xff] }
 0xeb6   :  { %3719 = vmatpush.msra.mxu1 %v3418_v60  ;;  %3740 = vmatpush.msra.mxu3 %v3436_v29  ;;  %v3519_v60 = vld [vmem:[%s5425_s5 + $0x530] sm:$0xff]  ;;  %v3532_v61 = vld [vmem:[%s5425_s5 + $0x598] sm:$0xff] }
 0xeb7   :  { %3789 = vmatpush.msrb.mxu0 %v3465_v63  ;;  %3764 = vmatpush.msra.mxu2 %v3451_v39  ;;  %v3483_v29 = vld [vmem:[%s5425_s5 + $0x410] sm:$0xff]  ;;  %v3530_v39 = vld [vmem:[%s5425_s5 + $0x588] sm:$0xff] }
 0xeb8   :  { %3720 = vmatpush.msra.mxu1 %v3417_v46  ;;  %3741 = vmatpush.msra.mxu3 %v3435_v2  ;;  %v3518_v46 = vld [vmem:[%s5425_s5 + $0x528] sm:$0xff]  ;;  %v3531_v63 = vld [vmem:[%s5425_s5 + $0x590] sm:$0xff]  ;;  %v3517_v2 = vld [vmem:[%s5425_s5 + $0x520] sm:$0xff] }
 0xeb9   :  { %3866 = vmatpush.msra.mxu0 %v3544_v1  ;;  %3765 = vmatpush.msra.mxu2 %v3450_v57  ;;  %v3501_v1 = vld [vmem:[%s5425_s5 + $0x4a0] sm:$0xff] }
 0xeba   :  { %3797 = vmatpush.msrb.mxu1 %v3496_v0  ;;  %3742 = vmatpush.msra.mxu3 %v3434_v5  ;;  %v3482_v0 = vld [vmem:[%s5425_s5 + $0x408] sm:$0xff]  ;;  %v3516_v5 = vld [vmem:[%s5425_s5 + $0x518] sm:$0xff]  ;;  %v3529_v57 = vld [vmem:[%s5425_s5 + $0x580] sm:$0xff] }
 0xebb   :  { %3867 = vmatpush.msra.mxu0 %v3543_v4  ;;  %3766 = vmatpush.msra.mxu2 %v3449_v12  ;;  %v3500_v4 = vld [vmem:[%s5425_s5 + $0x498] sm:$0xff] }
 0xebc   :  { %3798 = vmatpush.msrb.mxu1 %v3495_v3  ;;  %3743 = vmatpush.msra.mxu3 %v3433_v10  ;;  %v3481_v3 = vld [vmem:[%s5425_s5 + $0x400] sm:$0xff]  ;;  %v3515_v10 = vld [vmem:[%s5425_s5 + $0x510] sm:$0xff] }
 0xebd   :  { %3868 = vmatpush.msra.mxu0 %v3542_v7  ;;  %3843 = vmatpush.msrb.mxu2 %v3528_v47 }
 0xebe   :  { %3799 = vmatpush.msrb.mxu1 %v3494_v25  ;;  %3820 = vmatpush.msrb.mxu3 %v3512_v15  ;;  %v3499_v25 = vld [vmem:[%s5425_s5 + $0x490] sm:$0xff]  ;;  %v3498_v15 = vld [vmem:[%s5425_s5 + $0x488] sm:$0xff] }
 0xebf   :  { %3869 = vmatpush.msra.mxu0 %v3541_v16  ;;  %3844 = vmatpush.msrb.mxu2 %v3527_v20  ;;  %v3514_v16 = vld [vmem:[%s5425_s5 + $0x508] sm:$0xff] }
 0xec0   :  { %3800 = vmatpush.msrb.mxu1 %v3493_v13  ;;  %3821 = vmatpush.msrb.mxu3 %v3511_v19  ;;  %v3497_v19 = vld [vmem:[%s5425_s5 + $0x480] sm:$0xff] }
 0xec1   :  { %3870 = vmatpush.msra.mxu0 %v3540_v14  ;;  %3845 = vmatpush.msrb.mxu2 %v3526_v22  ;;  %v3513_v14 = vld [vmem:[%s5425_s5 + $0x500] sm:$0xff] }
 0xec2   :  { %3801 = vmatpush.msrb.mxu1 %v3492_v18  ;;  %3822 = vmatpush.msrb.mxu3 %v3510_v17  ;;  %v2922_v17 = vperm.slane %v5557_v34, 7 }
 0xec3   :  { %3871 = vmatpush.msra.mxu0 %v3539_v23  ;;  %3846 = vmatpush.msrb.mxu2 %v3525_v27 }
 0xec4   :  { %3802 = vmatpush.msrb.mxu1 %v3491_v21  ;;  %3823 = vmatpush.msrb.mxu3 %v3509_v11  ;;  %v2919_v21 = vperm.slane %v5557_v34, 4 }
 0xec5   :  { %3872 = vmatpush.msra.mxu0 %v3538_v28  ;;  %3847 = vmatpush.msrb.mxu2 %v3524_v33 }
 0xec6   :  { %3803 = vmatpush.msrb.mxu1 %v3490_v24  ;;  %3824 = vmatpush.msrb.mxu3 %v3508_v32 }
 0xec7   :  { %3873 = vmatpush.msra.mxu0 %v3537_v35  ;;  %3848 = vmatpush.msrb.mxu2 %v3523_v40  ;;  %v2920_v35 = vperm.slane %v5557_v34, 5  ;;  %v3559_v40 = vld [vmem:[%s5425_s5 + $0x670] sm:$0xff] }
 0xec8   :  { %3804 = vmatpush.msrb.mxu1 %v3489_v31  ;;  %3825 = vmatpush.msrb.mxu3 %v3507_v38  ;;  %v2921_v38 = vperm.slane %v5557_v34, 6  ;;  %v3606_v34 = vld [vmem:[%s5425_s5 + $0x7e8] sm:$0xff] }
 0xec9   :  { %3874 = vmatpush.msra.mxu0 %v3536_v42  ;;  %3849 = vmatpush.msrb.mxu2 %v3522_v45 }
 0xeca   :  { %3805 = vmatpush.msrb.mxu1 %v3488_v36  ;;  %3826 = vmatpush.msrb.mxu3 %v3506_v44 }
 0xecb   :  { %3875 = vmatpush.msra.mxu0 %v3535_v48  ;;  %3850 = vmatpush.msrb.mxu2 %v3521_v51  ;;  %v3558_v48 = vld [vmem:[%s5425_s5 + $0x668] sm:$0xff] }
 0xecc   :  { %3806 = vmatpush.msrb.mxu1 %v3487_v43  ;;  %3827 = vmatpush.msrb.mxu3 %v3505_v50  ;;  %v3607_v43 = vld [vmem:[%s5425_s5 + $0x7f0] sm:$0xff] }
 0xecd   :  { %3876 = vmatpush.msra.mxu0 %v3534_v52  ;;  %3851 = vmatpush.msrb.mxu2 %v3520_v55 }
 0xece   :  { %3807 = vmatpush.msrb.mxu1 %v3486_v49  ;;  %3828 = vmatpush.msrb.mxu3 %v3504_v54  ;;  %v3557_v54 = vld [vmem:[%s5425_s5 + $0x660] sm:$0xff] }
 0xecf   :  { %3877 = vmatpush.msra.mxu0 %v3533_v56  ;;  %3852 = vmatpush.msrb.mxu2 %v3519_v60  ;;  %v5708_v60 = vld [vmem:[%s5538_s9 + $0x8] sm:$0xff] }
 0xed0   :  { %3808 = vmatpush.msrb.mxu1 %v3485_v53  ;;  %3829 = vmatpush.msrb.mxu3 %v3503_v59  ;;  %v3592_v59 = vld [vmem:[%s5425_s5 + $0x778] sm:$0xff] }
 0xed1   :  { %3878 = vmatpush.msra.mxu0 %v3532_v61  ;;  %3853 = vmatpush.msrb.mxu2 %v3518_v46  ;;  %v3556_v46 = vld [vmem:[%s5425_s5 + $0x658] sm:$0xff] }
 0xed2   :  { %3809 = vmatpush.msrb.mxu1 %v3484_v58  ;;  %3830 = vmatpush.msrb.mxu3 %v3502_v62  ;;  %v3576_v58 = vld [vmem:[%s5425_s5 + $0x6f8] sm:$0xff] }
 0xed3   :  { %3879 = vmatpush.msra.mxu0 %v3531_v63  ;;  %3854 = vmatpush.msrb.mxu2 %v3517_v2  ;;  %v3575_v63 = vld [vmem:[%s5425_s5 + $0x6f0] sm:$0xff] }
 0xed4   :  { %3810 = vmatpush.msrb.mxu1 %v3483_v29  ;;  %3831 = vmatpush.msrb.mxu3 %v3501_v1  ;;  %v3605_v29 = vld [vmem:[%s5425_s5 + $0x7e0] sm:$0xff]  ;;  %v2923_v1 = vperm.slane %v5708_v60, 0 }
 0xed5   :  { %3880 = vmatpush.msra.mxu0 %v3530_v39  ;;  %3855 = vmatpush.msrb.mxu2 %v3516_v5  ;;  %v3604_v39 = vld [vmem:[%s5425_s5 + $0x7d8] sm:$0xff] }
 0xed6   :  { %3811 = vmatpush.msrb.mxu1 %v3482_v0  ;;  %v2973_v7 = vpop.f32.mrf.mxu1  ;;  %3832 = vmatpush.msrb.mxu3 %v3500_v4  ;;  %v3591_v0 = vld [vmem:[%s5425_s5 + $0x770] sm:$0xff] }
 0xed7   :  { %v2974_v12 = vadd.f32 %v2973_v7, %v2915_v8  ;;  %v3042_v13 = vpop.f32.mrf.mxu0  ;;  %3881 = vmatpush.msra.mxu0 %v3529_v57  ;;  %3856 = vmatpush.msrb.mxu2 %v3515_v10  ;;  %v3555_v4 = vld [vmem:[%s5425_s5 + $0x650] sm:$0xff]  ;;  %v3590_v7 = vld [vmem:[%s5425_s5 + $0x768] sm:$0xff] }
 0xed8   :  { %3812 = vmatpush.msrb.mxu1 %v3481_v3  ;;  %v3043_v47 = vadd.f32 %v3042_v13, %v2918_v41  ;;  %3833 = vmatpush.msrb.mxu3 %v3499_v25  ;;  %v2926_v3 = vperm.slane %v5708_v60, 3  ;;  %v3574_v25 = vld [vmem:[%s5425_s5 + $0x6e8] sm:$0xff]  ;;  %v3603_v13 = vld [vmem:[%s5425_s5 + $0x7d0] sm:$0xff] }
 0xed9   :  { %v3337_v18 = vmax.f32 %v2974_v12, 0.0  ;;  %3857 = vmatpush.msrb.mxu2 %v3514_v16 }
 0xeda   :  { %v3340_v20 = vmax.f32 %v3043_v47, 0.0  ;;  %3834 = vmatpush.msrb.mxu3 %v3498_v15  ;;  %v3554_v15 = vld [vmem:[%s5425_s5 + $0x648] sm:$0xff] }
 0xedb   :  { %3632 = vmatmul.f32.gmra.mxu1 %v3337_v18  ;;  %3858 = vmatpush.msrb.mxu2 %v3513_v14 }
 0xedc   :  { %3701 = vmatmul.f32.gmra.mxu0 %v3340_v20  ;;  %v2996_v8 = vpop.f32.mrf.mxu3  ;;  %3835 = vmatpush.msrb.mxu3 %v3497_v19  ;;  %v3573_v19 = vld [vmem:[%s5425_s5 + $0x6e0] sm:$0xff] }
 0xedd   :  { %v2997_v41 = vadd.f32 %v2996_v8, %v2916_v26  ;;  %v3019_v22 = vpop.f32.mrf.mxu2  ;;  %v3560_v26 = vld [vmem:[%s5425_s5 + $0x678] sm:$0xff]  ;;  %v3589_v20 = vld [vmem:[%s5425_s5 + $0x760] sm:$0xff]  ;;  %v3602_v8 = vld [vmem:[%s5425_s5 + $0x7c8] sm:$0xff] }
 0xede   :  { %v3020_v23 = vadd.f32 %v3019_v22, %v2917_v30  ;;  %v3062_v24 = vpop.f32.mrf.mxu1  ;;  %v3608_v30 = vld [vmem:[%s5425_s5 + $0x7f8] sm:$0xff] }
 0xedf   :  { %v3338_v11 = vmax.f32 %v2997_v41, 0.0  ;;  %v3063_v27 = vadd.f32 %v3062_v24, %v2919_v21  ;;  %v3131_v28 = vpop.f32.mrf.mxu0  ;;  %v2924_v41 = vperm.slane %v5708_v60, 1  ;;  %v3588_v24 = vld [vmem:[%s5425_s5 + $0x758] sm:$0xff] }
 0xee0   :  { %v3339_v31 = vmax.f32 %v3020_v23, 0.0  ;;  %v3132_v32 = vadd.f32 %v3131_v28, %v2922_v17  ;;  %v3572_v23 = vld [vmem:[%s5425_s5 + $0x6d8] sm:$0xff]  ;;  %v3601_v28 = vld [vmem:[%s5425_s5 + $0x7c0] sm:$0xff] }
 0xee1   :  { %v3325_v33 = vmax.f32 %v3063_v27, 0.0  ;;  %3655 = vmatmul.f32.gmra.mxu3 %v3338_v11  ;;  %v2925_v11 = vperm.slane %v5708_v60, 2 }
 0xee2   :  { %v3328_v36 = vmax.f32 %v3132_v32, 0.0  ;;  %3678 = vmatmul.f32.gmra.mxu2 %v3339_v31  ;;  %v3552_v32 = vld [vmem:[%s5425_s5 + $0x638] sm:$0xff] }
 0xee3   :  { %3721 = vmatmul.f32.vlgmr.msra.gmra.mxu1 %v3325_v33 }
 0xee4   :  { %3790 = vmatmul.f32.vlgmr.msrb.gmra.mxu0 %v3328_v36  ;;  %v3085_v42 = vpop.f32.mrf.mxu3  ;;  %3889 = vmatpush.msra.mxu1 %v3560_v26  ;;  %v3571_v26 = vld [vmem:[%s5425_s5 + $0x6d0] sm:$0xff] }
 0xee5   :  { %v3086_v44 = vadd.f32 %v3085_v42, %v2920_v35  ;;  %v3108_v45 = vpop.f32.mrf.mxu2  ;;  %3958 = vmatpush.msrb.mxu0 %v3608_v30  ;;  %v3587_v36 = vld [vmem:[%s5425_s5 + $0x750] sm:$0xff]  ;;  %v3600_v30 = vld [vmem:[%s5425_s5 + $0x7b8] sm:$0xff] }
 0xee6   :  { %v3109_v49 = vadd.f32 %v3108_v45, %v2921_v38  ;;  %v3065_v50 = vpop.f32.mrf.mxu1  ;;  %3890 = vmatpush.msra.mxu1 %v3559_v40  ;;  %v3551_v42 = vld [vmem:[%s5425_s5 + $0x630] sm:$0xff]  ;;  %v3586_v45 = vld [vmem:[%s5425_s5 + $0x748] sm:$0xff] }
 0xee7   :  { %v3326_v51 = vmax.f32 %v3086_v44, 0.0  ;;  %v3066_v52 = vadd.f32 %v3065_v50, %v2919_v21  ;;  %v3134_v53 = vpop.f32.mrf.mxu0  ;;  %3959 = vmatpush.msrb.mxu0 %v3607_v43  ;;  %v3570_v44 = vld [vmem:[%s5425_s5 + $0x6c8] sm:$0xff] }
 0xee8   :  { %v3327_v55 = vmax.f32 %v3109_v49, 0.0  ;;  %v3135_v56 = vadd.f32 %v3134_v53, %v2922_v17  ;;  %3891 = vmatpush.msra.mxu1 %v3558_v48  ;;  %v3553_v17 = vld [vmem:[%s5425_s5 + $0x640] sm:$0xff]  ;;  %v3599_v49 = vld [vmem:[%s5425_s5 + $0x7b0] sm:$0xff]  ;;  %v3550_v50 = vld [vmem:[%s5425_s5 + $0x628] sm:$0xff] }
 0xee9   :  { %v3341_v61 = vmax.f32 %v3066_v52, 0.0  ;;  %3960 = vmatpush.msrb.mxu0 %v3606_v34  ;;  %3744 = vmatmul.f32.vlgmr.msra.gmra.mxu3 %v3326_v51  ;;  %v3569_v52 = vld [vmem:[%s5425_s5 + $0x6c0] sm:$0xff] }
 0xeea   :  { %v3344_v62 = vmax.f32 %v3135_v56, 0.0  ;;  %3767 = vmatmul.f32.vlgmr.msra.gmra.mxu2 %v3327_v55  ;;  %3892 = vmatpush.msra.mxu1 %v3557_v54  ;;  %v3585_v53 = vld [vmem:[%s5425_s5 + $0x740] sm:$0xff]  ;;  %v3598_v55 = vld [vmem:[%s5425_s5 + $0x7a8] sm:$0xff] }
 0xeeb   :  { %3912 = vmatpush.msra.mxu3 %v3576_v58  ;;  %3935 = vmatpush.msra.mxu2 %v3592_v59  ;;  %v3549_v56 = vld [vmem:[%s5425_s5 + $0x620] sm:$0xff]  ;;  %v3568_v59 = vld [vmem:[%s5425_s5 + $0x6b8] sm:$0xff] }
 0xeec   :  { %3961 = vmatpush.msrb.mxu0 %v3605_v29  ;;  %3724 = vmatmul.f32.gmra.mxu1 %v3341_v61  ;;  %v3088_v2 = vpop.f32.mrf.mxu3  ;;  %v3584_v61 = vld [vmem:[%s5425_s5 + $0x738] sm:$0xff] }
 0xeed   :  { %3793 = vmatmul.f32.gmra.mxu0 %v3344_v62  ;;  %v3089_v5 = vadd.f32 %v3088_v2, %v2920_v35  ;;  %v3111_v57 = vpop.f32.mrf.mxu2  ;;  %3893 = vmatpush.msra.mxu1 %v3556_v46  ;;  %v3597_v46 = vld [vmem:[%s5425_s5 + $0x7a0] sm:$0xff] }
 0xeee   :  { %v3112_v10 = vadd.f32 %v3111_v57, %v2921_v38  ;;  %3913 = vmatpush.msra.mxu3 %v3575_v63  ;;  %3936 = vmatpush.msra.mxu2 %v3591_v0  ;;  %v3154_v12 = vpop.f32.mrf.mxu1  ;;  %v3548_v0 = vld [vmem:[%s5425_s5 + $0x618] sm:$0xff] }
 0xeef   :  { %v3342_v47 = vmax.f32 %v3089_v5, 0.0  ;;  %3962 = vmatpush.msrb.mxu0 %v3604_v39  ;;  %v3155_v16 = vadd.f32 %v3154_v12, %v2923_v1  ;;  %v3223_v18 = vpop.f32.mrf.mxu0  ;;  %3894 = vmatpush.msra.mxu1 %v3555_v4  ;;  %v3583_v4 = vld [vmem:[%s5425_s5 + $0x730] sm:$0xff]  ;;  %v2930_v5 = vperm.slane %v5708_v60, 7  ;;  %v3566_v12 = vld [vmem:[%s5425_s5 + $0x6a8] sm:$0xff] }
 0xef0   :  { %v3343_v14 = vmax.f32 %v3112_v10, 0.0  ;;  %v3224_v21 = vadd.f32 %v3223_v18, %v2926_v3  ;;  %3914 = vmatpush.msra.mxu3 %v3574_v25  ;;  %3937 = vmatpush.msra.mxu2 %v3590_v7  ;;  %v3596_v7 = vld [vmem:[%s5425_s5 + $0x798] sm:$0xff]  ;;  %v3547_v10 = vld [vmem:[%s5425_s5 + $0x610] sm:$0xff] }
 0xef1   :  { %3963 = vmatpush.msrb.mxu0 %v3603_v13  ;;  %3895 = vmatpush.msra.mxu1 %v3554_v15  ;;  %v3329_v22 = vmax.f32 %v3155_v16, 0.0  ;;  %v3582_v13 = vld [vmem:[%s5425_s5 + $0x728] sm:$0xff] }
 0xef2   :  { %3915 = vmatpush.msra.mxu3 %v3573_v19  ;;  %3938 = vmatpush.msra.mxu2 %v3589_v20  ;;  %v3332_v27 = vmax.f32 %v3224_v21, 0.0  ;;  %v3546_v16 = vld [vmem:[%s5425_s5 + $0x608] sm:$0xff]  ;;  %v3565_v20 = vld [vmem:[%s5425_s5 + $0x6a0] sm:$0xff] }
 0xef3   :  { %3964 = vmatpush.msrb.mxu0 %v3602_v8  ;;  %3747 = vmatmul.f32.gmra.mxu3 %v3342_v47  ;;  %v3595_v47 = vld [vmem:[%s5425_s5 + $0x790] sm:$0xff]  ;;  %v3594_v8 = vld [vmem:[%s5425_s5 + $0x788] sm:$0xff] }
 0xef4   :  { %3770 = vmatmul.f32.gmra.mxu2 %v3343_v14  ;;  %3896 = vmatpush.msra.mxu1 %v3553_v17  ;;  %v3177_v31 = vpop.f32.mrf.mxu3  ;;  %v3581_v14 = vld [vmem:[%s5425_s5 + $0x720] sm:$0xff]  ;;  %v2928_v17 = vperm.slane %v5708_v60, 5 }
 0xef5   :  { %3916 = vmatpush.msra.mxu3 %v3572_v23  ;;  %3939 = vmatpush.msra.mxu2 %v3588_v24  ;;  %v3178_v33 = vadd.f32 %v3177_v31, %v2924_v41  ;;  %v3200_v35 = vpop.f32.mrf.mxu2  ;;  %v2929_v23 = vperm.slane %v5708_v60, 6 }
 0xef6   :  { %3965 = vmatpush.msrb.mxu0 %v3601_v28  ;;  %3813 = vmatmul.f32.vlgmr.msrb.gmra.mxu1 %v3329_v22  ;;  %v3201_v38 = vadd.f32 %v3200_v35, %v2925_v11  ;;  %v3157_v40 = vpop.f32.mrf.mxu1  ;;  %v3545_v22 = vld [vmem:[%s5425_s5 + $0x600] sm:$0xff]  ;;  %v3580_v28 = vld [vmem:[%s5425_s5 + $0x718] sm:$0xff] }
 0xef7   :  { %3882 = vmatmul.f32.vlgmr.msra.gmra.mxu0 %v3332_v27  ;;  %3897 = vmatpush.msra.mxu1 %v3552_v32  ;;  %v3226_v43 = vpop.f32.mrf.mxu0  ;;  %v3158_v48 = vadd.f32 %v3157_v40, %v2923_v1  ;;  %v3330_v34 = vmax.f32 %v3178_v33, 0.0  ;;  %v2927_v1 = vperm.slane %v5708_v60, 4  ;;  %v3564_v27 = vld [vmem:[%s5425_s5 + $0x698] sm:$0xff]  ;;  %v3593_v32 = vld [vmem:[%s5425_s5 + $0x780] sm:$0xff]  ;;  %v3562_v40 = vld [vmem:[%s5425_s5 + $0x688] sm:$0xff] }
 0xef8   :  { %3917 = vmatpush.msra.mxu3 %v3571_v26  ;;  %3940 = vmatpush.msra.mxu2 %v3587_v36  ;;  %v3227_v51 = vadd.f32 %v3226_v43, %v2926_v3  ;;  %v3331_v54 = vmax.f32 %v3201_v38, 0.0  ;;  %v3567_v3 = vld [vmem:[%s5425_s5 + $0x6b0] sm:$0xff]  ;;  %v3578_v43 = vld [vmem:[%s5425_s5 + $0x708] sm:$0xff] }
 0xef9   :  { %3966 = vmatpush.msrb.mxu0 %v3600_v30  ;;  %3898 = vmatpush.msra.mxu1 %v3551_v42  ;;  %v3345_v58 = vmax.f32 %v3158_v48, 0.0  ;;  %v3563_v26 = vld [vmem:[%s5425_s5 + $0x690] sm:$0xff] }
 0xefa   :  { %3918 = vmatpush.msra.mxu3 %v3570_v44  ;;  %3941 = vmatpush.msra.mxu2 %v3586_v45  ;;  %v3348_v62 = vmax.f32 %v3227_v51, 0.0  ;;  %v3579_v38 = vld [vmem:[%s5425_s5 + $0x710] sm:$0xff]  ;;  %v3561_v45 = vld [vmem:[%s5425_s5 + $0x680] sm:$0xff] }
 0xefb   :  { %3967 = vmatpush.msrb.mxu0 %v3599_v49  ;;  %3899 = vmatpush.msra.mxu1 %v3550_v50  ;;  %v3577_v49 = vld [vmem:[%s5425_s5 + $0x700] sm:$0xff] }
 0xefc   :  { %3919 = vmatpush.msra.mxu3 %v3569_v52  ;;  %3942 = vmatpush.msra.mxu2 %v3585_v53  ;;  %v3180_v29 = vpop.f32.mrf.mxu3 }
 0xefd   :  { %3968 = vmatpush.msrb.mxu0 %v3598_v55  ;;  %3836 = vmatmul.f32.vlgmr.msrb.gmra.mxu3 %v3330_v34  ;;  %v3203_v63 = vpop.f32.mrf.mxu2  ;;  %v3181_v39 = vadd.f32 %v3180_v29, %v2924_v41 }
 0xefe   :  { %3859 = vmatmul.f32.vlgmr.msrb.gmra.mxu2 %v3331_v54  ;;  %3900 = vmatpush.msra.mxu1 %v3549_v56  ;;  %v3246_v2 = vpop.f32.mrf.mxu1  ;;  %v3204_v25 = vadd.f32 %v3203_v63, %v2925_v11 }
 0xeff   :  { %3920 = vmatpush.msra.mxu3 %v3568_v59  ;;  %3943 = vmatpush.msra.mxu2 %v3584_v61  ;;  %v3315_v57 = vpop.f32.mrf.mxu0  ;;  %v3247_v15 = vadd.f32 %v3246_v2, %v2927_v1  ;;  %v3346_v18 = vmax.f32 %v3181_v39, 0.0 }
 0xf00   :  { %3969 = vmatpush.msrb.mxu0 %v3597_v46  ;;  %3816 = vmatmul.f32.gmra.mxu1 %v3345_v58  ;;  %v3316_v19 = vadd.f32 %v3315_v57, %v2930_v5  ;;  %v3347_v21 = vmax.f32 %v3204_v25, 0.0 }
 0xf01   :  { %3885 = vmatmul.f32.gmra.mxu0 %v3348_v62  ;;  %3901 = vmatpush.msra.mxu1 %v3548_v0  ;;  %v3333_v11 = vmax.f32 %v3247_v15, 0.0 }
 0xf02   :  { %3921 = vmatpush.msra.mxu3 %v3567_v3  ;;  %3944 = vmatpush.msra.mxu2 %v3583_v4  ;;  %v3336_v31 = vmax.f32 %v3316_v19, 0.0 }
 0xf03   :  { %3970 = vmatpush.msrb.mxu0 %v3596_v7  ;;  %3902 = vmatpush.msra.mxu1 %v3547_v10 }
 0xf04   :  { %3922 = vmatpush.msra.mxu3 %v3566_v12  ;;  %3945 = vmatpush.msra.mxu2 %v3582_v13  ;;  %v3269_v41 = vpop.f32.mrf.mxu3 }
 0xf05   :  { %3971 = vmatpush.msrb.mxu0 %v3595_v47  ;;  %3903 = vmatpush.msra.mxu1 %v3546_v16  ;;  %v3292_v24 = vpop.f32.mrf.mxu2  ;;  %v3270_v35 = vadd.f32 %v3269_v41, %v2928_v17 }
 0xf06   :  { %3923 = vmatpush.msra.mxu3 %v3565_v20  ;;  %3946 = vmatpush.msra.mxu2 %v3581_v14  ;;  %v3249_v33 = vpop.f32.mrf.mxu1  ;;  %v3293_v36 = vadd.f32 %v3292_v24, %v2929_v23 }
 0xf07   :  { %3972 = vmatpush.msrb.mxu0 %v3594_v8  ;;  %3839 = vmatmul.f32.gmra.mxu3 %v3346_v18  ;;  %v3318_v60 = vpop.f32.mrf.mxu0  ;;  %v3250_v30 = vadd.f32 %v3249_v33, %v2927_v1  ;;  %v3334_v44 = vmax.f32 %v3270_v35, 0.0  ;;  %v4321_v1 = vld [vmem:[%s5576_s25] ss:$0 sm:$0xff] }
 0xf08   :  { %3862 = vmatmul.f32.gmra.mxu2 %v3347_v21  ;;  %3904 = vmatpush.msra.mxu1 %v3545_v22  ;;  %v3319_v42 = vadd.f32 %v3318_v60, %v2930_v5  ;;  %v3335_v48 = vmax.f32 %v3293_v36, 0.0 }
 0xf09   :  { %3924 = vmatpush.msra.mxu3 %v3564_v27  ;;  %3947 = vmatpush.msra.mxu2 %v3580_v28  ;;  %v3349_v34 = vmax.f32 %v3250_v30, 0.0 }
 0xf0a   :  { %3973 = vmatpush.msrb.mxu0 %v3593_v32  ;;  %3905 = vmatmul.f32.vlgmr.msra.gmra.mxu1 %v3333_v11  ;;  %v3352_v52 = vmax.f32 %v3319_v42, 0.0 }
 0xf0b   :  { %3974 = vmatmul.f32.vlgmr.msrb.gmra.mxu0 %v3336_v31  ;;  %3925 = vmatpush.msra.mxu3 %v3563_v26 }
 0xf0c   :  { %3948 = vmatpush.msra.mxu2 %v3579_v38  ;;  %v3272_v50 = vpop.f32.mrf.mxu3 }
 0xf0d   :  { %3926 = vmatpush.msra.mxu3 %v3562_v40  ;;  %v3295_v51 = vpop.f32.mrf.mxu2  ;;  %v3273_v53 = vadd.f32 %v3272_v50, %v2928_v17 }
 0xf0e   :  { %3949 = vmatpush.msra.mxu2 %v3578_v43  ;;  %v3296_v54 = vadd.f32 %v3295_v51, %v2929_v23 }
 0xf0f   :  { %3927 = vmatpush.msra.mxu3 %v3561_v45  ;;  %v3350_v55 = vmax.f32 %v3273_v53, 0.0 }
 0xf10   :  { %3950 = vmatpush.msra.mxu2 %v3577_v49  ;;  %3928 = vmatmul.f32.vlgmr.msra.gmra.mxu3 %v3334_v44  ;;  %v3351_v56 = vmax.f32 %v3296_v54, 0.0 }
 0xf11   :  { %3951 = vmatmul.f32.vlgmr.msra.gmra.mxu2 %v3335_v48 }
 0xf12   :  { %3908 = vmatmul.f32.gmra.mxu1 %v3349_v34 }
 0xf13   :  { %3977 = vmatmul.f32.gmra.mxu0 %v3352_v52 }
 0xf18   :  { %3931 = vmatmul.f32.gmra.mxu3 %v3350_v55 }
 0xf19   :  { %3954 = vmatmul.f32.gmra.mxu2 %v3351_v56 }
 0xf27   :  { %v3630_v58 = vpop.f32.mrf.mxu1 }
 0xf28   :  { %v3631_v39 = vadd.f32 %v4321_v1, %v3630_v58 }
 0xf29   :  { %v3699_v59 = vpop.f32.mrf.mxu0 }
 0xf33   :  { %v3653_v61 = vpop.f32.mrf.mxu3 }
 0xf34   :  { %v3676_v29 = vpop.f32.mrf.mxu2  ;;  %v3654_v3 = vadd.f32 %v3653_v61, %v3631_v39 }
 0xf36   :  { %v3677_v25 = vadd.f32 %v3676_v29, %v3654_v3 }
 0xf38   :  { %v3700_v13 = vadd.f32 %v3699_v59, %v3677_v25 }
 0xf58   :  { %v3633_v62 = vpop.f32.mrf.mxu1 }
 0xf59   :  { %v3702_v46 = vpop.f32.mrf.mxu0  ;;  %v3634_v7 = vadd.f32 %v4321_v1, %v3633_v62 }
 0xf60   :  { %v3722_v2 = vpop.f32.mrf.mxu1 }
 0xf61   :  { %v3791_v5 = vpop.f32.mrf.mxu0  ;;  %v3723_v15 = vadd.f32 %v3722_v2, %v3700_v13  ;;  %v4039_v13 = vld [vmem:[%s4114_s27] sm:$0xff] }
 0xf64   :  { %v3656_v63 = vpop.f32.mrf.mxu3 }
 0xf65   :  { %v3679_v0 = vpop.f32.mrf.mxu2  ;;  %v3657_v12 = vadd.f32 %v3656_v63, %v3634_v7  ;;  %v4042_v7 = vld [vmem:[%s4114_s27 + $0x18] sm:$0xff] }
 0xf66   :  { %4065 = vmatpush.msrb.mxu1 %v4042_v7 }
 0xf67   :  { %v3680_v47 = vadd.f32 %v3679_v0, %v3657_v12  ;;  %v4040_v12 = vld [vmem:[%s4114_s27 + $0x8] sm:$0xff] }
 0xf69   :  { %v3725_v10 = vpop.f32.mrf.mxu1  ;;  %v3703_v14 = vadd.f32 %v3702_v46, %v3680_v47 }
 0xf6a   :  { %v3794_v18 = vpop.f32.mrf.mxu0 }
 0xf6b   :  { %v3726_v17 = vadd.f32 %v3725_v10, %v3703_v14  ;;  %v4041_v10 = vld [vmem:[%s4114_s27 + $0x10] sm:$0xff] }
 0xf6c   :  { %v3745_v4 = vpop.f32.mrf.mxu3  ;;  %4066 = vmatpush.msrb.mxu1 %v4041_v10 }
 0xf6d   :  { %v3768_v57 = vpop.f32.mrf.mxu2  ;;  %v3746_v20 = vadd.f32 %v3745_v4, %v3723_v15 }
 0xf6e   :  { %4067 = vmatpush.msrb.mxu1 %v4040_v12 }
 0xf6f   :  { %v3769_v8 = vadd.f32 %v3768_v57, %v3746_v20 }
 0xf70   :  { %4068 = vmatpush.msrb.mxu1 %v4039_v13 }
 0xf71   :  { %v3792_v41 = vadd.f32 %v3791_v5, %v3769_v8 }
 0xf73   :  { %v3814_v21 = vpop.f32.mrf.mxu1 }
 0xf74   :  { %v3883_v24 = vpop.f32.mrf.mxu0  ;;  %v3815_v27 = vadd.f32 %v3814_v21, %v3792_v41 }
 0xf76   :  { %v3748_v16 = vpop.f32.mrf.mxu3 }
 0xf77   :  { %v3771_v19 = vpop.f32.mrf.mxu2  ;;  %v3749_v22 = vadd.f32 %v3748_v16, %v3726_v17 }
 0xf79   :  { %v3772_v28 = vadd.f32 %v3771_v19, %v3749_v22 }
 0xf7b   :  { %v3795_v33 = vadd.f32 %v3794_v18, %v3772_v28 }
 0xf7d   :  { %v3817_v31 = vpop.f32.mrf.mxu1 }
 0xf7e   :  { %v3886_v60 = vpop.f32.mrf.mxu0  ;;  %v3818_v38 = vadd.f32 %v3817_v31, %v3795_v33  ;;  %v4323_v31 = vld [vmem:[%s5801_s17] ss:$0 sm:$0xff] }
 0xf80   :  { %v3837_v23 = vpop.f32.mrf.mxu3 }
 0xf81   :  { %v3860_v11 = vpop.f32.mrf.mxu2  ;;  %v3838_v32 = vadd.f32 %v3837_v23, %v3815_v27 }
 0xf83   :  { %v3861_v35 = vadd.f32 %v3860_v11, %v3838_v32  ;;  %v4322_v11 = vld [vmem:[%s5795_s13] ss:$0 sm:$0xff] }
 0xf85   :  { %v3884_v30 = vadd.f32 %v3883_v24, %v3861_v35 }
 0xf87   :  { %v3906_v42 = vpop.f32.mrf.mxu1 }
 0xf88   :  { %v3907_v43 = vadd.f32 %v3906_v42, %v3884_v30  ;;  %v3975_v50 = vpop.f32.mrf.mxu0  ;;  %v4324_v42 = vld [vmem:[%s5811_s20] ss:$0 sm:$0xff] }
 0xf8a   :  { %v3840_v26 = vpop.f32.mrf.mxu3 }
 0xf8b   :  { %v3863_v36 = vpop.f32.mrf.mxu2  ;;  %v3841_v40 = vadd.f32 %v3840_v26, %v3818_v38 }
 0xf8d   :  { %v3864_v44 = vadd.f32 %v3863_v36, %v3841_v40 }
 0xf8f   :  { %v3887_v34 = vadd.f32 %v3886_v60, %v3864_v44  ;;  %v3909_v53 = vpop.f32.mrf.mxu1 }
 0xf90   :  { %v3978_v62 = vpop.f32.mrf.mxu0 }
 0xf91   :  { %v3910_v54 = vadd.f32 %v3909_v53, %v3887_v34 }
 0xf93   :  { %v3929_v45 = vpop.f32.mrf.mxu3 }
 0xf94   :  { %v3930_v48 = vadd.f32 %v3929_v45, %v3907_v43  ;;  %v3952_v49 = vpop.f32.mrf.mxu2 }
 0xf96   :  { %v3953_v51 = vadd.f32 %v3952_v49, %v3930_v48 }
 0xf98   :  { %v3976_v52 = vadd.f32 %v3975_v50, %v3953_v51 }
 0xf9a   :  { %v3981_v55 = vadd.f32 %v3976_v52, %v5344_v6 }
 0xf9b   :  { %v3932_v56 = vpop.f32.mrf.mxu3 }
 0xf9c   :  { %v3933_v58 = vadd.f32 %v3932_v56, %v3910_v54  ;;  %v3985_v59 = vsel %vm276_vm3, %v3981_v55, 0.0  ;;  %v3955_v61 = vpop.f32.mrf.mxu2 }
 0xf9d   :  { %3986 = vadd.xlane.f32.xlu0 %v3985_v59 }
 0xf9e   :  { %v3956_v29 = vadd.f32 %v3955_v61, %v3933_v58 }
 0xfa0   :  { %v3979_v46 = vadd.f32 %v3978_v62, %v3956_v29 }
 0xfa2   :  { %v3982_v63 = vadd.f32 %v3979_v46, %v5390_v9 }
 0xfa4   :  { %v3988_v6 = vsel %vm276_vm3, %v3982_v63, 0.0 }
 0xfa5   :  { %3989 = vadd.xlane.f32.xlu1 %v3988_v6 }
0x1010   :  { %v3987_v0 = vpop.xlane.xlu0 %3986 }
0x1011   :  { %v3991_v1 = vmul.f32 %v3987_v0, %v4654_v37 }
0x1013   :  { %v3993_v2 = vsub.f32 %v3981_v55, %v3991_v1 }
0x1015   :  { %v3995_v39 = vmul.f32 %v3993_v2, %v3993_v2 }
0x1017   :  { %v3997_v3 = vsel %vm276_vm3, %v3995_v39, 0.0 }
0x1018   :  { %v3990_v4 = vpop.xlane.xlu1 %3989  ;;  %3998 = vadd.xlane.f32.xlu2 %v3997_v3 }
0x1019   :  { %v3992_v9 = vmul.f32 %v3990_v4, %v4654_v37 }
0x101b   :  { %v3994_v5 = vsub.f32 %v3982_v63, %v3992_v9 }
0x101d   :  { %v3996_v57 = vmul.f32 %v3994_v5, %v3994_v5 }
0x101f   :  { %v4000_v25 = vsel %vm276_vm3, %v3996_v57, 0.0 }
0x1020   :  { %4001 = vadd.xlane.f32.xlu0 %v4000_v25 }
0x108b   :  { %v3999_v15 = vpop.xlane.xlu2 %3998 }
0x108c   :  { %v4003_v47 = vmul.f32 %v3999_v15, %v4654_v37 }
0x108e   :  { %v4005_v16 = vadd.f32 1e-05, %v4003_v47 }
0x1090   :  { %4403 = vrsqrt.f32 %v4005_v16  ;;  %vm4013_vm12 = vweird.f32 %v4005_v16 }
0x1093   :  { %v4002_v18 = vpop.xlane.xlu0 %4001 }
0x1094   :  { %v4004_v19 = vmul.f32 %v4002_v18, %v4654_v37 }
0x1096   :  { %v4404_v20 = vpop.eup %4403  ;;  %v4006_v14 = vadd.f32 1e-05, %v4004_v19 }
0x1097   :  { %v4008_v21 = vmul.f32 %v4404_v20, %v4005_v16  ;;  %vm4014_vm11 = vweird.f32 %v4404_v20 }
0x1098   :  { %4405 = vrsqrt.f32 %v4006_v14  ;;  %vm4015_vm13 = vmor %vm4013_vm12, %vm4014_vm11  ;;  %vm4023_vm15 = vweird.f32 %v4006_v14 }
0x1099   :  { %v4009_v8 = vmul.f32 %v4404_v20, %v4008_v21 }
0x109b   :  { %v4010_v17 = vmul.f32 0.5, %v4009_v8 }
0x109d   :  { %v4011_v41 = vsub.f32 1.5, %v4010_v17 }
0x109e   :  { %v4406_v22 = vpop.eup %4405 }
0x109f   :  { %v4012_v23 = vmul.f32 %v4404_v20, %v4011_v41  ;;  %v4018_v24 = vmul.f32 %v4406_v22, %v4006_v14  ;;  %vm4024_vm14 = vweird.f32 %v4406_v22 }
0x10a0   :  { %vm4025_vm0 = vmor %vm4023_vm15, %vm4024_vm14 }
0x10a1   :  { %v4016_v27 = vsel %vm4015_vm13, %v4404_v20, %v4012_v23  ;;  %v4019_v28 = vmul.f32 %v4406_v22, %v4018_v24 }
0x10a2   :  { %v4027_v32 = vmul.f32 %v4016_v27, %v3993_v2 }
0x10a3   :  { %v4020_v37 = vmul.f32 0.5, %v4019_v28 }
0x10a4   :  { %v4032_v33 = vmul.f32 %v4322_v11, %v4027_v32 }
0x10a5   :  { %v4021_v35 = vsub.f32 1.5, %v4020_v37 }
0x10a6   :  { %v4037_v26 = vadd.f32 %v4323_v31, %v4032_v33 }
0x10a7   :  { %v4022_v60 = vmul.f32 %v4406_v22, %v4021_v35 }
0x10a8   :  { %4246 = vmatmul.msk.f32.vlgmr.msrb.gmra.mxu1 %vm276_vm3, %v4037_v26 }
0x10a9   :  { %v4026_v36 = vsel %vm4025_vm0, %v4406_v22, %v4022_v60 }
0x10aa   :  { %v4028_v38 = vmul.f32 %v4026_v36, %v3994_v5 }
0x10ac   :  { %v4033_v30 = vmul.f32 %v4322_v11, %v4028_v38 }
0x10ae   :  { %v4038_v40 = vadd.f32 %v4323_v31, %v4033_v30 }
0x10b0   :  { %4247 = vmatmul.msk.f32.gmra.mxu1 %vm276_vm3, %v4038_v40 }
0x1125   :  { %v4070_v43 = vpop.f32.mrf.mxu1 }
0x1126   :  { %v4071_v44 = vadd.f32 %v4324_v42, %v4070_v43 }
0x1128   :  { %4077 = vst.msk [vmem:[%s4116_s2] sm:$0xff] %vm4076_vm1, %v4071_v44 }
0x112d   :  { %v4073_v45 = vpop.f32.mrf.mxu1 }
0x112e   :  { %v4074_v48 = vadd.f32 %v4324_v42, %v4073_v45 }
0x1130   :  { %4078 = vst.msk [vmem:[%s4116_s2 + $0x8] sm:$0xff] %vm4076_vm1, %v4074_v48 }

</bundles_post_ra>
